<compile_context>
chip_gen: v6e
topology: v6e:2x2x1
jax: 0.10.0
libtpu: 0.0.40
codegen_flags: <defaults>
</compile_context>

<pallas_src>
import jax
import jax.numpy as jnp
from jax.experimental import pallas as pl
from jax.experimental.pallas import tpu as pltpu

LANE = 128  # TPU lane width; hidden feature dims are padded to this once.


def _round_up(x, m):
    return (x + m - 1) // m * m


def _stable_sigmoid(z):
    """Two-sided numerically stable sigmoid (exp argument is always <= 0)."""
    e = jnp.exp(-jnp.abs(z))
    return jnp.where(z >= 0, 1.0, e) / (1.0 + e)


def mlp_dnn_kernel(x_ref,
                   w1_ref, b1_ref,
                   w2_ref, b2_ref,
                   w3_ref, b3_ref,
                   w4_ref, b4_ref,
                   o_ref):
    """Fused 4-layer MLP: (relu o linear) x3 -> sigmoid(linear).

    Hidden feature dims are lane-padded (128); the input (41) and output (1)
    feature dims are kept at their true widths.  Matmuls accumulate in f32
    regardless of the weight/activation dtype; bias-add + ReLU run in f32.
    Dropout = identity (eval mode).
    """
    wdt = w1_ref.dtype  # compute dtype for matmul inputs (f32 or bf16)

    h = x_ref[...]

    # Hidden layer 1: Linear + ReLU   (K = 41, unpadded)
    h = jnp.dot(h, w1_ref[...], preferred_element_type=jnp.float32) + b1_ref[...]
    h = jnp.maximum(h, 0.0).astype(wdt)

    # Hidden layer 2
    h = jnp.dot(h, w2_ref[...], preferred_element_type=jnp.float32) + b2_ref[...]
    h = jnp.maximum(h, 0.0).astype(wdt)

    # Hidden layer 3
    h = jnp.dot(h, w3_ref[...], preferred_element_type=jnp.float32) + b3_ref[...]
    h = jnp.maximum(h, 0.0).astype(wdt)

    # Output layer: Linear (N = 1, true width) + exact stable sigmoid
    z = jnp.dot(h, w4_ref[...], preferred_element_type=jnp.float32) + b4_ref[...]
    o_ref[...] = _stable_sigmoid(z)


def prepare_params(params, in_dim, compute_dtype=jnp.float32):
    """One-time prep: zero-pad hidden feature dims to 128 lanes.

    The input feature dim (first K) and the final output dim are kept at their
    true widths.  Weights are cast to `compute_dtype` (f32 or bf16 for the
    MXU); biases stay f32 (added after the f32 accumulation).
    Call this ONCE and reuse the result across forward calls.
    """
    n = len(params)
    flat = []
    k_pad = in_dim  # input feature dim stays unpadded
    for i, (w, b) in enumerate(params):
        din, dout = w.shape
        pout = dout if i == n - 1 else _round_up(dout, LANE)
        w_p = jnp.zeros((k_pad, pout), compute_dtype).at[:din, :dout].set(
            w.astype(compute_dtype))
        b_p = jnp.zeros((1, pout), jnp.float32).at[:, :dout].set(
            b.astype(jnp.float32))
        flat += [w_p, b_p]
        k_pad = pout
    return flat


def mlp_dnn_forward(x, flat_params, *, block_batch=None):
    """Run the fused MLP kernel, tiling over the batch dimension.

    `flat_params` must come from prepare_params() (already lane-padded).
    Pads only the batch dim of x; slices the real (B, out_dim) rows back out.
    """
    B, in_dim = x.shape
    out_dim = flat_params[-2].shape[1]
    compute_dtype = flat_params[0].dtype

    if block_batch is None:
        # Small batch: one big grid step (no per-step overhead; whole working
        # set is far below VMEM on every generation).  Large batch: 512-row
        # tiles -> >= 2 steps per TensorCore on v7x for pipeline overlap.
        block_batch = _round_up(B, 16) if B <= 2048 else 512

    B_pad = _round_up(B, block_batch)
    x_p = jnp.pad(x.astype(compute_dtype), ((0, B_pad - B), (0, 0)))

    grid = (B_pad // block_batch,)

    resident_spec = pl.BlockSpec  # weights/biases: whole array, resident tile
    in_specs = [pl.BlockSpec((block_batch, in_dim), lambda i: (i, 0))]  # x
    for p in flat_params:
        in_specs.append(resident_spec(p.shape, lambda i: (0, 0)))

    out_specs = pl.BlockSpec((block_batch, out_dim), lambda i: (i, 0))

    out = pl.pallas_call(
        mlp_dnn_kernel,
        out_shape=jax.ShapeDtypeStruct((B_pad, out_dim), jnp.float32),
        grid=grid,
        in_specs=in_specs,
        out_specs=out_specs,
        compiler_params=pltpu.CompilerParams(
            dimension_semantics=("parallel",)),
    )(x_p, *flat_params)

    return out[:B]


def init_params(key, layer_sizes):
    """Deterministic PyTorch-Linear-style init: U(-1/sqrt(fan_in), 1/sqrt(fan_in)).

    Weights are stored as (in_features, out_features)."""
    params = []
    for in_f, out_f in zip(layer_sizes, layer_sizes[1:]):
        key, wk, bk = jax.random.split(key, 3)
        bound = 1.0 / (in_f ** 0.5)
        w = jax.random.uniform(wk, (in_f, out_f), jnp.float32, -bound, bound)
        b = jax.random.uniform(bk, (1, out_f), jnp.float32, -bound, bound)
        params.append((w, b))
    return params


def reference_forward(x, params):
    """Plain-JAX reference for correctness checking."""
    h = x
    for i, (w, b) in enumerate(params):
        z = h @ w + b
        h = jnp.maximum(z, 0.0) if i < len(params) - 1 else jax.nn.sigmoid(z)
    return h


if __name__ == "__main__":
    # Default module config: input_shape=41, num_hidden_layers=3, num_neurons=126
    input_shape = 41
    num_neurons = 126
    layer_sizes = [input_shape, num_neurons, num_neurons, num_neurons, 1]

    # Non-multiple batch exercises the row-padding path (pads to 1008, grid=1).
    batch = 1000
    key = jax.random.PRNGKey(0)
    key, xk = jax.random.split(key)
    x = jax.random.normal(xk, (batch, input_shape), dtype=jnp.float32)

    params = init_params(key, layer_sizes)
    ref = reference_forward(x, params)

    # --- f32 path: exact-parity configuration -------------------------------
    flat_f32 = prepare_params(params, input_shape, compute_dtype=jnp.float32)
    fwd_f32 = jax.jit(mlp_dnn_forward)
    out = jax.block_until_ready(fwd_f32(x, flat_f32))
    assert out.shape == (batch, 1), out.shape
    assert jnp.allclose(out, ref, atol=1e-3, rtol=1e-3), "f32 mismatch vs reference"

    # --- bf16 matmul path (optional perf knob): f32 accumulation -------------
    flat_bf16 = prepare_params(params, input_shape, compute_dtype=jnp.bfloat16)
    out_bf16 = jax.block_until_ready(fwd_f32(x, flat_bf16))
    assert out_bf16.shape == (batch, 1), out_bf16.shape
    assert jnp.allclose(out_bf16, ref, atol=5e-2, rtol=5e-2), "bf16 mismatch vs reference"

    print("KERNEL_OK")
</pallas_src>

<mosaic_0001>
module attributes {stable_mosaic.version = 11 : i64} {
  func.func @mlp_dnn_kernel(%arg0: i32, %arg1: memref<1008x41xf32, #tpu.memory_space<vmem>>, %arg2: memref<41x128xf32, #tpu.memory_space<vmem>>, %arg3: memref<1x128xf32, #tpu.memory_space<vmem>>, %arg4: memref<128x128xf32, #tpu.memory_space<vmem>>, %arg5: memref<1x128xf32, #tpu.memory_space<vmem>>, %arg6: memref<128x128xf32, #tpu.memory_space<vmem>>, %arg7: memref<1x128xf32, #tpu.memory_space<vmem>>, %arg8: memref<128x1xf32, #tpu.memory_space<vmem>>, %arg9: memref<1x1xf32, #tpu.memory_space<vmem>>, %arg10: memref<1008x1xf32, #tpu.memory_space<vmem>>) attributes {dimension_semantics = [#tpu.dimension_semantics<parallel>], iteration_bounds = array<i64: 1>, scalar_prefetch = 0 : i64, scratch_operands = 0 : i64, tpu.core_type = #tpu.core_type<tc>, window_params = [{transform_indices = @transform_0, window_bounds = array<i64: 1008, 41>}, {pipeline_mode = #tpu.pipeline_mode<synchronous>, transform_indices = @transform_1, window_bounds = array<i64: 41, 128>}, {pipeline_mode = #tpu.pipeline_mode<synchronous>, transform_indices = @transform_2, window_bounds = array<i64: 1, 128>}, {pipeline_mode = #tpu.pipeline_mode<synchronous>, transform_indices = @transform_3, window_bounds = array<i64: 128, 128>}, {pipeline_mode = #tpu.pipeline_mode<synchronous>, transform_indices = @transform_4, window_bounds = array<i64: 1, 128>}, {pipeline_mode = #tpu.pipeline_mode<synchronous>, transform_indices = @transform_5, window_bounds = array<i64: 128, 128>}, {pipeline_mode = #tpu.pipeline_mode<synchronous>, transform_indices = @transform_6, window_bounds = array<i64: 1, 128>}, {pipeline_mode = #tpu.pipeline_mode<synchronous>, transform_indices = @transform_7, window_bounds = array<i64: 128, 1>}, {pipeline_mode = #tpu.pipeline_mode<synchronous>, transform_indices = @transform_8, window_bounds = array<i64: 1, 1>}, {transform_indices = @transform_9, window_bounds = array<i64: 1008, 1>}]} {
    %c0 = arith.constant 0 : index
    %c0_0 = arith.constant 0 : index
    %0 = vector.load %arg1[%c0, %c0_0] : memref<1008x41xf32, #tpu.memory_space<vmem>>, vector<1008x41xf32>
    %c0_1 = arith.constant 0 : index
    %c0_2 = arith.constant 0 : index
    %1 = vector.load %arg2[%c0_1, %c0_2] : memref<41x128xf32, #tpu.memory_space<vmem>>, vector<41x128xf32>
    %cst = arith.constant dense<0.000000e+00> : vector<1008x128xf32>
    %2 = tpu.matmul %0, %1, %cst {dimension_numbers = #tpu.dot_dimension_numbers<[1], [0], [0], [1], [0, 0, 1, 1], [], []>} : vector<1008x41xf32>, vector<41x128xf32>, vector<1008x128xf32> -> vector<1008x128xf32>
    %c0_3 = arith.constant 0 : index
    %c0_4 = arith.constant 0 : index
    %3 = vector.load %arg3[%c0_3, %c0_4] : memref<1x128xf32, #tpu.memory_space<vmem>>, vector<1x128xf32>
    %4 = vector.broadcast %3 : vector<1x128xf32> to vector<1008x128xf32>
    %5 = arith.addf %2, %4 : vector<1008x128xf32>
    %cst_5 = arith.constant 0.000000e+00 : f32
    %6 = vector.broadcast %cst_5 : f32 to vector<1008x128xf32>
    %7 = arith.maximumf %5, %6 : vector<1008x128xf32>
    %c0_6 = arith.constant 0 : index
    %c0_7 = arith.constant 0 : index
    %8 = vector.load %arg4[%c0_6, %c0_7] : memref<128x128xf32, #tpu.memory_space<vmem>>, vector<128x128xf32>
    %cst_8 = arith.constant dense<0.000000e+00> : vector<1008x128xf32>
    %9 = tpu.matmul %7, %8, %cst_8 {dimension_numbers = #tpu.dot_dimension_numbers<[1], [0], [0], [1], [0, 0, 1, 1], [], []>} : vector<1008x128xf32>, vector<128x128xf32>, vector<1008x128xf32> -> vector<1008x128xf32>
    %c0_9 = arith.constant 0 : index
    %c0_10 = arith.constant 0 : index
    %10 = vector.load %arg5[%c0_9, %c0_10] : memref<1x128xf32, #tpu.memory_space<vmem>>, vector<1x128xf32>
    %11 = vector.broadcast %10 : vector<1x128xf32> to vector<1008x128xf32>
    %12 = arith.addf %9, %11 : vector<1008x128xf32>
    %cst_11 = arith.constant 0.000000e+00 : f32
    %13 = vector.broadcast %cst_11 : f32 to vector<1008x128xf32>
    %14 = arith.maximumf %12, %13 : vector<1008x128xf32>
    %c0_12 = arith.constant 0 : index
    %c0_13 = arith.constant 0 : index
    %15 = vector.load %arg6[%c0_12, %c0_13] : memref<128x128xf32, #tpu.memory_space<vmem>>, vector<128x128xf32>
    %cst_14 = arith.constant dense<0.000000e+00> : vector<1008x128xf32>
    %16 = tpu.matmul %14, %15, %cst_14 {dimension_numbers = #tpu.dot_dimension_numbers<[1], [0], [0], [1], [0, 0, 1, 1], [], []>} : vector<1008x128xf32>, vector<128x128xf32>, vector<1008x128xf32> -> vector<1008x128xf32>
    %c0_15 = arith.constant 0 : index
    %c0_16 = arith.constant 0 : index
    %17 = vector.load %arg7[%c0_15, %c0_16] : memref<1x128xf32, #tpu.memory_space<vmem>>, vector<1x128xf32>
    %18 = vector.broadcast %17 : vector<1x128xf32> to vector<1008x128xf32>
    %19 = arith.addf %16, %18 : vector<1008x128xf32>
    %cst_17 = arith.constant 0.000000e+00 : f32
    %20 = vector.broadcast %cst_17 : f32 to vector<1008x128xf32>
    %21 = arith.maximumf %19, %20 : vector<1008x128xf32>
    %c0_18 = arith.constant 0 : index
    %c0_19 = arith.constant 0 : index
    %22 = vector.load %arg8[%c0_18, %c0_19] : memref<128x1xf32, #tpu.memory_space<vmem>>, vector<128x1xf32>
    %cst_20 = arith.constant dense<0.000000e+00> : vector<1008x1xf32>
    %23 = tpu.matmul %21, %22, %cst_20 {dimension_numbers = #tpu.dot_dimension_numbers<[1], [0], [0], [1], [0, 0, 1, 1], [], []>} : vector<1008x128xf32>, vector<128x1xf32>, vector<1008x1xf32> -> vector<1008x1xf32>
    %c0_21 = arith.constant 0 : index
    %c0_22 = arith.constant 0 : index
    %24 = vector.load %arg9[%c0_21, %c0_22] : memref<1x1xf32, #tpu.memory_space<vmem>>, vector<1x1xf32>
    %25 = vector.broadcast %24 : vector<1x1xf32> to vector<1008x1xf32>
    %26 = arith.addf %23, %25 : vector<1008x1xf32>
    %27 = math.absf %26 : vector<1008x1xf32>
    %cst_23 = arith.constant 0.000000e+00 : f32
    %28 = vector.broadcast %cst_23 : f32 to vector<1008x1xf32>
    %29 = arith.subf %28, %27 : vector<1008x1xf32>
    %30 = math.exp %29 : vector<1008x1xf32>
    %cst_24 = arith.constant 0.000000e+00 : f32
    %31 = vector.broadcast %cst_24 : f32 to vector<1008x1xf32>
    %32 = arith.cmpf oge, %26, %31 : vector<1008x1xf32>
    %cst_25 = arith.constant 1.000000e+00 : f32
    %33 = vector.broadcast %cst_25 : f32 to vector<1008x1xf32>
    %34 = arith.select %32, %33, %30 : vector<1008x1xi1>, vector<1008x1xf32>
    %cst_26 = arith.constant 1.000000e+00 : f32
    %35 = vector.broadcast %cst_26 : f32 to vector<1008x1xf32>
    %36 = arith.addf %35, %30 : vector<1008x1xf32>
    %37 = arith.divf %34, %36 : vector<1008x1xf32>
    %c0_27 = arith.constant 0 : index
    %c0_28 = arith.constant 0 : index
    %38 = vector.load %arg10[%c0_27, %c0_28] : memref<1008x1xf32, #tpu.memory_space<vmem>>, vector<1008x1xf32>
    tpu.vector_store %arg10[%c0_27, %c0_28], %37 {strides = array<i32>} : memref<1008x1xf32, #tpu.memory_space<vmem>>, vector<1008x1xf32>,
    return
  }
  func.func @transform_0(%arg0: i32) -> (i32, i32) {
    %c0_i32 = arith.constant 0 : i32
    %c0_i32_0 = arith.constant 0 : i32
    return %arg0, %c0_i32 : i32, i32
  }
  func.func @transform_1(%arg0: i32) -> (i32, i32) {
    %c0_i32 = arith.constant 0 : i32
    %c0_i32_0 = arith.constant 0 : i32
    %c0_i32_1 = arith.constant 0 : i32
    return %c0_i32, %c0_i32_0 : i32, i32
  }
  func.func @transform_2(%arg0: i32) -> (i32, i32) {
    %c0_i32 = arith.constant 0 : i32
    %c0_i32_0 = arith.constant 0 : i32
    %c0_i32_1 = arith.constant 0 : i32
    return %c0_i32, %c0_i32_0 : i32, i32
  }
  func.func @transform_3(%arg0: i32) -> (i32, i32) {
    %c0_i32 = arith.constant 0 : i32
    %c0_i32_0 = arith.constant 0 : i32
    %c0_i32_1 = arith.constant 0 : i32
    return %c0_i32, %c0_i32_0 : i32, i32
  }
  func.func @transform_4(%arg0: i32) -> (i32, i32) {
    %c0_i32 = arith.constant 0 : i32
    %c0_i32_0 = arith.constant 0 : i32
    %c0_i32_1 = arith.constant 0 : i32
    return %c0_i32, %c0_i32_0 : i32, i32
  }
  func.func @transform_5(%arg0: i32) -> (i32, i32) {
    %c0_i32 = arith.constant 0 : i32
    %c0_i32_0 = arith.constant 0 : i32
    %c0_i32_1 = arith.constant 0 : i32
    return %c0_i32, %c0_i32_0 : i32, i32
  }
  func.func @transform_6(%arg0: i32) -> (i32, i32) {
    %c0_i32 = arith.constant 0 : i32
    %c0_i32_0 = arith.constant 0 : i32
    %c0_i32_1 = arith.constant 0 : i32
    return %c0_i32, %c0_i32_0 : i32, i32
  }
  func.func @transform_7(%arg0: i32) -> (i32, i32) {
    %c0_i32 = arith.constant 0 : i32
    %c0_i32_0 = arith.constant 0 : i32
    %c0_i32_1 = arith.constant 0 : i32
    return %c0_i32, %c0_i32_0 : i32, i32
  }
  func.func @transform_8(%arg0: i32) -> (i32, i32) {
    %c0_i32 = arith.constant 0 : i32
    %c0_i32_0 = arith.constant 0 : i32
    %c0_i32_1 = arith.constant 0 : i32
    return %c0_i32, %c0_i32_0 : i32, i32
  }
  func.func @transform_9(%arg0: i32) -> (i32, i32) {
    %c0_i32 = arith.constant 0 : i32
    %c0_i32_0 = arith.constant 0 : i32
    return %arg0, %c0_i32 : i32, i32
  }
}

</mosaic_0001>

<bundles_post_ra>
// kernel: mlp_dnn_forward.1
= control target key start
LH: loop header
LB: loop body
LE: loop exit
PB: predicated region body
PF: predicated region fallthrough
CT: control target
= control target key end

     0   :  { %vm552_vm0 = vcmask 1040384   ;;  %vm173_vm1 = vcmask 334848   ;;  %vm4917_vm2 = vcmask 7168   ;;  %s10446_s1 = inlined_call_operand.vmem [shape: f32[41,128], index: 1, kind: input, shape index: {}]   ;;  %s10447_s0 = inlined_call_operand.vmem [shape: f32[1008,41], index: 0, kind: input, shape index: {}]   ;;  %s10448_s5 = inlined_call_operand.vmem [shape: f32[128,128], index: 5, kind: input, shape index: {}]   ;;  %s10449_s3 = inlined_call_operand.vmem [shape: f32[128,128], index: 3, kind: input, shape index: {}]   ;;  %s10450_s2 = inlined_call_operand.vmem [shape: f32[1,128], index: 2, kind: input, shape index: {}]   ;;  %s10451_s7 = inlined_call_operand.vmem [shape: f32[128,1], index: 7, kind: input, shape index: {}]   ;;  %s10452_s4 = inlined_call_operand.vmem [shape: f32[1,128], index: 4, kind: input, shape index: {}]   ;;  %s10453_s6 = inlined_call_operand.vmem [shape: f32[1,128], index: 6, kind: input, shape index: {}]   ;;  %s10454_s8 = inlined_call_operand.<no memory space> [shape: f32[1,1], index: 8, kind: input, shape index: {}]   ;;  %s10455_s9 = inlined_call_operand.vmem [shape: f32[1008,1], index: 9, kind: output, shape index: {}]  }
   0x1   :  { %v165_v0 = vld [vmem:[%s10446_s1 + $0x28] sm:$0x1]  ;;  %v164_v1 = vld [vmem:[%s10446_s1 + $0x20] sm:$0xff]  ;;  %v163_v2 = vld [vmem:[%s10446_s1 + $0x18] sm:$0xff] }
   0x2   :  { %5737 = vmatprep.subr.msk.mxu0 %vm552_vm0, %v165_v0  ;;  %v34_v3 = vld [vmem:[%s10447_s0] sm:$0xff]  ;;  %v162_v4 = vld [vmem:[%s10446_s1 + $0x10] sm:$0xff]  ;;  %v161_v5 = vld [vmem:[%s10446_s1 + $0x8] sm:$0xff] }
   0x3   :  { %5738 = vmatpush3.msk.msra.mxu0 %vm552_vm0, %v165_v0  ;;  %5749 = vmatprep.mubr.msk.f32.mxu0 %vm173_vm1, %v34_v3  ;;  %v160_v6 = vld [vmem:[%s10446_s1] sm:$0xff]  ;;  %v35_v7 = vld [vmem:[%s10447_s0 + $0x8] sm:$0xff]  ;;  %v36_v8 = vld [vmem:[%s10447_s0 + $0x10] sm:$0xff] }
   0x4   :  { %5739 = vmatprep.subr.mxu0 %v164_v1  ;;  %v37_v9 = vld [vmem:[%s10447_s0 + $0x18] sm:$0xff]  ;;  %v38_v10 = vld [vmem:[%s10447_s0 + $0x20] sm:$0xff]  ;;  %v39_v11 = vld [vmem:[%s10447_s0 + $0x28] sm:$0xff] }
   0x5   :  { %5740 = vmatpush3.msra.mxu0 %v164_v1  ;;  %v40_v12 = vld [vmem:[%s10447_s0 + $0x30] sm:$0xff]  ;;  %v41_v13 = vld [vmem:[%s10447_s0 + $0x38] sm:$0xff]  ;;  %v42_v14 = vld [vmem:[%s10447_s0 + $0x40] sm:$0xff] }
   0x6   :  { %5741 = vmatprep.subr.mxu0 %v163_v2  ;;  %v43_v15 = vld [vmem:[%s10447_s0 + $0x48] sm:$0xff]  ;;  %v44_v16 = vld [vmem:[%s10447_s0 + $0x50] sm:$0xff]  ;;  %v45_v17 = vld [vmem:[%s10447_s0 + $0x58] sm:$0xff] }
   0x7   :  { %5742 = vmatpush3.msra.mxu0 %v163_v2  ;;  %v46_v18 = vld [vmem:[%s10447_s0 + $0x60] sm:$0xff]  ;;  %v2236_v19 = vld [vmem:[%s10448_s5 + $0x78] sm:$0xff]  ;;  %v47_v20 = vld [vmem:[%s10447_s0 + $0x68] sm:$0xff] }
   0x8   :  { %5743 = vmatprep.subr.mxu0 %v162_v4  ;;  %v48_v21 = vld [vmem:[%s10447_s0 + $0x70] sm:$0xff]  ;;  %v49_v22 = vld [vmem:[%s10447_s0 + $0x78] sm:$0xff]  ;;  %v50_v23 = vld [vmem:[%s10447_s0 + $0x80] sm:$0xff] }
   0x9   :  { %5744 = vmatpush3.msra.mxu0 %v162_v4  ;;  %v51_v24 = vld [vmem:[%s10447_s0 + $0x88] sm:$0xff]  ;;  %v52_v25 = vld [vmem:[%s10447_s0 + $0x90] sm:$0xff]  ;;  %v53_v26 = vld [vmem:[%s10447_s0 + $0x98] sm:$0xff] }
   0xa   :  { %5745 = vmatprep.subr.mxu0 %v161_v5  ;;  %v2235_v27 = vld [vmem:[%s10448_s5 + $0x70] sm:$0xff]  ;;  %v54_v28 = vld [vmem:[%s10447_s0 + $0xa0] sm:$0xff]  ;;  %v55_v29 = vld [vmem:[%s10447_s0 + $0xa8] sm:$0xff] }
   0xb   :  { %5746 = vmatpush3.msra.mxu0 %v161_v5  ;;  %v56_v30 = vld [vmem:[%s10447_s0 + $0xb0] sm:$0xff]  ;;  %v1392_v31 = vld [vmem:[%s10449_s3 + $0x78] sm:$0xff]  ;;  %v58_v34 = vld [vmem:[%s10447_s0 + $0xc0] sm:$0xff] }
   0xc   :  { %5747 = vmatprep.subr.mxu0 %v160_v6  ;;  %5938 = vmatprep.subr.mxu1 %v1392_v31  ;;  %v1391_v32 = vld [vmem:[%s10449_s3 + $0x70] sm:$0xff]  ;;  %v57_v33 = vld [vmem:[%s10447_s0 + $0xb8] sm:$0xff]  ;;  %v1390_v35 = vld [vmem:[%s10449_s3 + $0x68] sm:$0xff] }
   0xd   :  { %5748 = vmatpush3.msra.mxu0 %v160_v6  ;;  %5939 = vmatpush3.msra.mxu1 %v1392_v31  ;;  %v1389_v36 = vld [vmem:[%s10449_s3 + $0x60] sm:$0xff]  ;;  %v59_v37 = vld [vmem:[%s10447_s0 + $0xc8] sm:$0xff]  ;;  %v60_v38 = vld [vmem:[%s10447_s0 + $0xd0] sm:$0xff] }
   0xe   :  { %5750 = vmatmul.mubr.msk.f32.vlgmr.msra.gmra.mxu0 %vm173_vm1, %v35_v7  ;;  %6159 = vmatprep.subr.mxu0 %v2236_v19  ;;  %v1388_v39 = vld [vmem:[%s10449_s3 + $0x58] sm:$0xff]  ;;  %v1387_v40 = vld [vmem:[%s10449_s3 + $0x50] sm:$0xff]  ;;  %v2234_v42 = vld [vmem:[%s10448_s5 + $0x68] sm:$0xff] }
   0xf   :  { %5752 = vmatprep.mubr.msk.f32.mxu0 %vm173_vm1, %v36_v8  ;;  %6160 = vmatpush3.msra.mxu0 %v2236_v19  ;;  %v61_v41 = vld [vmem:[%s10447_s0 + $0xd8] sm:$0xff]  ;;  %v62_v43 = vld [vmem:[%s10447_s0 + $0xe0] sm:$0xff]  ;;  %v1386_v44 = vld [vmem:[%s10449_s3 + $0x48] sm:$0xff] }
  0x10   :  { %6161 = vmatprep.subr.mxu0 %v2235_v27  ;;  %5940 = vmatprep.subr.mxu1 %v1391_v32  ;;  %v1385_v45 = vld [vmem:[%s10449_s3 + $0x40] sm:$0xff]  ;;  %v63_v46 = vld [vmem:[%s10447_s0 + $0xe8] sm:$0xff]  ;;  %v64_v47 = vld [vmem:[%s10447_s0 + $0xf0] sm:$0xff] }
  0x11   :  { %6162 = vmatpush3.msra.mxu0 %v2235_v27  ;;  %5941 = vmatpush3.msra.mxu1 %v1391_v32  ;;  %v1384_v48 = vld [vmem:[%s10449_s3 + $0x38] sm:$0xff]  ;;  %v1383_v49 = vld [vmem:[%s10449_s3 + $0x30] sm:$0xff]  ;;  %v66_v51 = vld [vmem:[%s10447_s0 + $0x100] sm:$0xff] }
  0x12   :  { %5753 = vmatmul.mubr.msk.f32.gmra.mxu0 %vm173_vm1, %v37_v9  ;;  %5942 = vmatprep.subr.mxu1 %v1390_v35  ;;  %v65_v50 = vld [vmem:[%s10447_s0 + $0xf8] sm:$0xff]  ;;  %v1382_v52 = vld [vmem:[%s10449_s3 + $0x28] sm:$0xff]  ;;  %v1381_v53 = vld [vmem:[%s10449_s3 + $0x20] sm:$0xff] }
  0x13   :  { %5755 = vmatprep.mubr.msk.f32.mxu0 %vm173_vm1, %v38_v10  ;;  %5943 = vmatpush3.msra.mxu1 %v1390_v35  ;;  %v67_v54 = vld [vmem:[%s10447_s0 + $0x108] sm:$0xff]  ;;  %v68_v55 = vld [vmem:[%s10447_s0 + $0x110] sm:$0xff]  ;;  %v1380_v56 = vld [vmem:[%s10449_s3 + $0x18] sm:$0xff] }
  0x14   :  { %5944 = vmatprep.subr.mxu1 %v1389_v36  ;;  %6163 = vmatprep.subr.mxu0 %v2234_v42  ;;  %v69_v57 = vld [vmem:[%s10447_s0 + $0x118] sm:$0xff]  ;;  %v1379_v58 = vld [vmem:[%s10449_s3 + $0x10] sm:$0xff]  ;;  %v70_v59 = vld [vmem:[%s10447_s0 + $0x120] sm:$0xff] }
  0x15   :  { %5945 = vmatpush3.msra.mxu1 %v1389_v36  ;;  %6164 = vmatpush3.msra.mxu0 %v2234_v42  ;;  %v2233_v60 = vld [vmem:[%s10448_s5 + $0x60] sm:$0xff]  ;;  %v1378_v61 = vld [vmem:[%s10449_s3 + $0x8] sm:$0xff]  ;;  %v72_v0 = vld [vmem:[%s10447_s0 + $0x130] sm:$0xff] }
  0x16   :  { %5756 = vmatmul.mubr.msk.f32.gmra.mxu0 %vm173_vm1, %v39_v11  ;;  %5946 = vmatprep.subr.mxu1 %v1388_v39  ;;  %v71_v62 = vld [vmem:[%s10447_s0 + $0x128] sm:$0xff]  ;;  %v1377_v63 = vld [vmem:[%s10449_s3] sm:$0xff]  ;;  %v73_v1 = vld [vmem:[%s10447_s0 + $0x138] sm:$0xff] }
  0x17   :  { %5758 = vmatprep.mubr.msk.f32.mxu0 %vm173_vm1, %v40_v12  ;;  %5947 = vmatpush3.msra.mxu1 %v1388_v39  ;;  %v74_v2 = vld [vmem:[%s10447_s0 + $0x140] sm:$0xff]  ;;  %v75_v3 = vld [vmem:[%s10447_s0 + $0x148] sm:$0xff]  ;;  %v76_v4 = vld [vmem:[%s10447_s0 + $0x150] sm:$0xff] }
  0x18   :  { %5948 = vmatprep.subr.mxu1 %v1387_v40  ;;  %6165 = vmatprep.subr.mxu0 %v2233_v60  ;;  %v77_v5 = vld [vmem:[%s10447_s0 + $0x158] sm:$0xff]  ;;  %v78_v6 = vld [vmem:[%s10447_s0 + $0x160] sm:$0xff]  ;;  %v79_v7 = vld [vmem:[%s10447_s0 + $0x168] sm:$0xff] }
  0x19   :  { %5949 = vmatpush3.msra.mxu1 %v1387_v40  ;;  %6166 = vmatpush3.msra.mxu0 %v2233_v60  ;;  %v2232_v8 = vld [vmem:[%s10448_s5 + $0x58] sm:$0xff]  ;;  %v80_v9 = vld [vmem:[%s10447_s0 + $0x170] sm:$0xff]  ;;  %v82_v11 = vld [vmem:[%s10447_s0 + $0x180] sm:$0xff] }
  0x1a   :  { %5759 = vmatmul.mubr.msk.f32.gmra.mxu0 %vm173_vm1, %v41_v13  ;;  %5950 = vmatprep.subr.mxu1 %v1386_v44  ;;  %v81_v10 = vld [vmem:[%s10447_s0 + $0x178] sm:$0xff]  ;;  %v83_v12 = vld [vmem:[%s10447_s0 + $0x188] sm:$0xff]  ;;  %v84_v13 = vld [vmem:[%s10447_s0 + $0x190] sm:$0xff] }
  0x1b   :  { %5761 = vmatprep.mubr.msk.f32.mxu0 %vm173_vm1, %v42_v14  ;;  %5951 = vmatpush3.msra.mxu1 %v1386_v44  ;;  %v85_v14 = vld [vmem:[%s10447_s0 + $0x198] sm:$0xff]  ;;  %v96_v27 = vld [vmem:[%s10447_s0 + $0x1f0] sm:$0xff]  ;;  %v2229_v35 = vld [vmem:[%s10448_s5 + $0x40] sm:$0xff] }
  0x1c   :  { %5952 = vmatprep.subr.mxu1 %v1385_v45  ;;  %6167 = vmatprep.subr.mxu0 %v2232_v8  ;;  %v89_v19 = vld [vmem:[%s10447_s0 + $0x1b8] sm:$0xff]  ;;  %v100_v31 = vld [vmem:[%s10447_s0 + $0x210] sm:$0xff]  ;;  %v107_v39 = vld [vmem:[%s10447_s0 + $0x248] sm:$0xff] }
  0x1d   :  { %5953 = vmatpush3.msra.mxu1 %v1385_v45  ;;  %6168 = vmatpush3.msra.mxu0 %v2232_v8  ;;  %v101_v32 = vld [vmem:[%s10447_s0 + $0x218] sm:$0xff]  ;;  %v104_v36 = vld [vmem:[%s10447_s0 + $0x230] sm:$0xff]  ;;  %v110_v42 = vld [vmem:[%s10447_s0 + $0x260] sm:$0xff] }
  0x1e   :  { %5762 = vmatmul.mubr.msk.f32.gmra.mxu0 %vm173_vm1, %v43_v15  ;;  %5954 = vmatprep.subr.mxu1 %v1384_v48  ;;  %v86_v15 = vld [vmem:[%s10447_s0 + $0x1a0] sm:$0xff]  ;;  %v108_v40 = vld [vmem:[%s10447_s0 + $0x250] sm:$0xff]  ;;  %v111_v44 = vld [vmem:[%s10447_s0 + $0x268] sm:$0xff] }
  0x1f   :  { %5764 = vmatprep.mubr.msk.f32.mxu0 %vm173_vm1, %v44_v16  ;;  %5955 = vmatpush3.msra.mxu1 %v1384_v48  ;;  %v87_v16 = vld [vmem:[%s10447_s0 + $0x1a8] sm:$0xff]  ;;  %v112_v45 = vld [vmem:[%s10447_s0 + $0x270] sm:$0xff]  ;;  %v126_v60 = vld [vmem:[%s10447_s0 + $0x2e0] sm:$0xff] }
  0x20   :  { %5956 = vmatprep.subr.mxu1 %v1383_v49  ;;  %v115_v48 = vld [vmem:[%s10447_s0 + $0x288] sm:$0xff] }
  0x21   :  { %5957 = vmatpush3.msra.mxu1 %v1383_v49  ;;  %v116_v49 = vld [vmem:[%s10447_s0 + $0x290] sm:$0xff] }
  0x22   :  { %5765 = vmatmul.mubr.msk.f32.gmra.mxu0 %vm173_vm1, %v45_v17  ;;  %5958 = vmatprep.subr.mxu1 %v1382_v52  ;;  %v2231_v17 = vld [vmem:[%s10448_s5 + $0x50] sm:$0xff] }
  0x23   :  { %5767 = vmatprep.mubr.msk.f32.mxu0 %vm173_vm1, %v46_v18  ;;  %5959 = vmatpush3.msra.mxu1 %v1382_v52  ;;  %v88_v18 = vld [vmem:[%s10447_s0 + $0x1b0] sm:$0xff] }
  0x24   :  { %5960 = vmatprep.subr.mxu1 %v1381_v53  ;;  %6169 = vmatprep.subr.mxu0 %v2231_v17  ;;  %v2227_v52 = vld [vmem:[%s10448_s5 + $0x30] sm:$0xff] }
  0x25   :  { %5961 = vmatpush3.msra.mxu1 %v1381_v53  ;;  %6170 = vmatpush3.msra.mxu0 %v2231_v17  ;;  %v119_v53 = vld [vmem:[%s10447_s0 + $0x2a8] sm:$0xff] }
  0x26   :  { %5768 = vmatmul.mubr.msk.f32.gmra.mxu0 %vm173_vm1, %v47_v20  ;;  %5962 = vmatprep.subr.mxu1 %v1380_v56  ;;  %v90_v20 = vld [vmem:[%s10447_s0 + $0x1c0] sm:$0xff] }
  0x27   :  { %5770 = vmatprep.mubr.msk.f32.mxu0 %vm173_vm1, %v48_v21  ;;  %5963 = vmatpush3.msra.mxu1 %v1380_v56  ;;  %v91_v21 = vld [vmem:[%s10447_s0 + $0x1c8] sm:$0xff]  ;;  %v122_v56 = vld [vmem:[%s10447_s0 + $0x2c0] sm:$0xff] }
  0x28   :  { %5964 = vmatprep.subr.mxu1 %v1379_v58 }
  0x29   :  { %5965 = vmatpush3.msra.mxu1 %v1379_v58  ;;  %v124_v58 = vld [vmem:[%s10447_s0 + $0x2d0] sm:$0xff] }
  0x2a   :  { %5771 = vmatmul.mubr.msk.f32.gmra.mxu0 %vm173_vm1, %v49_v22  ;;  %5966 = vmatprep.subr.mxu1 %v1378_v61  ;;  %v92_v22 = vld [vmem:[%s10447_s0 + $0x1d0] sm:$0xff] }
  0x2b   :  { %5773 = vmatprep.mubr.msk.f32.mxu0 %vm173_vm1, %v50_v23  ;;  %5967 = vmatpush3.msra.mxu1 %v1378_v61  ;;  %v93_v23 = vld [vmem:[%s10447_s0 + $0x1d8] sm:$0xff]  ;;  %v2226_v61 = vld [vmem:[%s10448_s5 + $0x28] sm:$0xff] }
  0x2c   :  { %5968 = vmatprep.subr.mxu1 %v1377_v63 }
  0x2d   :  { %5969 = vmatpush3.msra.mxu1 %v1377_v63  ;;  %v128_v63 = vld [vmem:[%s10447_s0 + $0x2f0] sm:$0xff] }
  0x2e   :  { %5774 = vmatmul.mubr.msk.f32.gmra.mxu0 %vm173_vm1, %v51_v24  ;;  %v94_v24 = vld [vmem:[%s10447_s0 + $0x1e0] sm:$0xff] }
  0x2f   :  { %5776 = vmatprep.mubr.msk.f32.mxu0 %vm173_vm1, %v52_v25  ;;  %v95_v25 = vld [vmem:[%s10447_s0 + $0x1e8] sm:$0xff] }
  0x32   :  { %5777 = vmatmul.mubr.msk.f32.gmra.mxu0 %vm173_vm1, %v53_v26  ;;  %v2230_v26 = vld [vmem:[%s10448_s5 + $0x48] sm:$0xff] }
  0x33   :  { %5779 = vmatprep.mubr.msk.f32.mxu0 %vm173_vm1, %v54_v28  ;;  %6171 = vmatprep.subr.mxu0 %v2230_v26  ;;  %v97_v28 = vld [vmem:[%s10447_s0 + $0x1f8] sm:$0xff] }
  0x34   :  { %6172 = vmatpush3.msra.mxu0 %v2230_v26  ;;  %v138_v26 = vld [vmem:[%s10447_s0 + $0x340] sm:$0xff] }
  0x35   :  { %6173 = vmatprep.subr.mxu0 %v2229_v35 }
  0x36   :  { %5780 = vmatmul.mubr.msk.f32.gmra.mxu0 %vm173_vm1, %v55_v29  ;;  %v98_v29 = vld [vmem:[%s10447_s0 + $0x200] sm:$0xff] }
  0x37   :  { %5782 = vmatprep.mubr.msk.f32.mxu0 %vm173_vm1, %v56_v30  ;;  %v99_v30 = vld [vmem:[%s10447_s0 + $0x208] sm:$0xff]  ;;  %6174 = vmatpush3.msra.mxu0 %v2229_v35 }
  0x3a   :  { %5783 = vmatmul.mubr.msk.f32.gmra.mxu0 %vm173_vm1, %v57_v33  ;;  %v102_v33 = vld [vmem:[%s10447_s0 + $0x220] sm:$0xff] }
  0x3b   :  { %5785 = vmatprep.mubr.msk.f32.mxu0 %vm173_vm1, %v58_v34  ;;  %v103_v34 = vld [vmem:[%s10447_s0 + $0x228] sm:$0xff] }
  0x3e   :  { %5786 = vmatmul.mubr.msk.f32.gmra.mxu0 %vm173_vm1, %v59_v37  ;;  %v105_v37 = vld [vmem:[%s10447_s0 + $0x238] sm:$0xff] }
  0x3f   :  { %5788 = vmatprep.mubr.msk.f32.mxu0 %vm173_vm1, %v60_v38  ;;  %v106_v38 = vld [vmem:[%s10447_s0 + $0x240] sm:$0xff] }
  0x42   :  { %5789 = vmatmul.mubr.msk.f32.gmra.mxu0 %vm173_vm1, %v61_v41  ;;  %v109_v41 = vld [vmem:[%s10447_s0 + $0x258] sm:$0xff] }
  0x43   :  { %5791 = vmatprep.mubr.msk.f32.mxu0 %vm173_vm1, %v62_v43  ;;  %v2228_v43 = vld [vmem:[%s10448_s5 + $0x38] sm:$0xff] }
  0x44   :  { %6175 = vmatprep.subr.mxu0 %v2228_v43 }
  0x45   :  { %6176 = vmatpush3.msra.mxu0 %v2228_v43 }
  0x46   :  { %5792 = vmatmul.mubr.msk.f32.gmra.mxu0 %vm173_vm1, %v63_v46  ;;  %v113_v46 = vld [vmem:[%s10447_s0 + $0x278] sm:$0xff]  ;;  %6177 = vmatprep.subr.mxu0 %v2227_v52 }
  0x47   :  { %5794 = vmatprep.mubr.msk.f32.mxu0 %vm173_vm1, %v64_v47  ;;  %v114_v47 = vld [vmem:[%s10447_s0 + $0x280] sm:$0xff]  ;;  %6178 = vmatpush3.msra.mxu0 %v2227_v52 }
  0x48   :  { %6179 = vmatprep.subr.mxu0 %v2226_v61 }
  0x49   :  { %6180 = vmatpush3.msra.mxu0 %v2226_v61 }
  0x4a   :  { %5795 = vmatmul.mubr.msk.f32.gmra.mxu0 %vm173_vm1, %v65_v50  ;;  %v117_v50 = vld [vmem:[%s10447_s0 + $0x298] sm:$0xff] }
  0x4b   :  { %5797 = vmatprep.mubr.msk.f32.mxu0 %vm173_vm1, %v66_v51  ;;  %v118_v51 = vld [vmem:[%s10447_s0 + $0x2a0] sm:$0xff] }
  0x4e   :  { %5798 = vmatmul.mubr.msk.f32.gmra.mxu0 %vm173_vm1, %v67_v54  ;;  %v120_v54 = vld [vmem:[%s10447_s0 + $0x2b0] sm:$0xff] }
  0x4f   :  { %5800 = vmatprep.mubr.msk.f32.mxu0 %vm173_vm1, %v68_v55  ;;  %v121_v55 = vld [vmem:[%s10447_s0 + $0x2b8] sm:$0xff] }
  0x52   :  { %5801 = vmatmul.mubr.msk.f32.gmra.mxu0 %vm173_vm1, %v69_v57  ;;  %v123_v57 = vld [vmem:[%s10447_s0 + $0x2c8] sm:$0xff] }
  0x53   :  { %5803 = vmatprep.mubr.msk.f32.mxu0 %vm173_vm1, %v70_v59  ;;  %v125_v59 = vld [vmem:[%s10447_s0 + $0x2d8] sm:$0xff] }
  0x56   :  { %5804 = vmatmul.mubr.msk.f32.gmra.mxu0 %vm173_vm1, %v71_v62  ;;  %v127_v62 = vld [vmem:[%s10447_s0 + $0x2e8] sm:$0xff] }
  0x57   :  { %5806 = vmatprep.mubr.msk.f32.mxu0 %vm173_vm1, %v72_v0  ;;  %v129_v0 = vld [vmem:[%s10447_s0 + $0x2f8] sm:$0xff] }
  0x5a   :  { %5807 = vmatmul.mubr.msk.f32.gmra.mxu0 %vm173_vm1, %v73_v1  ;;  %v130_v1 = vld [vmem:[%s10447_s0 + $0x300] sm:$0xff] }
  0x5b   :  { %5809 = vmatprep.mubr.msk.f32.mxu0 %vm173_vm1, %v74_v2  ;;  %v131_v2 = vld [vmem:[%s10447_s0 + $0x308] sm:$0xff] }
  0x5e   :  { %5810 = vmatmul.mubr.msk.f32.gmra.mxu0 %vm173_vm1, %v75_v3  ;;  %v132_v3 = vld [vmem:[%s10447_s0 + $0x310] sm:$0xff] }
  0x5f   :  { %5812 = vmatprep.mubr.msk.f32.mxu0 %vm173_vm1, %v76_v4  ;;  %v7689_v4 = vld [vmem:[%s10450_s2] ss:$0 sm:$0xff] }
  0x62   :  { %5813 = vmatmul.mubr.msk.f32.gmra.mxu0 %vm173_vm1, %v77_v5 }
  0x63   :  { %5815 = vmatprep.mubr.msk.f32.mxu0 %vm173_vm1, %v78_v6  ;;  %v133_v6 = vld [vmem:[%s10447_s0 + $0x318] sm:$0xff] }
  0x66   :  { %5816 = vmatmul.mubr.msk.f32.gmra.mxu0 %vm173_vm1, %v79_v7 }
  0x67   :  { %5818 = vmatprep.mubr.msk.f32.mxu0 %vm173_vm1, %v80_v9  ;;  %v134_v9 = vld [vmem:[%s10447_s0 + $0x320] sm:$0xff] }
  0x6a   :  { %5819 = vmatmul.mubr.msk.f32.gmra.mxu0 %vm173_vm1, %v81_v10 }
  0x6b   :  { %5821 = vmatprep.mubr.msk.f32.mxu0 %vm173_vm1, %v82_v11  ;;  %v2225_v11 = vld [vmem:[%s10448_s5 + $0x20] sm:$0xff] }
  0x6c   :  { %6181 = vmatprep.subr.mxu0 %v2225_v11 }
  0x6d   :  { %6182 = vmatpush3.msra.mxu0 %v2225_v11 }
  0x6e   :  { %5822 = vmatmul.mubr.msk.f32.gmra.mxu0 %vm173_vm1, %v83_v12 }
  0x6f   :  { %5824 = vmatprep.mubr.msk.f32.mxu0 %vm173_vm1, %v84_v13 }
  0x72   :  { %5825 = vmatmul.mubr.msk.f32.gmra.mxu0 %vm173_vm1, %v85_v14  ;;  %v135_v14 = vld [vmem:[%s10447_s0 + $0x328] sm:$0xff] }
  0x73   :  { %5827 = vmatprep.mubr.msk.f32.mxu0 %vm173_vm1, %v86_v15 }
  0x76   :  { %5828 = vmatmul.mubr.msk.f32.gmra.mxu0 %vm173_vm1, %v87_v16 }
  0x77   :  { %5830 = vmatprep.mubr.msk.f32.mxu0 %vm173_vm1, %v88_v18  ;;  %v136_v18 = vld [vmem:[%s10447_s0 + $0x330] sm:$0xff] }
  0x7a   :  { %5831 = vmatmul.mubr.msk.f32.gmra.mxu0 %vm173_vm1, %v89_v19 }
  0x7b   :  { %5833 = vmatprep.mubr.msk.f32.mxu0 %vm173_vm1, %v90_v20 }
  0x7e   :  { %5834 = vmatmul.mubr.msk.f32.gmra.mxu0 %vm173_vm1, %v91_v21 }
  0x7f   :  { %5836 = vmatprep.mubr.msk.f32.mxu0 %vm173_vm1, %v92_v22  ;;  %v137_v22 = vld [vmem:[%s10447_s0 + $0x338] sm:$0xff] }
  0x82   :  { %5837 = vmatmul.mubr.msk.f32.gmra.mxu0 %vm173_vm1, %v93_v23 }
  0x83   :  { %5839 = vmatprep.mubr.msk.f32.mxu0 %vm173_vm1, %v94_v24 }
  0x86   :  { %5840 = vmatmul.mubr.msk.f32.gmra.mxu0 %vm173_vm1, %v95_v25 }
  0x87   :  { %5842 = vmatprep.mubr.msk.f32.mxu0 %vm173_vm1, %v96_v27 }
  0x8a   :  { %5843 = vmatmul.mubr.msk.f32.gmra.mxu0 %vm173_vm1, %v97_v28 }
  0x8b   :  { %5845 = vmatprep.mubr.msk.f32.mxu0 %vm173_vm1, %v98_v29 }
  0x8e   :  { %5846 = vmatmul.mubr.msk.f32.gmra.mxu0 %vm173_vm1, %v99_v30  ;;  %v139_v30 = vld [vmem:[%s10447_s0 + $0x348] sm:$0xff] }
  0x8f   :  { %5848 = vmatprep.mubr.msk.f32.mxu0 %vm173_vm1, %v100_v31 }
  0x92   :  { %5849 = vmatmul.mubr.msk.f32.gmra.mxu0 %vm173_vm1, %v101_v32 }
  0x93   :  { %5851 = vmatprep.mubr.msk.f32.mxu0 %vm173_vm1, %v102_v33 }
  0x96   :  { %5852 = vmatmul.mubr.msk.f32.gmra.mxu0 %vm173_vm1, %v103_v34  ;;  %v140_v34 = vld [vmem:[%s10447_s0 + $0x350] sm:$0xff] }
  0x97   :  { %5854 = vmatprep.mubr.msk.f32.mxu0 %vm173_vm1, %v104_v36 }
  0x9a   :  { %5855 = vmatmul.mubr.msk.f32.gmra.mxu0 %vm173_vm1, %v105_v37 }
  0x9b   :  { %5857 = vmatprep.mubr.msk.f32.mxu0 %vm173_vm1, %v106_v38  ;;  %v141_v38 = vld [vmem:[%s10447_s0 + $0x358] sm:$0xff] }
  0x9e   :  { %5858 = vmatmul.mubr.msk.f32.gmra.mxu0 %vm173_vm1, %v107_v39 }
  0x9f   :  { %5860 = vmatprep.mubr.msk.f32.mxu0 %vm173_vm1, %v108_v40 }
  0xa2   :  { %5861 = vmatmul.mubr.msk.f32.gmra.mxu0 %vm173_vm1, %v109_v41 }
  0xa3   :  { %5863 = vmatprep.mubr.msk.f32.mxu0 %vm173_vm1, %v110_v42  ;;  %v142_v42 = vld [vmem:[%s10447_s0 + $0x360] sm:$0xff] }
  0xa6   :  { %5864 = vmatmul.mubr.msk.f32.gmra.mxu0 %vm173_vm1, %v111_v44  ;;  %v2224_v44 = vld [vmem:[%s10448_s5 + $0x18] sm:$0xff] }
  0xa7   :  { %5866 = vmatprep.mubr.msk.f32.mxu0 %vm173_vm1, %v112_v45  ;;  %6183 = vmatprep.subr.mxu0 %v2224_v44 }
  0xa8   :  { %6184 = vmatpush3.msra.mxu0 %v2224_v44 }
  0xaa   :  { %5867 = vmatmul.mubr.msk.f32.gmra.mxu0 %vm173_vm1, %v113_v46 }
  0xab   :  { %5869 = vmatprep.mubr.msk.f32.mxu0 %vm173_vm1, %v114_v47  ;;  %v143_v47 = vld [vmem:[%s10447_s0 + $0x368] sm:$0xff] }
  0xae   :  { %5870 = vmatmul.mubr.msk.f32.gmra.mxu0 %vm173_vm1, %v115_v48 }
  0xaf   :  { %5872 = vmatprep.mubr.msk.f32.mxu0 %vm173_vm1, %v116_v49 }
  0xb2   :  { %5873 = vmatmul.mubr.msk.f32.gmra.mxu0 %vm173_vm1, %v117_v50 }
  0xb3   :  { %5875 = vmatprep.mubr.msk.f32.mxu0 %vm173_vm1, %v118_v51  ;;  %v144_v51 = vld [vmem:[%s10447_s0 + $0x370] sm:$0xff] }
  0xb6   :  { %5876 = vmatmul.mubr.msk.f32.gmra.mxu0 %vm173_vm1, %v119_v53 }
  0xb7   :  { %5878 = vmatprep.mubr.msk.f32.mxu0 %vm173_vm1, %v120_v54 }
  0xba   :  { %5879 = vmatmul.mubr.msk.f32.gmra.mxu0 %vm173_vm1, %v121_v55  ;;  %v145_v55 = vld [vmem:[%s10447_s0 + $0x378] sm:$0xff] }
  0xbb   :  { %5881 = vmatprep.mubr.msk.f32.mxu0 %vm173_vm1, %v122_v56 }
  0xbe   :  { %5882 = vmatmul.mubr.msk.f32.gmra.mxu0 %vm173_vm1, %v123_v57 }
  0xbf   :  { %5884 = vmatprep.mubr.msk.f32.mxu0 %vm173_vm1, %v124_v58 }
  0xc2   :  { %5885 = vmatmul.mubr.msk.f32.gmra.mxu0 %vm173_vm1, %v125_v59  ;;  %v146_v59 = vld [vmem:[%s10447_s0 + $0x380] sm:$0xff] }
  0xc3   :  { %5887 = vmatprep.mubr.msk.f32.mxu0 %vm173_vm1, %v126_v60 }
  0xc6   :  { %5888 = vmatmul.mubr.msk.f32.gmra.mxu0 %vm173_vm1, %v127_v62 }
  0xc7   :  { %5890 = vmatprep.mubr.msk.f32.mxu0 %vm173_vm1, %v128_v63  ;;  %v147_v63 = vld [vmem:[%s10447_s0 + $0x388] sm:$0xff] }
  0xca   :  { %5891 = vmatmul.mubr.msk.f32.gmra.mxu0 %vm173_vm1, %v129_v0 }
  0xcb   :  { %5893 = vmatprep.mubr.msk.f32.mxu0 %vm173_vm1, %v130_v1 }
  0xce   :  { %v5751_v5 = vpop.f32.mrf.mxu0  ;;  %5894 = vmatmul.mubr.msk.f32.gmra.mxu0 %vm173_vm1, %v131_v2 }
  0xcf   :  { %5896 = vmatprep.mubr.msk.f32.mxu0 %vm173_vm1, %v132_v3  ;;  %v628_v7 = vadd.f32 %v5751_v5, %v7689_v4  ;;  %v148_v3 = vld [vmem:[%s10447_s0 + $0x390] sm:$0xff] }
  0xd0   :  { %v622_v8 = vpop.f32.mrf.mxu0 }
  0xd1   :  { %v623_v10 = vadd.f32 %v7689_v4, %v622_v8  ;;  %v1252_v15 = vmax.f32 %v628_v7, 0.0  ;;  %v149_v8 = vld [vmem:[%s10447_s0 + $0x398] sm:$0xff] }
  0xd2   :  { %v5754_v12 = vpop.f32.mrf.mxu0  ;;  %5897 = vmatmul.mubr.msk.f32.gmra.mxu0 %vm173_vm1, %v133_v6 }
  0xd3   :  { %5899 = vmatprep.mubr.msk.f32.mxu0 %vm173_vm1, %v134_v9  ;;  %v1251_v13 = vmax.f32 %v623_v10, 0.0  ;;  %v638_v16 = vadd.f32 %v5754_v12, %v7689_v4  ;;  %v150_v12 = vld [vmem:[%s10447_s0 + $0x3a0] sm:$0xff] }
  0xd4   :  { %v632_v17 = vpop.f32.mrf.mxu0 }
  0xd5   :  { %v633_v19 = vadd.f32 %v7689_v4, %v632_v17  ;;  %5970 = vmatprep.mubr.f32.mxu1 %v1251_v13  ;;  %v1254_v23 = vmax.f32 %v638_v16, 0.0  ;;  %v151_v17 = vld [vmem:[%s10447_s0 + $0x3a8] sm:$0xff] }
  0xd6   :  { %v5757_v20 = vpop.f32.mrf.mxu0  ;;  %5900 = vmatmul.mubr.msk.f32.gmra.mxu0 %vm173_vm1, %v135_v14  ;;  %5971 = vmatmul.mubr.f32.vlgmr.msra.gmra.mxu1 %v1252_v15  ;;  %v2223_v14 = vld [vmem:[%s10448_s5 + $0x10] sm:$0xff] }
  0xd7   :  { %v1253_v21 = vmax.f32 %v633_v19, 0.0  ;;  %5902 = vmatprep.mubr.msk.f32.mxu0 %vm173_vm1, %v136_v18  ;;  %v648_v24 = vadd.f32 %v5757_v20, %v7689_v4  ;;  %6185 = vmatprep.subr.mxu0 %v2223_v14 }
  0xd8   :  { %v642_v25 = vpop.f32.mrf.mxu0  ;;  %6186 = vmatpush3.msra.mxu0 %v2223_v14 }
  0xd9   :  { %v643_v27 = vadd.f32 %v7689_v4, %v642_v25  ;;  %5973 = vmatprep.mubr.f32.mxu1 %v1253_v21  ;;  %v1256_v31 = vmax.f32 %v648_v24, 0.0  ;;  %v152_v21 = vld [vmem:[%s10447_s0 + $0x3b0] sm:$0xff] }
  0xda   :  { %v5760_v28 = vpop.f32.mrf.mxu0  ;;  %5903 = vmatmul.mubr.msk.f32.gmra.mxu0 %vm173_vm1, %v137_v22  ;;  %5974 = vmatmul.mubr.f32.gmra.mxu1 %v1254_v23  ;;  %v7802_v22 = vld [vmem:[%s10451_s7 + $0x78] sm:$0xff] }
  0xdb   :  { %v1255_v29 = vmax.f32 %v643_v27, 0.0  ;;  %5905 = vmatprep.mubr.msk.f32.mxu0 %vm173_vm1, %v138_v26  ;;  %v658_v32 = vadd.f32 %v5760_v28, %v7689_v4  ;;  %6601 = vmatprep.subr.mxu1 %v7802_v22  ;;  %v153_v26 = vld [vmem:[%s10447_s0 + $0x3b8] sm:$0xff] }
  0xdc   :  { %v652_v33 = vpop.f32.mrf.mxu0  ;;  %6617 = vmatpush3.msra.mxu1 %v7802_v22 }
  0xdd   :  { %v653_v35 = vadd.f32 %v7689_v4, %v652_v33  ;;  %5976 = vmatprep.mubr.f32.mxu1 %v1255_v29  ;;  %v1258_v39 = vmax.f32 %v658_v32, 0.0 }
  0xde   :  { %v5763_v36 = vpop.f32.mrf.mxu0  ;;  %5906 = vmatmul.mubr.msk.f32.gmra.mxu0 %vm173_vm1, %v139_v30  ;;  %5977 = vmatmul.mubr.f32.gmra.mxu1 %v1256_v31  ;;  %v154_v30 = vld [vmem:[%s10447_s0 + $0x3c0] sm:$0xff] }
  0xdf   :  { %v1257_v37 = vmax.f32 %v653_v35, 0.0  ;;  %5908 = vmatprep.mubr.msk.f32.mxu0 %vm173_vm1, %v140_v34  ;;  %v668_v40 = vadd.f32 %v5763_v36, %v7689_v4  ;;  %v155_v34 = vld [vmem:[%s10447_s0 + $0x3c8] sm:$0xff] }
  0xe0   :  { %v662_v41 = vpop.f32.mrf.mxu0 }
  0xe1   :  { %v663_v43 = vadd.f32 %v7689_v4, %v662_v41  ;;  %5979 = vmatprep.mubr.f32.mxu1 %v1257_v37  ;;  %v1260_v48 = vmax.f32 %v668_v40, 0.0 }
  0xe2   :  { %v5766_v45 = vpop.f32.mrf.mxu0  ;;  %5909 = vmatmul.mubr.msk.f32.gmra.mxu0 %vm173_vm1, %v141_v38  ;;  %5980 = vmatmul.mubr.f32.gmra.mxu1 %v1258_v39  ;;  %v156_v38 = vld [vmem:[%s10447_s0 + $0x3d0] sm:$0xff] }
  0xe3   :  { %v1259_v46 = vmax.f32 %v663_v43, 0.0  ;;  %5911 = vmatprep.mubr.msk.f32.mxu0 %vm173_vm1, %v142_v42  ;;  %v678_v49 = vadd.f32 %v5766_v45, %v7689_v4  ;;  %v157_v42 = vld [vmem:[%s10447_s0 + $0x3d8] sm:$0xff] }
  0xe4   :  { %v672_v50 = vpop.f32.mrf.mxu0 }
  0xe5   :  { %v673_v52 = vadd.f32 %v7689_v4, %v672_v50  ;;  %5982 = vmatprep.mubr.f32.mxu1 %v1259_v46  ;;  %v1262_v56 = vmax.f32 %v678_v49, 0.0  ;;  %v158_v46 = vld [vmem:[%s10447_s0 + $0x3e0] sm:$0xff] }
  0xe6   :  { %v5769_v53 = vpop.f32.mrf.mxu0  ;;  %5912 = vmatmul.mubr.msk.f32.gmra.mxu0 %vm173_vm1, %v143_v47  ;;  %5983 = vmatmul.mubr.f32.gmra.mxu1 %v1260_v48  ;;  %v2222_v48 = vld [vmem:[%s10448_s5 + $0x8] sm:$0xff] }
  0xe7   :  { %v1261_v54 = vmax.f32 %v673_v52, 0.0  ;;  %5914 = vmatprep.mubr.msk.f32.mxu0 %vm173_vm1, %v144_v51  ;;  %v688_v57 = vadd.f32 %v5769_v53, %v7689_v4  ;;  %v159_v51 = vld [vmem:[%s10447_s0 + $0x3e8] sm:$0xff]  ;;  %6187 = vmatprep.subr.mxu0 %v2222_v48  ;;  %v7848_v52 = vld [vmem:[%s10451_s7 + $0x70] sm:$0xff] }
  0xe8   :  { %v682_v58 = vpop.f32.mrf.mxu0  ;;  %6188 = vmatpush3.msra.mxu0 %v2222_v48  ;;  %6602 = vmatprep.subr.mxu1 %v7848_v52 }
  0xe9   :  { %v683_v60 = vadd.f32 %v7689_v4, %v682_v58  ;;  %5985 = vmatprep.mubr.f32.mxu1 %v1261_v54  ;;  %v1264_v0 = vmax.f32 %v688_v57, 0.0  ;;  %6618 = vmatpush3.msra.mxu1 %v7848_v52 }
  0xea   :  { %v5772_v61 = vpop.f32.mrf.mxu0  ;;  %5915 = vmatmul.mubr.msk.f32.gmra.mxu0 %vm173_vm1, %v145_v55  ;;  %5986 = vmatmul.mubr.f32.gmra.mxu1 %v1262_v56 }
  0xeb   :  { %v1263_v62 = vmax.f32 %v683_v60, 0.0  ;;  %5917 = vmatprep.mubr.msk.f32.mxu0 %vm173_vm1, %v146_v59  ;;  %v698_v1 = vadd.f32 %v5772_v61, %v7689_v4 }
  0xec   :  { %v692_v2 = vpop.f32.mrf.mxu0 }
  0xed   :  { %v693_v5 = vadd.f32 %v7689_v4, %v692_v2  ;;  %5988 = vmatprep.mubr.f32.mxu1 %v1263_v62  ;;  %v1266_v9 = vmax.f32 %v698_v1, 0.0 }
  0xee   :  { %v5775_v6 = vpop.f32.mrf.mxu0  ;;  %5918 = vmatmul.mubr.msk.f32.gmra.mxu0 %vm173_vm1, %v147_v63  ;;  %5989 = vmatmul.mubr.f32.gmra.mxu1 %v1264_v0 }
  0xef   :  { %v1265_v7 = vmax.f32 %v693_v5, 0.0  ;;  %5920 = vmatprep.mubr.msk.f32.mxu0 %vm173_vm1, %v148_v3  ;;  %v708_v10 = vadd.f32 %v5775_v6, %v7689_v4 }
  0xf0   :  { %v702_v11 = vpop.f32.mrf.mxu0 }
  0xf1   :  { %v703_v13 = vadd.f32 %v7689_v4, %v702_v11  ;;  %5991 = vmatprep.mubr.f32.mxu1 %v1265_v7  ;;  %v1268_v18 = vmax.f32 %v708_v10, 0.0 }
  0xf2   :  { %v5778_v15 = vpop.f32.mrf.mxu0  ;;  %5921 = vmatmul.mubr.msk.f32.gmra.mxu0 %vm173_vm1, %v149_v8  ;;  %5992 = vmatmul.mubr.f32.gmra.mxu1 %v1266_v9 }
  0xf3   :  { %v1267_v16 = vmax.f32 %v703_v13, 0.0  ;;  %5923 = vmatprep.mubr.msk.f32.mxu0 %vm173_vm1, %v150_v12  ;;  %v718_v19 = vadd.f32 %v5778_v15, %v7689_v4  ;;  %v2221_v12 = vld [vmem:[%s10448_s5] sm:$0xff]  ;;  %v7867_v15 = vld [vmem:[%s10451_s7 + $0x68] sm:$0xff] }
  0xf4   :  { %v712_v20 = vpop.f32.mrf.mxu0  ;;  %6189 = vmatprep.subr.mxu0 %v2221_v12  ;;  %6603 = vmatprep.subr.mxu1 %v7867_v15 }
  0xf5   :  { %v713_v23 = vadd.f32 %v7689_v4, %v712_v20  ;;  %5994 = vmatprep.mubr.f32.mxu1 %v1267_v16  ;;  %v1270_v27 = vmax.f32 %v718_v19, 0.0  ;;  %6190 = vmatpush3.msra.mxu0 %v2221_v12 }
  0xf6   :  { %v5781_v24 = vpop.f32.mrf.mxu0  ;;  %5924 = vmatmul.mubr.msk.f32.gmra.mxu0 %vm173_vm1, %v151_v17  ;;  %5995 = vmatmul.mubr.f32.gmra.mxu1 %v1268_v18 }
  0xf7   :  { %v1269_v25 = vmax.f32 %v713_v23, 0.0  ;;  %5926 = vmatprep.mubr.msk.f32.mxu0 %vm173_vm1, %v152_v21  ;;  %v728_v28 = vadd.f32 %v5781_v24, %v7689_v4  ;;  %6380 = vmatprep.subr.mxu0 %v7802_v22 }
  0xf8   :  { %v722_v29 = vpop.f32.mrf.mxu0  ;;  %6619 = vmatpush3.msra.mxu1 %v7867_v15 }
  0xf9   :  { %v723_v31 = vadd.f32 %v7689_v4, %v722_v29  ;;  %5997 = vmatprep.mubr.f32.mxu1 %v1269_v25  ;;  %v1272_v35 = vmax.f32 %v728_v28, 0.0 }
  0xfa   :  { %v5784_v32 = vpop.f32.mrf.mxu0  ;;  %5927 = vmatmul.mubr.msk.f32.gmra.mxu0 %vm173_vm1, %v153_v26  ;;  %5998 = vmatmul.mubr.f32.gmra.mxu1 %v1270_v27 }
  0xfb   :  { %v1271_v33 = vmax.f32 %v723_v31, 0.0  ;;  %5929 = vmatprep.mubr.msk.f32.mxu0 %vm173_vm1, %v154_v30  ;;  %v738_v36 = vadd.f32 %v5784_v32, %v7689_v4 }
  0xfc   :  { %v732_v37 = vpop.f32.mrf.mxu0 }
  0xfd   :  { %v733_v39 = vadd.f32 %v7689_v4, %v732_v37  ;;  %6000 = vmatprep.mubr.f32.mxu1 %v1271_v33  ;;  %v1274_v43 = vmax.f32 %v738_v36, 0.0 }
  0xfe   :  { %v5787_v40 = vpop.f32.mrf.mxu0  ;;  %5930 = vmatmul.mubr.msk.f32.gmra.mxu0 %vm173_vm1, %v155_v34  ;;  %6001 = vmatmul.mubr.f32.gmra.mxu1 %v1272_v35 }
  0xff   :  { %v1273_v41 = vmax.f32 %v733_v39, 0.0  ;;  %5932 = vmatprep.mubr.msk.f32.mxu0 %vm173_vm1, %v156_v38  ;;  %v748_v44 = vadd.f32 %v5787_v40, %v7689_v4 }
 0x100   :  { %v742_v45 = vpop.f32.mrf.mxu0 }
 0x101   :  { %v743_v47 = vadd.f32 %v7689_v4, %v742_v45  ;;  %6003 = vmatprep.mubr.f32.mxu1 %v1273_v41  ;;  %v1276_v53 = vmax.f32 %v748_v44, 0.0  ;;  %v7883_v41 = vld [vmem:[%s10451_s7 + $0x60] sm:$0xff] }
 0x102   :  { %v5790_v49 = vpop.f32.mrf.mxu0  ;;  %5933 = vmatmul.mubr.msk.f32.gmra.mxu0 %vm173_vm1, %v157_v42  ;;  %6004 = vmatmul.mubr.f32.gmra.mxu1 %v1274_v43 }
 0x103   :  { %v1275_v50 = vmax.f32 %v743_v47, 0.0  ;;  %5935 = vmatprep.mubr.msk.f32.mxu0 %vm173_vm1, %v158_v46  ;;  %v758_v54 = vadd.f32 %v5790_v49, %v7689_v4  ;;  %6604 = vmatprep.subr.mxu1 %v7883_v41 }
 0x104   :  { %v752_v55 = vpop.f32.mrf.mxu0  ;;  %6620 = vmatpush3.msra.mxu1 %v7883_v41 }
 0x105   :  { %v753_v56 = vadd.f32 %v7689_v4, %v752_v55  ;;  %6006 = vmatprep.mubr.f32.mxu1 %v1275_v50  ;;  %v1278_v59 = vmax.f32 %v758_v54, 0.0 }
 0x106   :  { %v5793_v57 = vpop.f32.mrf.mxu0  ;;  %5936 = vmatmul.mubr.msk.f32.gmra.mxu0 %vm173_vm1, %v159_v51  ;;  %6007 = vmatmul.mubr.f32.gmra.mxu1 %v1276_v53 }
 0x107   :  { %v1277_v58 = vmax.f32 %v753_v56, 0.0  ;;  %v768_v60 = vadd.f32 %v5793_v57, %v7689_v4 }
 0x108   :  { %v762_v61 = vpop.f32.mrf.mxu0 }
 0x109   :  { %v763_v62 = vadd.f32 %v7689_v4, %v762_v61  ;;  %6009 = vmatprep.mubr.f32.mxu1 %v1277_v58  ;;  %v1280_v1 = vmax.f32 %v768_v60, 0.0 }
 0x10a   :  { %v5796_v63 = vpop.f32.mrf.mxu0  ;;  %6010 = vmatmul.mubr.f32.gmra.mxu1 %v1278_v59 }
 0x10b   :  { %v1279_v0 = vmax.f32 %v763_v62, 0.0  ;;  %v778_v2 = vadd.f32 %v5796_v63, %v7689_v4 }
 0x10c   :  { %v772_v3 = vpop.f32.mrf.mxu0 }
 0x10d   :  { %v773_v5 = vadd.f32 %v7689_v4, %v772_v3  ;;  %6012 = vmatprep.mubr.f32.mxu1 %v1279_v0  ;;  %v1282_v8 = vmax.f32 %v778_v2, 0.0  ;;  %v7898_v3 = vld [vmem:[%s10451_s7 + $0x58] sm:$0xff] }
 0x10e   :  { %v5799_v6 = vpop.f32.mrf.mxu0  ;;  %6013 = vmatmul.mubr.f32.gmra.mxu1 %v1280_v1  ;;  %6605 = vmatprep.subr.mxu1 %v7898_v3 }
 0x10f   :  { %v1281_v7 = vmax.f32 %v773_v5, 0.0  ;;  %v788_v9 = vadd.f32 %v5799_v6, %v7689_v4  ;;  %6621 = vmatpush3.msra.mxu1 %v7898_v3 }
 0x110   :  { %v782_v10 = vpop.f32.mrf.mxu0 }
 0x111   :  { %v783_v11 = vadd.f32 %v7689_v4, %v782_v10  ;;  %6015 = vmatprep.mubr.f32.mxu1 %v1281_v7  ;;  %v1284_v16 = vmax.f32 %v788_v9, 0.0 }
 0x112   :  { %v5802_v13 = vpop.f32.mrf.mxu0  ;;  %6016 = vmatmul.mubr.f32.gmra.mxu1 %v1282_v8 }
 0x113   :  { %v1283_v14 = vmax.f32 %v783_v11, 0.0  ;;  %v798_v17 = vadd.f32 %v5802_v13, %v7689_v4 }
 0x114   :  { %v792_v18 = vpop.f32.mrf.mxu0 }
 0x115   :  { %v793_v19 = vadd.f32 %v7689_v4, %v792_v18  ;;  %6018 = vmatprep.mubr.f32.mxu1 %v1283_v14  ;;  %v1286_v23 = vmax.f32 %v798_v17, 0.0 }
 0x116   :  { %v5805_v20 = vpop.f32.mrf.mxu0  ;;  %6019 = vmatmul.mubr.f32.gmra.mxu1 %v1284_v16 }
 0x117   :  { %v1285_v21 = vmax.f32 %v793_v19, 0.0  ;;  %v808_v24 = vadd.f32 %v5805_v20, %v7689_v4 }
 0x118   :  { %v802_v25 = vpop.f32.mrf.mxu0 }
 0x119   :  { %v803_v26 = vadd.f32 %v7689_v4, %v802_v25  ;;  %6021 = vmatprep.mubr.f32.mxu1 %v1285_v21  ;;  %v1288_v29 = vmax.f32 %v808_v24, 0.0 }
 0x11a   :  { %v5808_v27 = vpop.f32.mrf.mxu0  ;;  %6022 = vmatmul.mubr.f32.gmra.mxu1 %v1286_v23 }
 0x11b   :  { %v1287_v28 = vmax.f32 %v803_v26, 0.0  ;;  %v818_v30 = vadd.f32 %v5808_v27, %v7689_v4 }
 0x11c   :  { %v812_v31 = vpop.f32.mrf.mxu0 }
 0x11d   :  { %v813_v32 = vadd.f32 %v7689_v4, %v812_v31  ;;  %6024 = vmatprep.mubr.f32.mxu1 %v1287_v28  ;;  %v1290_v35 = vmax.f32 %v818_v30, 0.0  ;;  %v7913_v31 = vld [vmem:[%s10451_s7 + $0x50] sm:$0xff] }
 0x11e   :  { %v5811_v33 = vpop.f32.mrf.mxu0  ;;  %6025 = vmatmul.mubr.f32.gmra.mxu1 %v1288_v29  ;;  %6606 = vmatprep.subr.mxu1 %v7913_v31 }
 0x11f   :  { %v1289_v34 = vmax.f32 %v813_v32, 0.0  ;;  %v828_v36 = vadd.f32 %v5811_v33, %v7689_v4  ;;  %6622 = vmatpush3.msra.mxu1 %v7913_v31 }
 0x120   :  { %v822_v37 = vpop.f32.mrf.mxu0 }
 0x121   :  { %v823_v38 = vadd.f32 %v7689_v4, %v822_v37  ;;  %6027 = vmatprep.mubr.f32.mxu1 %v1289_v34  ;;  %v1292_v42 = vmax.f32 %v828_v36, 0.0 }
 0x122   :  { %v5814_v39 = vpop.f32.mrf.mxu0  ;;  %6028 = vmatmul.mubr.f32.gmra.mxu1 %v1290_v35 }
 0x123   :  { %v1291_v40 = vmax.f32 %v823_v38, 0.0  ;;  %v838_v43 = vadd.f32 %v5814_v39, %v7689_v4 }
 0x124   :  { %v832_v44 = vpop.f32.mrf.mxu0 }
 0x125   :  { %v833_v45 = vadd.f32 %v7689_v4, %v832_v44  ;;  %6030 = vmatprep.mubr.f32.mxu1 %v1291_v40  ;;  %v1294_v48 = vmax.f32 %v838_v43, 0.0 }
 0x126   :  { %v5817_v46 = vpop.f32.mrf.mxu0  ;;  %6031 = vmatmul.mubr.f32.gmra.mxu1 %v1292_v42 }
 0x127   :  { %v1293_v47 = vmax.f32 %v833_v45, 0.0  ;;  %v848_v49 = vadd.f32 %v5817_v46, %v7689_v4 }
 0x128   :  { %v842_v50 = vpop.f32.mrf.mxu0 }
 0x129   :  { %v843_v51 = vadd.f32 %v7689_v4, %v842_v50  ;;  %6033 = vmatprep.mubr.f32.mxu1 %v1293_v47  ;;  %v1296_v55 = vmax.f32 %v848_v49, 0.0 }
 0x12a   :  { %v5820_v53 = vpop.f32.mrf.mxu0  ;;  %6034 = vmatmul.mubr.f32.gmra.mxu1 %v1294_v48 }
 0x12b   :  { %v1295_v54 = vmax.f32 %v843_v51, 0.0  ;;  %v858_v56 = vadd.f32 %v5820_v53, %v7689_v4 }
 0x12c   :  { %v852_v57 = vpop.f32.mrf.mxu0 }
 0x12d   :  { %v853_v58 = vadd.f32 %v7689_v4, %v852_v57  ;;  %6036 = vmatprep.mubr.f32.mxu1 %v1295_v54  ;;  %v1298_v61 = vmax.f32 %v858_v56, 0.0 }
 0x12e   :  { %v5823_v59 = vpop.f32.mrf.mxu0  ;;  %6037 = vmatmul.mubr.f32.gmra.mxu1 %v1296_v55 }
 0x12f   :  { %v1297_v60 = vmax.f32 %v853_v58, 0.0  ;;  %v868_v62 = vadd.f32 %v5823_v59, %v7689_v4  ;;  %v7928_v58 = vld [vmem:[%s10451_s7 + $0x48] sm:$0xff] }
 0x130   :  { %v862_v63 = vpop.f32.mrf.mxu0  ;;  %6607 = vmatprep.subr.mxu1 %v7928_v58 }
 0x131   :  { %v863_v0 = vadd.f32 %v7689_v4, %v862_v63  ;;  %6039 = vmatprep.mubr.f32.mxu1 %v1297_v60  ;;  %v1300_v5 = vmax.f32 %v868_v62, 0.0  ;;  %6623 = vmatpush3.msra.mxu1 %v7928_v58 }
 0x132   :  { %v5826_v1 = vpop.f32.mrf.mxu0  ;;  %6040 = vmatmul.mubr.f32.gmra.mxu1 %v1298_v61 }
 0x133   :  { %v1299_v2 = vmax.f32 %v863_v0, 0.0  ;;  %v878_v6 = vadd.f32 %v5826_v1, %v7689_v4 }
 0x134   :  { %v872_v7 = vpop.f32.mrf.mxu0 }
 0x135   :  { %v873_v8 = vadd.f32 %v7689_v4, %v872_v7  ;;  %6042 = vmatprep.mubr.f32.mxu1 %v1299_v2  ;;  %v1302_v11 = vmax.f32 %v878_v6, 0.0 }
 0x136   :  { %v5829_v9 = vpop.f32.mrf.mxu0  ;;  %6043 = vmatmul.mubr.f32.gmra.mxu1 %v1300_v5 }
 0x137   :  { %v1301_v10 = vmax.f32 %v873_v8, 0.0  ;;  %v888_v12 = vadd.f32 %v5829_v9, %v7689_v4 }
 0x138   :  { %v882_v13 = vpop.f32.mrf.mxu0 }
 0x139   :  { %v883_v14 = vadd.f32 %v7689_v4, %v882_v13  ;;  %6045 = vmatprep.mubr.f32.mxu1 %v1301_v10  ;;  %v1304_v18 = vmax.f32 %v888_v12, 0.0 }
 0x13a   :  { %v5832_v16 = vpop.f32.mrf.mxu0  ;;  %6046 = vmatmul.mubr.f32.gmra.mxu1 %v1302_v11 }
 0x13b   :  { %v1303_v17 = vmax.f32 %v883_v14, 0.0  ;;  %v898_v19 = vadd.f32 %v5832_v16, %v7689_v4 }
 0x13c   :  { %v892_v20 = vpop.f32.mrf.mxu0 }
 0x13d   :  { %v893_v21 = vadd.f32 %v7689_v4, %v892_v20  ;;  %6048 = vmatprep.mubr.f32.mxu1 %v1303_v17  ;;  %v1306_v25 = vmax.f32 %v898_v19, 0.0 }
 0x13e   :  { %v5835_v23 = vpop.f32.mrf.mxu0  ;;  %6049 = vmatmul.mubr.f32.gmra.mxu1 %v1304_v18 }
 0x13f   :  { %v1305_v24 = vmax.f32 %v893_v21, 0.0  ;;  %v908_v26 = vadd.f32 %v5835_v23, %v7689_v4  ;;  %v7943_v23 = vld [vmem:[%s10451_s7 + $0x40] sm:$0xff] }
 0x140   :  { %v902_v27 = vpop.f32.mrf.mxu0  ;;  %6608 = vmatprep.subr.mxu1 %v7943_v23 }
 0x141   :  { %v903_v28 = vadd.f32 %v7689_v4, %v902_v27  ;;  %6051 = vmatprep.mubr.f32.mxu1 %v1305_v24  ;;  %v1308_v32 = vmax.f32 %v908_v26, 0.0  ;;  %6624 = vmatpush3.msra.mxu1 %v7943_v23 }
 0x142   :  { %v5838_v29 = vpop.f32.mrf.mxu0  ;;  %6052 = vmatmul.mubr.f32.gmra.mxu1 %v1306_v25 }
 0x143   :  { %v1307_v30 = vmax.f32 %v903_v28, 0.0  ;;  %v918_v33 = vadd.f32 %v5838_v29, %v7689_v4 }
 0x144   :  { %v912_v34 = vpop.f32.mrf.mxu0 }
 0x145   :  { %v913_v35 = vadd.f32 %v7689_v4, %v912_v34  ;;  %6054 = vmatprep.mubr.f32.mxu1 %v1307_v30  ;;  %v1310_v38 = vmax.f32 %v918_v33, 0.0 }
 0x146   :  { %v5841_v36 = vpop.f32.mrf.mxu0  ;;  %6055 = vmatmul.mubr.f32.gmra.mxu1 %v1308_v32 }
 0x147   :  { %v1309_v37 = vmax.f32 %v913_v35, 0.0  ;;  %v928_v39 = vadd.f32 %v5841_v36, %v7689_v4 }
 0x148   :  { %v922_v40 = vpop.f32.mrf.mxu0 }
 0x149   :  { %v923_v42 = vadd.f32 %v7689_v4, %v922_v40  ;;  %6057 = vmatprep.mubr.f32.mxu1 %v1309_v37  ;;  %v1312_v45 = vmax.f32 %v928_v39, 0.0 }
 0x14a   :  { %v5844_v43 = vpop.f32.mrf.mxu0  ;;  %6058 = vmatmul.mubr.f32.gmra.mxu1 %v1310_v38 }
 0x14b   :  { %v1311_v44 = vmax.f32 %v923_v42, 0.0  ;;  %v938_v46 = vadd.f32 %v5844_v43, %v7689_v4 }
 0x14c   :  { %v932_v47 = vpop.f32.mrf.mxu0 }
 0x14d   :  { %v933_v48 = vadd.f32 %v7689_v4, %v932_v47  ;;  %6060 = vmatprep.mubr.f32.mxu1 %v1311_v44  ;;  %v1314_v51 = vmax.f32 %v938_v46, 0.0 }
 0x14e   :  { %v5847_v49 = vpop.f32.mrf.mxu0  ;;  %6061 = vmatmul.mubr.f32.gmra.mxu1 %v1312_v45 }
 0x14f   :  { %v1313_v50 = vmax.f32 %v933_v48, 0.0  ;;  %v948_v53 = vadd.f32 %v5847_v49, %v7689_v4  ;;  %v7958_v48 = vld [vmem:[%s10451_s7 + $0x38] sm:$0xff] }
 0x150   :  { %v942_v54 = vpop.f32.mrf.mxu0  ;;  %6609 = vmatprep.subr.mxu1 %v7958_v48 }
 0x151   :  { %v943_v55 = vadd.f32 %v7689_v4, %v942_v54  ;;  %6063 = vmatprep.mubr.f32.mxu1 %v1313_v50  ;;  %v1316_v59 = vmax.f32 %v948_v53, 0.0  ;;  %6625 = vmatpush3.msra.mxu1 %v7958_v48 }
 0x152   :  { %v5850_v56 = vpop.f32.mrf.mxu0  ;;  %6064 = vmatmul.mubr.f32.gmra.mxu1 %v1314_v51 }
 0x153   :  { %v1315_v57 = vmax.f32 %v943_v55, 0.0  ;;  %v958_v60 = vadd.f32 %v5850_v56, %v7689_v4 }
 0x154   :  { %v952_v61 = vpop.f32.mrf.mxu0 }
 0x155   :  { %v953_v62 = vadd.f32 %v7689_v4, %v952_v61  ;;  %6066 = vmatprep.mubr.f32.mxu1 %v1315_v57  ;;  %v1318_v1 = vmax.f32 %v958_v60, 0.0 }
 0x156   :  { %v5853_v63 = vpop.f32.mrf.mxu0  ;;  %6067 = vmatmul.mubr.f32.gmra.mxu1 %v1316_v59 }
 0x157   :  { %v1317_v0 = vmax.f32 %v953_v62, 0.0  ;;  %v968_v2 = vadd.f32 %v5853_v63, %v7689_v4 }
 0x158   :  { %v962_v5 = vpop.f32.mrf.mxu0 }
 0x159   :  { %v963_v6 = vadd.f32 %v7689_v4, %v962_v5  ;;  %6069 = vmatprep.mubr.f32.mxu1 %v1317_v0  ;;  %v1320_v9 = vmax.f32 %v968_v2, 0.0 }
 0x15a   :  { %v5856_v7 = vpop.f32.mrf.mxu0  ;;  %6070 = vmatmul.mubr.f32.gmra.mxu1 %v1318_v1 }
 0x15b   :  { %v1319_v8 = vmax.f32 %v963_v6, 0.0  ;;  %v978_v10 = vadd.f32 %v5856_v7, %v7689_v4 }
 0x15c   :  { %v972_v11 = vpop.f32.mrf.mxu0 }
 0x15d   :  { %v973_v12 = vadd.f32 %v7689_v4, %v972_v11  ;;  %6072 = vmatprep.mubr.f32.mxu1 %v1319_v8  ;;  %v1322_v16 = vmax.f32 %v978_v10, 0.0 }
 0x15e   :  { %v5859_v13 = vpop.f32.mrf.mxu0  ;;  %6073 = vmatmul.mubr.f32.gmra.mxu1 %v1320_v9 }
 0x15f   :  { %v1321_v14 = vmax.f32 %v973_v12, 0.0  ;;  %v988_v17 = vadd.f32 %v5859_v13, %v7689_v4  ;;  %v7973_v13 = vld [vmem:[%s10451_s7 + $0x30] sm:$0xff] }
 0x160   :  { %v982_v18 = vpop.f32.mrf.mxu0  ;;  %6610 = vmatprep.subr.mxu1 %v7973_v13 }
 0x161   :  { %v983_v19 = vadd.f32 %v7689_v4, %v982_v18  ;;  %6075 = vmatprep.mubr.f32.mxu1 %v1321_v14  ;;  %v1324_v24 = vmax.f32 %v988_v17, 0.0  ;;  %6626 = vmatpush3.msra.mxu1 %v7973_v13 }
 0x162   :  { %v5862_v20 = vpop.f32.mrf.mxu0  ;;  %6076 = vmatmul.mubr.f32.gmra.mxu1 %v1322_v16 }
 0x163   :  { %v1323_v21 = vmax.f32 %v983_v19, 0.0  ;;  %v998_v25 = vadd.f32 %v5862_v20, %v7689_v4 }
 0x164   :  { %v992_v26 = vpop.f32.mrf.mxu0 }
 0x165   :  { %v993_v27 = vadd.f32 %v7689_v4, %v992_v26  ;;  %6078 = vmatprep.mubr.f32.mxu1 %v1323_v21  ;;  %v1326_v30 = vmax.f32 %v998_v25, 0.0 }
 0x166   :  { %v5865_v28 = vpop.f32.mrf.mxu0  ;;  %6079 = vmatmul.mubr.f32.gmra.mxu1 %v1324_v24 }
 0x167   :  { %v1325_v29 = vmax.f32 %v993_v27, 0.0  ;;  %v1008_v32 = vadd.f32 %v5865_v28, %v7689_v4 }
 0x168   :  { %v1002_v33 = vpop.f32.mrf.mxu0 }
 0x169   :  { %v1003_v34 = vadd.f32 %v7689_v4, %v1002_v33  ;;  %6081 = vmatprep.mubr.f32.mxu1 %v1325_v29  ;;  %v1328_v37 = vmax.f32 %v1008_v32, 0.0 }
 0x16a   :  { %v5868_v35 = vpop.f32.mrf.mxu0  ;;  %6082 = vmatmul.mubr.f32.gmra.mxu1 %v1326_v30 }
 0x16b   :  { %v1327_v36 = vmax.f32 %v1003_v34, 0.0  ;;  %v1018_v38 = vadd.f32 %v5868_v35, %v7689_v4 }
 0x16c   :  { %v1012_v39 = vpop.f32.mrf.mxu0 }
 0x16d   :  { %v1013_v40 = vadd.f32 %v7689_v4, %v1012_v39  ;;  %6084 = vmatprep.mubr.f32.mxu1 %v1327_v36  ;;  %v1330_v44 = vmax.f32 %v1018_v38, 0.0 }
 0x16e   :  { %v5871_v42 = vpop.f32.mrf.mxu0  ;;  %6085 = vmatmul.mubr.f32.gmra.mxu1 %v1328_v37 }
 0x16f   :  { %v1329_v43 = vmax.f32 %v1013_v40, 0.0  ;;  %v1028_v45 = vadd.f32 %v5871_v42, %v7689_v4 }
 0x170   :  { %v1022_v46 = vpop.f32.mrf.mxu0 }
 0x171   :  { %v1023_v47 = vadd.f32 %v7689_v4, %v1022_v46  ;;  %6087 = vmatprep.mubr.f32.mxu1 %v1329_v43  ;;  %v1332_v51 = vmax.f32 %v1028_v45, 0.0  ;;  %v7988_v43 = vld [vmem:[%s10451_s7 + $0x28] sm:$0xff] }
 0x172   :  { %v5874_v49 = vpop.f32.mrf.mxu0  ;;  %6088 = vmatmul.mubr.f32.gmra.mxu1 %v1330_v44  ;;  %6611 = vmatprep.subr.mxu1 %v7988_v43 }
 0x173   :  { %v1331_v50 = vmax.f32 %v1023_v47, 0.0  ;;  %v1038_v53 = vadd.f32 %v5874_v49, %v7689_v4  ;;  %6627 = vmatpush3.msra.mxu1 %v7988_v43 }
 0x174   :  { %v1032_v54 = vpop.f32.mrf.mxu0 }
 0x175   :  { %v1033_v55 = vadd.f32 %v7689_v4, %v1032_v54  ;;  %6090 = vmatprep.mubr.f32.mxu1 %v1331_v50  ;;  %v1334_v59 = vmax.f32 %v1038_v53, 0.0 }
 0x176   :  { %v5877_v56 = vpop.f32.mrf.mxu0  ;;  %6091 = vmatmul.mubr.f32.gmra.mxu1 %v1332_v51  ;;  %v7997_v51 = vld [vmem:[%s10452_s4] ss:$0 sm:$0xff] }
 0x177   :  { %v1333_v57 = vmax.f32 %v1033_v55, 0.0  ;;  %v1048_v60 = vadd.f32 %v5877_v56, %v7689_v4 }
 0x178   :  { %v1042_v61 = vpop.f32.mrf.mxu0 }
 0x179   :  { %v1043_v62 = vadd.f32 %v7689_v4, %v1042_v61  ;;  %6093 = vmatprep.mubr.f32.mxu1 %v1333_v57  ;;  %v1336_v1 = vmax.f32 %v1048_v60, 0.0 }
 0x17a   :  { %v5880_v63 = vpop.f32.mrf.mxu0  ;;  %6094 = vmatmul.mubr.f32.gmra.mxu1 %v1334_v59 }
 0x17b   :  { %v1335_v0 = vmax.f32 %v1043_v62, 0.0  ;;  %v1058_v2 = vadd.f32 %v5880_v63, %v7689_v4  ;;  %v8004_v62 = vld [vmem:[%s10450_s2] ss:$0 sm:$0xff] }
 0x17c   :  { %v1052_v5 = vpop.f32.mrf.mxu0 }
 0x17d   :  { %v1053_v6 = vadd.f32 %v7689_v4, %v1052_v5  ;;  %6096 = vmatprep.mubr.f32.mxu1 %v1335_v0  ;;  %v1338_v9 = vmax.f32 %v1058_v2, 0.0 }
 0x17e   :  { %v5883_v7 = vpop.f32.mrf.mxu0  ;;  %6097 = vmatmul.mubr.f32.gmra.mxu1 %v1336_v1 }
 0x17f   :  { %v1337_v8 = vmax.f32 %v1053_v6, 0.0  ;;  %v1068_v10 = vadd.f32 %v5883_v7, %v7689_v4 }
 0x180   :  { %v1062_v11 = vpop.f32.mrf.mxu0 }
 0x181   :  { %v1063_v12 = vadd.f32 %v7689_v4, %v1062_v11  ;;  %6099 = vmatprep.mubr.f32.mxu1 %v1337_v8  ;;  %v1340_v17 = vmax.f32 %v1068_v10, 0.0 }
 0x182   :  { %v5886_v14 = vpop.f32.mrf.mxu0  ;;  %6100 = vmatmul.mubr.f32.gmra.mxu1 %v1338_v9 }
 0x183   :  { %v1339_v16 = vmax.f32 %v1063_v12, 0.0  ;;  %v1078_v18 = vadd.f32 %v5886_v14, %v7689_v4 }
 0x184   :  { %v1072_v19 = vpop.f32.mrf.mxu0 }
 0x185   :  { %v1073_v20 = vadd.f32 %v7689_v4, %v1072_v19  ;;  %6102 = vmatprep.mubr.f32.mxu1 %v1339_v16  ;;  %v1342_v25 = vmax.f32 %v1078_v18, 0.0 }
 0x186   :  { %v5889_v21 = vpop.f32.mrf.mxu0  ;;  %6103 = vmatmul.mubr.f32.gmra.mxu1 %v1340_v17 }
 0x187   :  { %v1341_v24 = vmax.f32 %v1073_v20, 0.0  ;;  %v1088_v26 = vadd.f32 %v5889_v21, %v7689_v4 }
 0x188   :  { %v1082_v27 = vpop.f32.mrf.mxu0 }
 0x189   :  { %v1083_v28 = vadd.f32 %v7689_v4, %v1082_v27  ;;  %6105 = vmatprep.mubr.f32.mxu1 %v1341_v24  ;;  %v1344_v32 = vmax.f32 %v1088_v26, 0.0 }
 0x18a   :  { %v5892_v29 = vpop.f32.mrf.mxu0  ;;  %6106 = vmatmul.mubr.f32.gmra.mxu1 %v1342_v25 }
 0x18b   :  { %v1343_v30 = vmax.f32 %v1083_v28, 0.0  ;;  %v1098_v33 = vadd.f32 %v5892_v29, %v7689_v4 }
 0x18c   :  { %v1092_v34 = vpop.f32.mrf.mxu0 }
 0x18d   :  { %v1093_v35 = vadd.f32 %v7689_v4, %v1092_v34  ;;  %6108 = vmatprep.mubr.f32.mxu1 %v1343_v30  ;;  %v1346_v38 = vmax.f32 %v1098_v33, 0.0 }
 0x18e   :  { %v5895_v36 = vpop.f32.mrf.mxu0  ;;  %6109 = vmatmul.mubr.f32.gmra.mxu1 %v1344_v32 }
 0x18f   :  { %v1345_v37 = vmax.f32 %v1093_v35, 0.0  ;;  %v1108_v39 = vadd.f32 %v5895_v36, %v7689_v4 }
 0x190   :  { %v1102_v40 = vpop.f32.mrf.mxu0 }
 0x191   :  { %v1103_v42 = vadd.f32 %v7689_v4, %v1102_v40  ;;  %6111 = vmatprep.mubr.f32.mxu1 %v1345_v37  ;;  %v1348_v46 = vmax.f32 %v1108_v39, 0.0 }
 0x192   :  { %v5898_v44 = vpop.f32.mrf.mxu0  ;;  %6112 = vmatmul.mubr.f32.gmra.mxu1 %v1346_v38 }
 0x193   :  { %v1347_v45 = vmax.f32 %v1103_v42, 0.0  ;;  %v1118_v47 = vadd.f32 %v5898_v44, %v7689_v4 }
 0x194   :  { %v1112_v49 = vpop.f32.mrf.mxu0 }
 0x195   :  { %v1113_v50 = vadd.f32 %v7689_v4, %v1112_v49  ;;  %6114 = vmatprep.mubr.f32.mxu1 %v1347_v45  ;;  %v1350_v56 = vmax.f32 %v1118_v47, 0.0 }
 0x196   :  { %v5901_v53 = vpop.f32.mrf.mxu0  ;;  %v5972_v54 = vpop.f32.mrf.mxu1  ;;  %6115 = vmatmul.mubr.f32.gmra.mxu1 %v1348_v46 }
 0x197   :  { %v1349_v55 = vmax.f32 %v1113_v50, 0.0  ;;  %v1128_v57 = vadd.f32 %v5901_v53, %v7689_v4  ;;  %v1472_v59 = vadd.f32 %v5972_v54, %v7997_v51 }
 0x198   :  { %v1122_v60 = vpop.f32.mrf.mxu0  ;;  %v1466_v61 = vpop.f32.mrf.mxu1 }
 0x199   :  { %v1123_v63 = vadd.f32 %v8004_v62, %v1122_v60  ;;  %v1467_v0 = vadd.f32 %v7997_v51, %v1466_v61  ;;  %6117 = vmatprep.mubr.f32.mxu1 %v1349_v55  ;;  %v1352_v4 = vmax.f32 %v1128_v57, 0.0  ;;  %v2096_v7 = vmax.f32 %v1472_v59, 0.0 }
 0x19a   :  { %v5904_v1 = vpop.f32.mrf.mxu0  ;;  %v5975_v2 = vpop.f32.mrf.mxu1  ;;  %6118 = vmatmul.mubr.f32.gmra.mxu1 %v1350_v56 }
 0x19b   :  { %v1351_v5 = vmax.f32 %v1123_v63, 0.0  ;;  %v2095_v6 = vmax.f32 %v1467_v0, 0.0  ;;  %v1138_v8 = vadd.f32 %v8004_v62, %v5904_v1  ;;  %v1482_v9 = vadd.f32 %v5975_v2, %v7997_v51 }
 0x19c   :  { %v1132_v10 = vpop.f32.mrf.mxu0  ;;  %v1476_v11 = vpop.f32.mrf.mxu1 }
 0x19d   :  { %v1133_v12 = vadd.f32 %v8004_v62, %v1132_v10  ;;  %v1477_v14 = vadd.f32 %v7997_v51, %v1476_v11  ;;  %6120 = vmatprep.mubr.f32.mxu1 %v1351_v5  ;;  %6191 = vmatprep.mubr.f32.mxu0 %v2095_v6  ;;  %v1354_v20 = vmax.f32 %v1138_v8, 0.0  ;;  %v2098_v21 = vmax.f32 %v1482_v9, 0.0 }
 0x19e   :  { %v5907_v16 = vpop.f32.mrf.mxu0  ;;  %v5978_v17 = vpop.f32.mrf.mxu1  ;;  %6121 = vmatmul.mubr.f32.gmra.mxu1 %v1352_v4  ;;  %6192 = vmatmul.mubr.f32.vlgmr.msra.gmra.mxu0 %v2096_v7 }
 0x19f   :  { %v1353_v18 = vmax.f32 %v1133_v12, 0.0  ;;  %v2097_v19 = vmax.f32 %v1477_v14, 0.0  ;;  %6381 = vmatpush3.msra.mxu0 %v7802_v22  ;;  %v1148_v24 = vadd.f32 %v8004_v62, %v5907_v16  ;;  %v1492_v25 = vadd.f32 %v5978_v17, %v7997_v51  ;;  %v8021_v22 = vld [vmem:[%s10451_s7 + $0x20] sm:$0xff] }
 0x1a0   :  { %v1142_v26 = vpop.f32.mrf.mxu0  ;;  %v1486_v27 = vpop.f32.mrf.mxu1  ;;  %6382 = vmatprep.subr.mxu0 %v7848_v52  ;;  %6612 = vmatprep.subr.mxu1 %v8021_v22 }
 0x1a1   :  { %v1143_v28 = vadd.f32 %v8004_v62, %v1142_v26  ;;  %v1487_v29 = vadd.f32 %v7997_v51, %v1486_v27  ;;  %6123 = vmatprep.mubr.f32.mxu1 %v1353_v18  ;;  %6194 = vmatprep.mubr.f32.mxu0 %v2097_v19  ;;  %v1356_v35 = vmax.f32 %v1148_v24, 0.0  ;;  %v2100_v36 = vmax.f32 %v1492_v25, 0.0 }
 0x1a2   :  { %v5910_v30 = vpop.f32.mrf.mxu0  ;;  %v5981_v32 = vpop.f32.mrf.mxu1  ;;  %6124 = vmatmul.mubr.f32.gmra.mxu1 %v1354_v20  ;;  %6195 = vmatmul.mubr.f32.gmra.mxu0 %v2098_v21 }
 0x1a3   :  { %v1355_v33 = vmax.f32 %v1143_v28, 0.0  ;;  %v2099_v34 = vmax.f32 %v1487_v29, 0.0  ;;  %6383 = vmatpush3.msra.mxu0 %v7848_v52  ;;  %v1158_v37 = vadd.f32 %v8004_v62, %v5910_v30  ;;  %v1502_v38 = vadd.f32 %v5981_v32, %v7997_v51  ;;  %6628 = vmatpush3.msra.mxu1 %v8021_v22 }
 0x1a4   :  { %v1152_v39 = vpop.f32.mrf.mxu0  ;;  %v1496_v40 = vpop.f32.mrf.mxu1  ;;  %6384 = vmatprep.subr.mxu0 %v7867_v15 }
 0x1a5   :  { %v1153_v42 = vadd.f32 %v8004_v62, %v1152_v39  ;;  %v1497_v44 = vadd.f32 %v7997_v51, %v1496_v40  ;;  %6126 = vmatprep.mubr.f32.mxu1 %v1355_v33  ;;  %6197 = vmatprep.mubr.f32.mxu0 %v2099_v34  ;;  %v1358_v49 = vmax.f32 %v1158_v37, 0.0  ;;  %v2102_v50 = vmax.f32 %v1502_v38, 0.0 }
 0x1a6   :  { %v5913_v45 = vpop.f32.mrf.mxu0  ;;  %v5984_v52 = vpop.f32.mrf.mxu1  ;;  %6127 = vmatmul.mubr.f32.gmra.mxu1 %v1356_v35  ;;  %6198 = vmatmul.mubr.f32.gmra.mxu0 %v2100_v36 }
 0x1a7   :  { %v1357_v46 = vmax.f32 %v1153_v42, 0.0  ;;  %v2101_v47 = vmax.f32 %v1497_v44, 0.0  ;;  %6385 = vmatpush3.msra.mxu0 %v7867_v15  ;;  %v1168_v53 = vadd.f32 %v8004_v62, %v5913_v45  ;;  %v1512_v54 = vadd.f32 %v5984_v52, %v7997_v51 }
 0x1a8   :  { %v1162_v55 = vpop.f32.mrf.mxu0  ;;  %v1506_v56 = vpop.f32.mrf.mxu1  ;;  %6386 = vmatprep.subr.mxu0 %v7883_v41 }
 0x1a9   :  { %v1163_v57 = vadd.f32 %v8004_v62, %v1162_v55  ;;  %v1507_v59 = vadd.f32 %v7997_v51, %v1506_v56  ;;  %6129 = vmatprep.mubr.f32.mxu1 %v1357_v46  ;;  %6200 = vmatprep.mubr.f32.mxu0 %v2101_v47  ;;  %v1360_v0 = vmax.f32 %v1168_v53, 0.0  ;;  %v2104_v1 = vmax.f32 %v1512_v54, 0.0 }
 0x1aa   :  { %v5916_v60 = vpop.f32.mrf.mxu0  ;;  %v5987_v61 = vpop.f32.mrf.mxu1  ;;  %6130 = vmatmul.mubr.f32.gmra.mxu1 %v1358_v49  ;;  %6201 = vmatmul.mubr.f32.gmra.mxu0 %v2102_v50 }
 0x1ab   :  { %v1359_v15 = vmax.f32 %v1163_v57, 0.0  ;;  %v2103_v63 = vmax.f32 %v1507_v59, 0.0  ;;  %6387 = vmatpush3.msra.mxu0 %v7883_v41  ;;  %v1178_v2 = vadd.f32 %v8004_v62, %v5916_v60  ;;  %v1522_v5 = vadd.f32 %v5987_v61, %v7997_v51 }
 0x1ac   :  { %v1172_v6 = vpop.f32.mrf.mxu0  ;;  %v1516_v4 = vpop.f32.mrf.mxu1  ;;  %6388 = vmatprep.subr.mxu0 %v7898_v3 }
 0x1ad   :  { %v1173_v7 = vadd.f32 %v8004_v62, %v1172_v6  ;;  %v1517_v8 = vadd.f32 %v7997_v51, %v1516_v4  ;;  %6132 = vmatprep.mubr.f32.mxu1 %v1359_v15  ;;  %6203 = vmatprep.mubr.f32.mxu0 %v2103_v63  ;;  %v1362_v12 = vmax.f32 %v1178_v2, 0.0  ;;  %v2106_v14 = vmax.f32 %v1522_v5, 0.0 }
 0x1ae   :  { %v5919_v9 = vpop.f32.mrf.mxu0  ;;  %v5990_v10 = vpop.f32.mrf.mxu1  ;;  %6133 = vmatmul.mubr.f32.gmra.mxu1 %v1360_v0  ;;  %6204 = vmatmul.mubr.f32.gmra.mxu0 %v2104_v1 }
 0x1af   :  { %v1361_v41 = vmax.f32 %v1173_v7, 0.0  ;;  %v2105_v11 = vmax.f32 %v1517_v8, 0.0  ;;  %6389 = vmatpush3.msra.mxu0 %v7898_v3  ;;  %v1188_v16 = vadd.f32 %v8004_v62, %v5919_v9  ;;  %v1532_v17 = vadd.f32 %v5990_v10, %v7997_v51  ;;  %v8052_v3 = vld [vmem:[%s10451_s7 + $0x18] sm:$0xff] }
 0x1b0   :  { %v1182_v18 = vpop.f32.mrf.mxu0  ;;  %v1526_v19 = vpop.f32.mrf.mxu1  ;;  %6390 = vmatprep.subr.mxu0 %v7913_v31  ;;  %6613 = vmatprep.subr.mxu1 %v8052_v3 }
 0x1b1   :  { %v1183_v20 = vadd.f32 %v8004_v62, %v1182_v18  ;;  %v1527_v21 = vadd.f32 %v7997_v51, %v1526_v19  ;;  %6135 = vmatprep.mubr.f32.mxu1 %v1361_v41  ;;  %6206 = vmatprep.mubr.f32.mxu0 %v2105_v11  ;;  %v1364_v28 = vmax.f32 %v1188_v16, 0.0  ;;  %v2108_v29 = vmax.f32 %v1532_v17, 0.0 }
 0x1b2   :  { %v5922_v24 = vpop.f32.mrf.mxu0  ;;  %v5993_v25 = vpop.f32.mrf.mxu1  ;;  %6136 = vmatmul.mubr.f32.gmra.mxu1 %v1362_v12  ;;  %6207 = vmatmul.mubr.f32.gmra.mxu0 %v2106_v14 }
 0x1b3   :  { %v1363_v26 = vmax.f32 %v1183_v20, 0.0  ;;  %v2107_v27 = vmax.f32 %v1527_v21, 0.0  ;;  %6391 = vmatpush3.msra.mxu0 %v7913_v31  ;;  %v1198_v30 = vadd.f32 %v8004_v62, %v5922_v24  ;;  %v1542_v32 = vadd.f32 %v5993_v25, %v7997_v51  ;;  %6629 = vmatpush3.msra.mxu1 %v8052_v3 }
 0x1b4   :  { %v1192_v33 = vpop.f32.mrf.mxu0  ;;  %v1536_v34 = vpop.f32.mrf.mxu1  ;;  %6392 = vmatprep.subr.mxu0 %v7928_v58 }
 0x1b5   :  { %v1193_v35 = vadd.f32 %v8004_v62, %v1192_v33  ;;  %v1537_v36 = vadd.f32 %v7997_v51, %v1536_v34  ;;  %6138 = vmatprep.mubr.f32.mxu1 %v1363_v26  ;;  %6209 = vmatprep.mubr.f32.mxu0 %v2107_v27  ;;  %v1366_v40 = vmax.f32 %v1198_v30, 0.0  ;;  %v2110_v42 = vmax.f32 %v1542_v32, 0.0 }
 0x1b6   :  { %v5925_v37 = vpop.f32.mrf.mxu0  ;;  %v5996_v31 = vpop.f32.mrf.mxu1  ;;  %6139 = vmatmul.mubr.f32.gmra.mxu1 %v1364_v28  ;;  %6210 = vmatmul.mubr.f32.gmra.mxu0 %v2108_v29 }
 0x1b7   :  { %v1365_v38 = vmax.f32 %v1193_v35, 0.0  ;;  %v2109_v39 = vmax.f32 %v1537_v36, 0.0  ;;  %6393 = vmatpush3.msra.mxu0 %v7928_v58  ;;  %v1208_v44 = vadd.f32 %v8004_v62, %v5925_v37  ;;  %v1552_v45 = vadd.f32 %v5996_v31, %v7997_v51 }
 0x1b8   :  { %v1202_v52 = vpop.f32.mrf.mxu0  ;;  %v1546_v46 = vpop.f32.mrf.mxu1  ;;  %6394 = vmatprep.subr.mxu0 %v7943_v23 }
 0x1b9   :  { %v1203_v47 = vadd.f32 %v8004_v62, %v1202_v52  ;;  %v1547_v49 = vadd.f32 %v7997_v51, %v1546_v46  ;;  %6141 = vmatprep.mubr.f32.mxu1 %v1365_v38  ;;  %6212 = vmatprep.mubr.f32.mxu0 %v2109_v39  ;;  %v1368_v55 = vmax.f32 %v1208_v44, 0.0  ;;  %v2112_v56 = vmax.f32 %v1552_v45, 0.0 }
 0x1ba   :  { %v5928_v50 = vpop.f32.mrf.mxu0  ;;  %v5999_v53 = vpop.f32.mrf.mxu1  ;;  %6142 = vmatmul.mubr.f32.gmra.mxu1 %v1366_v40  ;;  %6213 = vmatmul.mubr.f32.gmra.mxu0 %v2110_v42 }
 0x1bb   :  { %v1367_v58 = vmax.f32 %v1203_v47, 0.0  ;;  %v2111_v54 = vmax.f32 %v1547_v49, 0.0  ;;  %6395 = vmatpush3.msra.mxu0 %v7943_v23  ;;  %v1218_v57 = vadd.f32 %v8004_v62, %v5928_v50  ;;  %v1562_v59 = vadd.f32 %v5999_v53, %v7997_v51  ;;  %v3066_v53 = vld [vmem:[%s10451_s7 + $0x8] sm:$0xff] }
 0x1bc   :  { %v1212_v60 = vpop.f32.mrf.mxu0  ;;  %v1556_v61 = vpop.f32.mrf.mxu1  ;;  %6396 = vmatprep.subr.mxu0 %v7958_v48 }
 0x1bd   :  { %v1213_v15 = vadd.f32 %v8004_v62, %v1212_v60  ;;  %v1557_v63 = vadd.f32 %v7997_v51, %v1556_v61  ;;  %6144 = vmatprep.mubr.f32.mxu1 %v1367_v58  ;;  %6215 = vmatprep.mubr.f32.mxu0 %v2111_v54  ;;  %v1370_v5 = vmax.f32 %v1218_v57, 0.0  ;;  %v2114_v6 = vmax.f32 %v1562_v59, 0.0 }
 0x1be   :  { %v5931_v0 = vpop.f32.mrf.mxu0  ;;  %v6002_v1 = vpop.f32.mrf.mxu1  ;;  %6145 = vmatmul.mubr.f32.gmra.mxu1 %v1368_v55  ;;  %6216 = vmatmul.mubr.f32.gmra.mxu0 %v2112_v56 }
 0x1bf   :  { %v1369_v23 = vmax.f32 %v1213_v15, 0.0  ;;  %v2113_v2 = vmax.f32 %v1557_v63, 0.0  ;;  %6397 = vmatpush3.msra.mxu0 %v7958_v48  ;;  %v1228_v4 = vadd.f32 %v8004_v62, %v5931_v0  ;;  %v1572_v7 = vadd.f32 %v6002_v1, %v7997_v51  ;;  %v8083_v48 = vld [vmem:[%s10451_s7 + $0x10] sm:$0xff] }
 0x1c0   :  { %v1222_v8 = vpop.f32.mrf.mxu0  ;;  %v1566_v9 = vpop.f32.mrf.mxu1  ;;  %6398 = vmatprep.subr.mxu0 %v7973_v13  ;;  %6614 = vmatprep.subr.mxu1 %v8083_v48 }
 0x1c1   :  { %v1223_v10 = vadd.f32 %v8004_v62, %v1222_v8  ;;  %v1567_v41 = vadd.f32 %v7997_v51, %v1566_v9  ;;  %6147 = vmatprep.mubr.f32.mxu1 %v1369_v23  ;;  %6218 = vmatprep.mubr.f32.mxu0 %v2113_v2  ;;  %v1372_v17 = vmax.f32 %v1228_v4, 0.0  ;;  %v2116_v18 = vmax.f32 %v1572_v7, 0.0 }
 0x1c2   :  { %v5934_v11 = vpop.f32.mrf.mxu0  ;;  %v6005_v12 = vpop.f32.mrf.mxu1  ;;  %6148 = vmatmul.mubr.f32.gmra.mxu1 %v1370_v5  ;;  %6219 = vmatmul.mubr.f32.gmra.mxu0 %v2114_v6 }
 0x1c3   :  { %v1371_v14 = vmax.f32 %v1223_v10, 0.0  ;;  %v2115_v16 = vmax.f32 %v1567_v41, 0.0  ;;  %6399 = vmatpush3.msra.mxu0 %v7973_v13  ;;  %v1238_v19 = vadd.f32 %v8004_v62, %v5934_v11  ;;  %v1582_v20 = vadd.f32 %v6005_v12, %v7997_v51  ;;  %6630 = vmatpush3.msra.mxu1 %v8083_v48  ;;  %v3065_v11 = vld [vmem:[%s10451_s7] sm:$0xff] }
 0x1c4   :  { %v1232_v21 = vpop.f32.mrf.mxu0  ;;  %v1576_v24 = vpop.f32.mrf.mxu1  ;;  %6400 = vmatprep.subr.mxu0 %v7988_v43  ;;  %6615 = vmatprep.subr.mxu1 %v3066_v53 }
 0x1c5   :  { %v1233_v25 = vadd.f32 %v8004_v62, %v1232_v21  ;;  %v1577_v26 = vadd.f32 %v7997_v51, %v1576_v24  ;;  %6150 = vmatprep.mubr.f32.mxu1 %v1371_v14  ;;  %6221 = vmatprep.mubr.f32.mxu0 %v2115_v16  ;;  %v1374_v30 = vmax.f32 %v1238_v19, 0.0  ;;  %v2118_v32 = vmax.f32 %v1582_v20, 0.0 }
 0x1c6   :  { %v5937_v27 = vpop.f32.mrf.mxu0  ;;  %v6008_v13 = vpop.f32.mrf.mxu1  ;;  %6151 = vmatmul.mubr.f32.gmra.mxu1 %v1372_v17  ;;  %6222 = vmatmul.mubr.f32.gmra.mxu0 %v2116_v18 }
 0x1c7   :  { %v1373_v28 = vmax.f32 %v1233_v25, 0.0  ;;  %v2117_v29 = vmax.f32 %v1577_v26, 0.0  ;;  %6401 = vmatpush3.msra.mxu0 %v7988_v43  ;;  %v1248_v33 = vadd.f32 %v8004_v62, %v5937_v27  ;;  %v1592_v34 = vadd.f32 %v6008_v13, %v7997_v51  ;;  %6631 = vmatpush3.msra.mxu1 %v3066_v53 }
 0x1c8   :  { %v1242_v35 = vpop.f32.mrf.mxu0  ;;  %v1586_v36 = vpop.f32.mrf.mxu1  ;;  %6402 = vmatprep.subr.mxu0 %v8021_v22  ;;  %6616 = vmatprep.subr.mxu1 %v3065_v11 }
 0x1c9   :  { %v1243_v37 = vadd.f32 %v8004_v62, %v1242_v35  ;;  %v1587_v31 = vadd.f32 %v7997_v51, %v1586_v36  ;;  %6153 = vmatprep.mubr.f32.mxu1 %v1373_v28  ;;  %6224 = vmatprep.mubr.f32.mxu0 %v2117_v29  ;;  %v1376_v40 = vmax.f32 %v1248_v33, 0.0  ;;  %v2120_v42 = vmax.f32 %v1592_v34, 0.0 }
 0x1ca   :  { %v6011_v38 = vpop.f32.mrf.mxu1  ;;  %6154 = vmatmul.mubr.f32.gmra.mxu1 %v1374_v30  ;;  %6225 = vmatmul.mubr.f32.gmra.mxu0 %v2118_v32 }
 0x1cb   :  { %v1375_v43 = vmax.f32 %v1243_v37, 0.0  ;;  %v2119_v39 = vmax.f32 %v1587_v31, 0.0  ;;  %6403 = vmatpush3.msra.mxu0 %v8021_v22  ;;  %v1602_v44 = vadd.f32 %v6011_v38, %v7997_v51  ;;  %6632 = vmatpush3.msra.mxu1 %v3065_v11 }
 0x1cc   :  { %v1596_v45 = vpop.f32.mrf.mxu1  ;;  %6404 = vmatprep.subr.mxu0 %v8052_v3 }
 0x1cd   :  { %v1597_v62 = vadd.f32 %v7997_v51, %v1596_v45  ;;  %6156 = vmatprep.mubr.f32.mxu1 %v1375_v43  ;;  %6227 = vmatprep.mubr.f32.mxu0 %v2119_v39  ;;  %v2122_v47 = vmax.f32 %v1602_v44, 0.0 }
 0x1ce   :  { %v6014_v52 = vpop.f32.mrf.mxu1  ;;  %6157 = vmatmul.mubr.f32.gmra.mxu1 %v1376_v40  ;;  %6228 = vmatmul.mubr.f32.gmra.mxu0 %v2120_v42 }
 0x1cf   :  { %v2121_v46 = vmax.f32 %v1597_v62, 0.0  ;;  %6405 = vmatpush3.msra.mxu0 %v8052_v3  ;;  %v1612_v22 = vadd.f32 %v6014_v52, %v7997_v51 }
 0x1d0   :  { %v1606_v49 = vpop.f32.mrf.mxu1  ;;  %6406 = vmatprep.subr.mxu0 %v8083_v48 }
 0x1d1   :  { %v1607_v50 = vadd.f32 %v7997_v51, %v1606_v49  ;;  %6230 = vmatprep.mubr.f32.mxu0 %v2121_v46  ;;  %6407 = vmatpush3.msra.mxu0 %v8083_v48  ;;  %v2124_v3 = vmax.f32 %v1612_v22, 0.0 }
 0x1d2   :  { %v6017_v58 = vpop.f32.mrf.mxu1  ;;  %6231 = vmatmul.mubr.f32.gmra.mxu0 %v2122_v47  ;;  %6408 = vmatprep.subr.mxu0 %v3066_v53 }
 0x1d3   :  { %v2123_v54 = vmax.f32 %v1607_v50, 0.0  ;;  %v1622_v55 = vadd.f32 %v6017_v58, %v7997_v51  ;;  %6409 = vmatpush3.msra.mxu0 %v3066_v53 }
 0x1d4   :  { %v1616_v56 = vpop.f32.mrf.mxu1  ;;  %6410 = vmatprep.subr.mxu0 %v3065_v11 }
 0x1d5   :  { %v1617_v57 = vadd.f32 %v7997_v51, %v1616_v56  ;;  %6233 = vmatprep.mubr.f32.mxu0 %v2123_v54  ;;  %v2126_v61 = vmax.f32 %v1622_v55, 0.0  ;;  %6411 = vmatpush3.msra.mxu0 %v3065_v11 }
 0x1d6   :  { %v6020_v59 = vpop.f32.mrf.mxu1  ;;  %6234 = vmatmul.mubr.f32.gmra.mxu0 %v2124_v3 }
 0x1d7   :  { %v2125_v60 = vmax.f32 %v1617_v57, 0.0  ;;  %v1632_v15 = vadd.f32 %v6020_v59, %v7997_v51 }
 0x1d8   :  { %v1626_v63 = vpop.f32.mrf.mxu1 }
 0x1d9   :  { %v1627_v0 = vadd.f32 %v7997_v51, %v1626_v63  ;;  %6236 = vmatprep.mubr.f32.mxu0 %v2125_v60  ;;  %v2128_v2 = vmax.f32 %v1632_v15, 0.0 }
 0x1da   :  { %v6023_v1 = vpop.f32.mrf.mxu1  ;;  %6237 = vmatmul.mubr.f32.gmra.mxu0 %v2126_v61 }
 0x1db   :  { %v2127_v23 = vmax.f32 %v1627_v0, 0.0  ;;  %v1642_v5 = vadd.f32 %v6023_v1, %v7997_v51 }
 0x1dc   :  { %v1636_v6 = vpop.f32.mrf.mxu1 }
 0x1dd   :  { %v1637_v4 = vadd.f32 %v7997_v51, %v1636_v6  ;;  %6239 = vmatprep.mubr.f32.mxu0 %v2127_v23  ;;  %v2130_v9 = vmax.f32 %v1642_v5, 0.0 }
 0x1de   :  { %v6026_v7 = vpop.f32.mrf.mxu1  ;;  %6240 = vmatmul.mubr.f32.gmra.mxu0 %v2128_v2 }
 0x1df   :  { %v2129_v8 = vmax.f32 %v1637_v4, 0.0  ;;  %v1652_v10 = vadd.f32 %v6026_v7, %v7997_v51 }
 0x1e0   :  { %v1646_v41 = vpop.f32.mrf.mxu1 }
 0x1e1   :  { %v1647_v48 = vadd.f32 %v7997_v51, %v1646_v41  ;;  %6242 = vmatprep.mubr.f32.mxu0 %v2129_v8  ;;  %v2132_v16 = vmax.f32 %v1652_v10, 0.0 }
 0x1e2   :  { %v6029_v12 = vpop.f32.mrf.mxu1  ;;  %6243 = vmatmul.mubr.f32.gmra.mxu0 %v2130_v9 }
 0x1e3   :  { %v2131_v14 = vmax.f32 %v1647_v48, 0.0  ;;  %v1662_v17 = vadd.f32 %v6029_v12, %v7997_v51 }
 0x1e4   :  { %v1656_v18 = vpop.f32.mrf.mxu1 }
 0x1e5   :  { %v1657_v19 = vadd.f32 %v7997_v51, %v1656_v18  ;;  %6245 = vmatprep.mubr.f32.mxu0 %v2131_v14  ;;  %v2134_v24 = vmax.f32 %v1662_v17, 0.0 }
 0x1e6   :  { %v6032_v20 = vpop.f32.mrf.mxu1  ;;  %6246 = vmatmul.mubr.f32.gmra.mxu0 %v2132_v16 }
 0x1e7   :  { %v2133_v21 = vmax.f32 %v1657_v19, 0.0  ;;  %v1672_v25 = vadd.f32 %v6032_v20, %v7997_v51 }
 0x1e8   :  { %v1666_v26 = vpop.f32.mrf.mxu1 }
 0x1e9   :  { %v1667_v27 = vadd.f32 %v7997_v51, %v1666_v26  ;;  %6248 = vmatprep.mubr.f32.mxu0 %v2133_v21  ;;  %v2136_v29 = vmax.f32 %v1672_v25, 0.0 }
 0x1ea   :  { %v6035_v13 = vpop.f32.mrf.mxu1  ;;  %6249 = vmatmul.mubr.f32.gmra.mxu0 %v2134_v24 }
 0x1eb   :  { %v2135_v28 = vmax.f32 %v1667_v27, 0.0  ;;  %v1682_v30 = vadd.f32 %v6035_v13, %v7997_v51 }
 0x1ec   :  { %v1676_v32 = vpop.f32.mrf.mxu1 }
 0x1ed   :  { %v1677_v33 = vadd.f32 %v7997_v51, %v1676_v32  ;;  %6251 = vmatprep.mubr.f32.mxu0 %v2135_v28  ;;  %v2138_v36 = vmax.f32 %v1682_v30, 0.0 }
 0x1ee   :  { %v6038_v34 = vpop.f32.mrf.mxu1  ;;  %6252 = vmatmul.mubr.f32.gmra.mxu0 %v2136_v29 }
 0x1ef   :  { %v2137_v35 = vmax.f32 %v1677_v33, 0.0  ;;  %v1692_v37 = vadd.f32 %v6038_v34, %v7997_v51 }
 0x1f0   :  { %v1686_v31 = vpop.f32.mrf.mxu1 }
 0x1f1   :  { %v1687_v38 = vadd.f32 %v7997_v51, %v1686_v31  ;;  %6254 = vmatprep.mubr.f32.mxu0 %v2137_v35  ;;  %v2140_v40 = vmax.f32 %v1692_v37, 0.0 }
 0x1f2   :  { %v6041_v43 = vpop.f32.mrf.mxu1  ;;  %6255 = vmatmul.mubr.f32.gmra.mxu0 %v2138_v36 }
 0x1f3   :  { %v2139_v39 = vmax.f32 %v1687_v38, 0.0  ;;  %v1702_v42 = vadd.f32 %v6041_v43, %v7997_v51 }
 0x1f4   :  { %v1696_v44 = vpop.f32.mrf.mxu1 }
 0x1f5   :  { %v1697_v45 = vadd.f32 %v7997_v51, %v1696_v44  ;;  %6257 = vmatprep.mubr.f32.mxu0 %v2139_v39  ;;  %v2142_v46 = vmax.f32 %v1702_v42, 0.0 }
 0x1f6   :  { %v6044_v62 = vpop.f32.mrf.mxu1  ;;  %6258 = vmatmul.mubr.f32.gmra.mxu0 %v2140_v40 }
 0x1f7   :  { %v2141_v52 = vmax.f32 %v1697_v45, 0.0  ;;  %v1712_v47 = vadd.f32 %v6044_v62, %v7997_v51 }
 0x1f8   :  { %v1706_v22 = vpop.f32.mrf.mxu1 }
 0x1f9   :  { %v1707_v49 = vadd.f32 %v7997_v51, %v1706_v22  ;;  %6260 = vmatprep.mubr.f32.mxu0 %v2141_v52  ;;  %v2144_v58 = vmax.f32 %v1712_v47, 0.0 }
 0x1fa   :  { %v6047_v50 = vpop.f32.mrf.mxu1  ;;  %6261 = vmatmul.mubr.f32.gmra.mxu0 %v2142_v46 }
 0x1fb   :  { %v2143_v53 = vmax.f32 %v1707_v49, 0.0  ;;  %v1722_v54 = vadd.f32 %v6047_v50, %v7997_v51 }
 0x1fc   :  { %v1716_v3 = vpop.f32.mrf.mxu1 }
 0x1fd   :  { %v1717_v55 = vadd.f32 %v7997_v51, %v1716_v3  ;;  %6263 = vmatprep.mubr.f32.mxu0 %v2143_v53  ;;  %v2146_v59 = vmax.f32 %v1722_v54, 0.0 }
 0x1fe   :  { %v6050_v56 = vpop.f32.mrf.mxu1  ;;  %6264 = vmatmul.mubr.f32.gmra.mxu0 %v2144_v58 }
 0x1ff   :  { %v2145_v57 = vmax.f32 %v1717_v55, 0.0  ;;  %v1732_v60 = vadd.f32 %v6050_v56, %v7997_v51 }
 0x200   :  { %v1726_v61 = vpop.f32.mrf.mxu1 }
 0x201   :  { %v1727_v15 = vadd.f32 %v7997_v51, %v1726_v61  ;;  %6266 = vmatprep.mubr.f32.mxu0 %v2145_v57  ;;  %v2148_v1 = vmax.f32 %v1732_v60, 0.0 }
 0x202   :  { %v6053_v63 = vpop.f32.mrf.mxu1  ;;  %6267 = vmatmul.mubr.f32.gmra.mxu0 %v2146_v59 }
 0x203   :  { %v2147_v0 = vmax.f32 %v1727_v15, 0.0  ;;  %v1742_v23 = vadd.f32 %v6053_v63, %v7997_v51 }
 0x204   :  { %v1736_v2 = vpop.f32.mrf.mxu1 }
 0x205   :  { %v1737_v5 = vadd.f32 %v7997_v51, %v1736_v2  ;;  %6269 = vmatprep.mubr.f32.mxu0 %v2147_v0  ;;  %v2150_v7 = vmax.f32 %v1742_v23, 0.0 }
 0x206   :  { %v6056_v6 = vpop.f32.mrf.mxu1  ;;  %6270 = vmatmul.mubr.f32.gmra.mxu0 %v2148_v1 }
 0x207   :  { %v2149_v4 = vmax.f32 %v1737_v5, 0.0  ;;  %v1752_v8 = vadd.f32 %v6056_v6, %v7997_v51 }
 0x208   :  { %v1746_v9 = vpop.f32.mrf.mxu1 }
 0x209   :  { %v1747_v10 = vadd.f32 %v7997_v51, %v1746_v9  ;;  %6272 = vmatprep.mubr.f32.mxu0 %v2149_v4  ;;  %v2152_v11 = vmax.f32 %v1752_v8, 0.0 }
 0x20a   :  { %v6059_v41 = vpop.f32.mrf.mxu1  ;;  %6273 = vmatmul.mubr.f32.gmra.mxu0 %v2150_v7 }
 0x20b   :  { %v2151_v48 = vmax.f32 %v1747_v10, 0.0  ;;  %v1762_v12 = vadd.f32 %v6059_v41, %v7997_v51 }
 0x20c   :  { %v1756_v14 = vpop.f32.mrf.mxu1 }
 0x20d   :  { %v1757_v16 = vadd.f32 %v7997_v51, %v1756_v14  ;;  %6275 = vmatprep.mubr.f32.mxu0 %v2151_v48  ;;  %v2154_v19 = vmax.f32 %v1762_v12, 0.0 }
 0x20e   :  { %v6062_v17 = vpop.f32.mrf.mxu1  ;;  %6276 = vmatmul.mubr.f32.gmra.mxu0 %v2152_v11 }
 0x20f   :  { %v2153_v18 = vmax.f32 %v1757_v16, 0.0  ;;  %v1772_v20 = vadd.f32 %v6062_v17, %v7997_v51 }
 0x210   :  { %v1766_v21 = vpop.f32.mrf.mxu1 }
 0x211   :  { %v1767_v24 = vadd.f32 %v7997_v51, %v1766_v21  ;;  %6278 = vmatprep.mubr.f32.mxu0 %v2153_v18  ;;  %v2156_v27 = vmax.f32 %v1772_v20, 0.0 }
 0x212   :  { %v6065_v25 = vpop.f32.mrf.mxu1  ;;  %6279 = vmatmul.mubr.f32.gmra.mxu0 %v2154_v19 }
 0x213   :  { %v2155_v26 = vmax.f32 %v1767_v24, 0.0  ;;  %v1782_v13 = vadd.f32 %v6065_v25, %v7997_v51 }
 0x214   :  { %v1776_v28 = vpop.f32.mrf.mxu1 }
 0x215   :  { %v1777_v29 = vadd.f32 %v7997_v51, %v1776_v28  ;;  %6281 = vmatprep.mubr.f32.mxu0 %v2155_v26  ;;  %v2158_v33 = vmax.f32 %v1782_v13, 0.0 }
 0x216   :  { %v6068_v30 = vpop.f32.mrf.mxu1  ;;  %6282 = vmatmul.mubr.f32.gmra.mxu0 %v2156_v27 }
 0x217   :  { %v2157_v32 = vmax.f32 %v1777_v29, 0.0  ;;  %v1792_v34 = vadd.f32 %v6068_v30, %v7997_v51 }
 0x218   :  { %v1786_v35 = vpop.f32.mrf.mxu1 }
 0x219   :  { %v1787_v36 = vadd.f32 %v7997_v51, %v1786_v35  ;;  %6284 = vmatprep.mubr.f32.mxu0 %v2157_v32  ;;  %v2160_v38 = vmax.f32 %v1792_v34, 0.0 }
 0x21a   :  { %v6071_v37 = vpop.f32.mrf.mxu1  ;;  %6285 = vmatmul.mubr.f32.gmra.mxu0 %v2158_v33 }
 0x21b   :  { %v2159_v31 = vmax.f32 %v1787_v36, 0.0  ;;  %v1802_v43 = vadd.f32 %v6071_v37, %v7997_v51 }
 0x21c   :  { %v1796_v39 = vpop.f32.mrf.mxu1 }
 0x21d   :  { %v1797_v40 = vadd.f32 %v7997_v51, %v1796_v39  ;;  %6287 = vmatprep.mubr.f32.mxu0 %v2159_v31  ;;  %v2162_v45 = vmax.f32 %v1802_v43, 0.0 }
 0x21e   :  { %v6074_v42 = vpop.f32.mrf.mxu1  ;;  %6288 = vmatmul.mubr.f32.gmra.mxu0 %v2160_v38 }
 0x21f   :  { %v2161_v44 = vmax.f32 %v1797_v40, 0.0  ;;  %v1812_v62 = vadd.f32 %v6074_v42, %v7997_v51 }
 0x220   :  { %v1806_v52 = vpop.f32.mrf.mxu1 }
 0x221   :  { %v1807_v46 = vadd.f32 %v7997_v51, %v1806_v52  ;;  %6290 = vmatprep.mubr.f32.mxu0 %v2161_v44  ;;  %v2164_v49 = vmax.f32 %v1812_v62, 0.0 }
 0x222   :  { %v6077_v47 = vpop.f32.mrf.mxu1  ;;  %6291 = vmatmul.mubr.f32.gmra.mxu0 %v2162_v45 }
 0x223   :  { %v2163_v22 = vmax.f32 %v1807_v46, 0.0  ;;  %v1822_v50 = vadd.f32 %v6077_v47, %v7997_v51  ;;  %v8177_v47 = vld [vmem:[%s10452_s4] ss:$0 sm:$0xff] }
 0x224   :  { %v1816_v53 = vpop.f32.mrf.mxu1 }
 0x225   :  { %v1817_v58 = vadd.f32 %v7997_v51, %v1816_v53  ;;  %6293 = vmatprep.mubr.f32.mxu0 %v2163_v22  ;;  %v2166_v55 = vmax.f32 %v1822_v50, 0.0 }
 0x226   :  { %v6080_v54 = vpop.f32.mrf.mxu1  ;;  %6294 = vmatmul.mubr.f32.gmra.mxu0 %v2164_v49 }
 0x227   :  { %v2165_v3 = vmax.f32 %v1817_v58, 0.0  ;;  %v1832_v56 = vadd.f32 %v6080_v54, %v7997_v51 }
 0x228   :  { %v1826_v57 = vpop.f32.mrf.mxu1 }
 0x229   :  { %v1827_v59 = vadd.f32 %v7997_v51, %v1826_v57  ;;  %6296 = vmatprep.mubr.f32.mxu0 %v2165_v3  ;;  %v2168_v15 = vmax.f32 %v1832_v56, 0.0 }
 0x22a   :  { %v6083_v60 = vpop.f32.mrf.mxu1  ;;  %6297 = vmatmul.mubr.f32.gmra.mxu0 %v2166_v55 }
 0x22b   :  { %v2167_v61 = vmax.f32 %v1827_v59, 0.0  ;;  %v1842_v63 = vadd.f32 %v6083_v60, %v7997_v51 }
 0x22c   :  { %v1836_v0 = vpop.f32.mrf.mxu1 }
 0x22d   :  { %v1837_v1 = vadd.f32 %v7997_v51, %v1836_v0  ;;  %6299 = vmatprep.mubr.f32.mxu0 %v2167_v61  ;;  %v2170_v5 = vmax.f32 %v1842_v63, 0.0 }
 0x22e   :  { %v6086_v23 = vpop.f32.mrf.mxu1  ;;  %6300 = vmatmul.mubr.f32.gmra.mxu0 %v2168_v15 }
 0x22f   :  { %v2169_v2 = vmax.f32 %v1837_v1, 0.0  ;;  %v1852_v6 = vadd.f32 %v6086_v23, %v7997_v51 }
 0x230   :  { %v1846_v4 = vpop.f32.mrf.mxu1 }
 0x231   :  { %v1847_v7 = vadd.f32 %v7997_v51, %v1846_v4  ;;  %6302 = vmatprep.mubr.f32.mxu0 %v2169_v2  ;;  %v2172_v10 = vmax.f32 %v1852_v6, 0.0 }
 0x232   :  { %v6089_v8 = vpop.f32.mrf.mxu1  ;;  %6303 = vmatmul.mubr.f32.gmra.mxu0 %v2170_v5 }
 0x233   :  { %v2171_v9 = vmax.f32 %v1847_v7, 0.0  ;;  %v1862_v41 = vadd.f32 %v6089_v8, %v7997_v51 }
 0x234   :  { %v1856_v48 = vpop.f32.mrf.mxu1 }
 0x235   :  { %v1857_v11 = vadd.f32 %v7997_v51, %v1856_v48  ;;  %6305 = vmatprep.mubr.f32.mxu0 %v2171_v9  ;;  %v2174_v16 = vmax.f32 %v1862_v41, 0.0 }
 0x236   :  { %v6092_v12 = vpop.f32.mrf.mxu1  ;;  %6306 = vmatmul.mubr.f32.gmra.mxu0 %v2172_v10 }
 0x237   :  { %v2173_v14 = vmax.f32 %v1857_v11, 0.0  ;;  %v1872_v17 = vadd.f32 %v6092_v12, %v7997_v51 }
 0x238   :  { %v1866_v18 = vpop.f32.mrf.mxu1 }
 0x239   :  { %v1867_v19 = vadd.f32 %v7997_v51, %v1866_v18  ;;  %6308 = vmatprep.mubr.f32.mxu0 %v2173_v14  ;;  %v2176_v24 = vmax.f32 %v1872_v17, 0.0 }
 0x23a   :  { %v6095_v20 = vpop.f32.mrf.mxu1  ;;  %6309 = vmatmul.mubr.f32.gmra.mxu0 %v2174_v16 }
 0x23b   :  { %v2175_v21 = vmax.f32 %v1867_v19, 0.0  ;;  %v1882_v25 = vadd.f32 %v6095_v20, %v7997_v51 }
 0x23c   :  { %v1876_v26 = vpop.f32.mrf.mxu1 }
 0x23d   :  { %v1877_v27 = vadd.f32 %v7997_v51, %v1876_v26  ;;  %6311 = vmatprep.mubr.f32.mxu0 %v2175_v21  ;;  %v2178_v29 = vmax.f32 %v1882_v25, 0.0 }
 0x23e   :  { %v6098_v13 = vpop.f32.mrf.mxu1  ;;  %6312 = vmatmul.mubr.f32.gmra.mxu0 %v2176_v24 }
 0x23f   :  { %v2177_v28 = vmax.f32 %v1877_v27, 0.0  ;;  %v1892_v30 = vadd.f32 %v6098_v13, %v7997_v51 }
 0x240   :  { %v1886_v32 = vpop.f32.mrf.mxu1 }
 0x241   :  { %v1887_v33 = vadd.f32 %v7997_v51, %v1886_v32  ;;  %6314 = vmatprep.mubr.f32.mxu0 %v2177_v28  ;;  %v2180_v36 = vmax.f32 %v1892_v30, 0.0  ;;  %v8204_v30 = vld [vmem:[%s10453_s6] ss:$0 sm:$0xff] }
 0x242   :  { %v6101_v34 = vpop.f32.mrf.mxu1  ;;  %6315 = vmatmul.mubr.f32.gmra.mxu0 %v2178_v29 }
 0x243   :  { %v2179_v35 = vmax.f32 %v1887_v33, 0.0  ;;  %v1902_v37 = vadd.f32 %v6101_v34, %v7997_v51 }
 0x244   :  { %v1896_v31 = vpop.f32.mrf.mxu1 }
 0x245   :  { %v1897_v38 = vadd.f32 %v7997_v51, %v1896_v31  ;;  %6317 = vmatprep.mubr.f32.mxu0 %v2179_v35  ;;  %v2182_v40 = vmax.f32 %v1902_v37, 0.0 }
 0x246   :  { %v6104_v43 = vpop.f32.mrf.mxu1  ;;  %6318 = vmatmul.mubr.f32.gmra.mxu0 %v2180_v36 }
 0x247   :  { %v2181_v39 = vmax.f32 %v1897_v38, 0.0  ;;  %v1912_v42 = vadd.f32 %v6104_v43, %v7997_v51 }
 0x248   :  { %v1906_v44 = vpop.f32.mrf.mxu1 }
 0x249   :  { %v1907_v45 = vadd.f32 %v7997_v51, %v1906_v44  ;;  %6320 = vmatprep.mubr.f32.mxu0 %v2181_v39  ;;  %v2184_v46 = vmax.f32 %v1912_v42, 0.0 }
 0x24a   :  { %v6107_v62 = vpop.f32.mrf.mxu1  ;;  %6321 = vmatmul.mubr.f32.gmra.mxu0 %v2182_v40 }
 0x24b   :  { %v2183_v52 = vmax.f32 %v1907_v45, 0.0  ;;  %v1922_v22 = vadd.f32 %v8177_v47, %v6107_v62 }
 0x24c   :  { %v1916_v49 = vpop.f32.mrf.mxu1 }
 0x24d   :  { %v1917_v50 = vadd.f32 %v8177_v47, %v1916_v49  ;;  %6323 = vmatprep.mubr.f32.mxu0 %v2183_v52  ;;  %v2186_v51 = vmax.f32 %v1922_v22, 0.0 }
 0x24e   :  { %v6110_v53 = vpop.f32.mrf.mxu1  ;;  %6324 = vmatmul.mubr.f32.gmra.mxu0 %v2184_v46 }
 0x24f   :  { %v2185_v58 = vmax.f32 %v1917_v50, 0.0  ;;  %v1932_v54 = vadd.f32 %v8177_v47, %v6110_v53 }
 0x250   :  { %v1926_v3 = vpop.f32.mrf.mxu1 }
 0x251   :  { %v1927_v55 = vadd.f32 %v8177_v47, %v1926_v3  ;;  %6326 = vmatprep.mubr.f32.mxu0 %v2185_v58  ;;  %v2188_v59 = vmax.f32 %v1932_v54, 0.0 }
 0x252   :  { %v6113_v56 = vpop.f32.mrf.mxu1  ;;  %6327 = vmatmul.mubr.f32.gmra.mxu0 %v2186_v51 }
 0x253   :  { %v2187_v57 = vmax.f32 %v1927_v55, 0.0  ;;  %v1942_v60 = vadd.f32 %v8177_v47, %v6113_v56 }
 0x254   :  { %v1936_v61 = vpop.f32.mrf.mxu1 }
 0x255   :  { %v1937_v15 = vadd.f32 %v8177_v47, %v1936_v61  ;;  %6329 = vmatprep.mubr.f32.mxu0 %v2187_v57  ;;  %v2190_v1 = vmax.f32 %v1942_v60, 0.0 }
 0x256   :  { %v6116_v63 = vpop.f32.mrf.mxu1  ;;  %6330 = vmatmul.mubr.f32.gmra.mxu0 %v2188_v59 }
 0x257   :  { %v2189_v0 = vmax.f32 %v1937_v15, 0.0  ;;  %v1952_v23 = vadd.f32 %v8177_v47, %v6116_v63 }
 0x258   :  { %v1946_v2 = vpop.f32.mrf.mxu1 }
 0x259   :  { %v1947_v5 = vadd.f32 %v8177_v47, %v1946_v2  ;;  %6332 = vmatprep.mubr.f32.mxu0 %v2189_v0  ;;  %v2192_v7 = vmax.f32 %v1952_v23, 0.0 }
 0x25a   :  { %v6119_v6 = vpop.f32.mrf.mxu1  ;;  %6333 = vmatmul.mubr.f32.gmra.mxu0 %v2190_v1 }
 0x25b   :  { %v2191_v4 = vmax.f32 %v1947_v5, 0.0  ;;  %v1962_v8 = vadd.f32 %v8177_v47, %v6119_v6 }
 0x25c   :  { %v1956_v9 = vpop.f32.mrf.mxu1 }
 0x25d   :  { %v1957_v10 = vadd.f32 %v8177_v47, %v1956_v9  ;;  %6335 = vmatprep.mubr.f32.mxu0 %v2191_v4  ;;  %v2194_v12 = vmax.f32 %v1962_v8, 0.0 }
 0x25e   :  { %v6122_v41 = vpop.f32.mrf.mxu1  ;;  %v8189_v48 = vpop.f32.mrf.mxu0  ;;  %6336 = vmatmul.mubr.f32.gmra.mxu0 %v2192_v7 }
 0x25f   :  { %v2193_v11 = vmax.f32 %v1957_v10, 0.0  ;;  %v1972_v14 = vadd.f32 %v8177_v47, %v6122_v41 }
 0x260   :  { %v1966_v16 = vpop.f32.mrf.mxu1  ;;  %v8192_v17 = vpop.f32.mrf.mxu0 }
 0x261   :  { %v1967_v18 = vadd.f32 %v8177_v47, %v1966_v16  ;;  %6338 = vmatprep.mubr.f32.mxu0 %v2193_v11  ;;  %v2196_v24 = vmax.f32 %v1972_v14, 0.0 }
 0x262   :  { %v6125_v19 = vpop.f32.mrf.mxu1  ;;  %v8195_v20 = vpop.f32.mrf.mxu0  ;;  %6339 = vmatmul.mubr.f32.gmra.mxu0 %v2194_v12 }
 0x263   :  { %v2195_v21 = vmax.f32 %v1967_v18, 0.0  ;;  %v1982_v25 = vadd.f32 %v8177_v47, %v6125_v19 }
 0x264   :  { %v1976_v26 = vpop.f32.mrf.mxu1  ;;  %v8198_v27 = vpop.f32.mrf.mxu0 }
 0x265   :  { %v1977_v13 = vadd.f32 %v8177_v47, %v1976_v26  ;;  %6341 = vmatprep.mubr.f32.mxu0 %v2195_v21  ;;  %v2198_v33 = vmax.f32 %v1982_v25, 0.0 }
 0x266   :  { %v6128_v28 = vpop.f32.mrf.mxu1  ;;  %v6199_v29 = vpop.f32.mrf.mxu0  ;;  %6342 = vmatmul.mubr.f32.gmra.mxu0 %v2196_v24 }
 0x267   :  { %v2197_v32 = vmax.f32 %v1977_v13, 0.0  ;;  %v1992_v34 = vadd.f32 %v8177_v47, %v6128_v28  ;;  %v2336_v35 = vadd.f32 %v6199_v29, %v8204_v30 }
 0x268   :  { %v1986_v36 = vpop.f32.mrf.mxu1  ;;  %v2330_v37 = vpop.f32.mrf.mxu0 }
 0x269   :  { %v1987_v31 = vadd.f32 %v8177_v47, %v1986_v36  ;;  %v2331_v38 = vadd.f32 %v8204_v30, %v2330_v37  ;;  %6344 = vmatprep.mubr.f32.mxu0 %v2197_v32  ;;  %v2200_v44 = vmax.f32 %v1992_v34, 0.0  ;;  %v2944_v45 = vmax.f32 %v2336_v35, 0.0 }
 0x26a   :  { %v6131_v43 = vpop.f32.mrf.mxu1  ;;  %v6202_v39 = vpop.f32.mrf.mxu0  ;;  %6345 = vmatmul.mubr.f32.gmra.mxu0 %v2198_v33 }
 0x26b   :  { %v2199_v40 = vmax.f32 %v1987_v31, 0.0  ;;  %v2943_v42 = vmax.f32 %v2331_v38, 0.0  ;;  %v2002_v62 = vadd.f32 %v8177_v47, %v6131_v43  ;;  %v2346_v52 = vadd.f32 %v6202_v39, %v8204_v30 }
 0x26c   :  { %v1996_v46 = vpop.f32.mrf.mxu1  ;;  %v2340_v22 = vpop.f32.mrf.mxu0 }
 0x26d   :  { %v1997_v49 = vadd.f32 %v8177_v47, %v1996_v46  ;;  %v2341_v50 = vadd.f32 %v8204_v30, %v2340_v22  ;;  %6347 = vmatprep.mubr.f32.mxu0 %v2199_v40  ;;  %6418 = vmatprep.mubr.f32.mxu1 %v2943_v42  ;;  %v2202_v3 = vmax.f32 %v2002_v62, 0.0  ;;  %v2946_v55 = vmax.f32 %v2346_v52, 0.0 }
 0x26e   :  { %v6134_v53 = vpop.f32.mrf.mxu1  ;;  %v6205_v58 = vpop.f32.mrf.mxu0  ;;  %6348 = vmatmul.mubr.f32.gmra.mxu0 %v2200_v44  ;;  %6419 = vmatmul.mubr.f32.vlgmr.msra.gmra.mxu1 %v2944_v45 }
 0x26f   :  { %v2201_v51 = vmax.f32 %v1997_v49, 0.0  ;;  %v2945_v54 = vmax.f32 %v2341_v50, 0.0  ;;  %v2012_v56 = vadd.f32 %v8177_v47, %v6134_v53  ;;  %v2356_v57 = vadd.f32 %v6205_v58, %v8204_v30 }
 0x270   :  { %v2006_v59 = vpop.f32.mrf.mxu1  ;;  %v2350_v60 = vpop.f32.mrf.mxu0 }
 0x271   :  { %v2007_v61 = vadd.f32 %v8177_v47, %v2006_v59  ;;  %v2351_v15 = vadd.f32 %v8204_v30, %v2350_v60  ;;  %6350 = vmatprep.mubr.f32.mxu0 %v2201_v51  ;;  %6421 = vmatprep.mubr.f32.mxu1 %v2945_v54  ;;  %v2204_v2 = vmax.f32 %v2012_v56, 0.0  ;;  %v2948_v5 = vmax.f32 %v2356_v57, 0.0 }
 0x272   :  { %v6137_v63 = vpop.f32.mrf.mxu1  ;;  %v6208_v0 = vpop.f32.mrf.mxu0  ;;  %6351 = vmatmul.mubr.f32.gmra.mxu0 %v2202_v3  ;;  %6422 = vmatmul.mubr.f32.gmra.mxu1 %v2946_v55 }
 0x273   :  { %v2203_v1 = vmax.f32 %v2007_v61, 0.0  ;;  %v2947_v23 = vmax.f32 %v2351_v15, 0.0  ;;  %v2022_v6 = vadd.f32 %v8177_v47, %v6137_v63  ;;  %v2366_v4 = vadd.f32 %v6208_v0, %v8204_v30 }
 0x274   :  { %v2016_v7 = vpop.f32.mrf.mxu1  ;;  %v2360_v8 = vpop.f32.mrf.mxu0 }
 0x275   :  { %v2017_v9 = vadd.f32 %v8177_v47, %v2016_v7  ;;  %v2361_v10 = vadd.f32 %v8204_v30, %v2360_v8  ;;  %6353 = vmatprep.mubr.f32.mxu0 %v2203_v1  ;;  %6424 = vmatprep.mubr.f32.mxu1 %v2947_v23  ;;  %v2206_v16 = vmax.f32 %v2022_v6, 0.0  ;;  %v2950_v18 = vmax.f32 %v2366_v4, 0.0 }
 0x276   :  { %v6140_v41 = vpop.f32.mrf.mxu1  ;;  %v6211_v11 = vpop.f32.mrf.mxu0  ;;  %6354 = vmatmul.mubr.f32.gmra.mxu0 %v2204_v2  ;;  %6425 = vmatmul.mubr.f32.gmra.mxu1 %v2948_v5 }
 0x277   :  { %v2205_v12 = vmax.f32 %v2017_v9, 0.0  ;;  %v2949_v14 = vmax.f32 %v2361_v10, 0.0  ;;  %v2032_v19 = vadd.f32 %v8177_v47, %v6140_v41  ;;  %v2376_v21 = vadd.f32 %v6211_v11, %v8204_v30 }
 0x278   :  { %v2026_v24 = vpop.f32.mrf.mxu1  ;;  %v2370_v25 = vpop.f32.mrf.mxu0 }
 0x279   :  { %v2027_v26 = vadd.f32 %v8177_v47, %v2026_v24  ;;  %v2371_v13 = vadd.f32 %v8204_v30, %v2370_v25  ;;  %6356 = vmatprep.mubr.f32.mxu0 %v2205_v12  ;;  %6427 = vmatprep.mubr.f32.mxu1 %v2949_v14  ;;  %v2208_v34 = vmax.f32 %v2032_v19, 0.0  ;;  %v2952_v35 = vmax.f32 %v2376_v21, 0.0 }
 0x27a   :  { %v6143_v28 = vpop.f32.mrf.mxu1  ;;  %v6214_v29 = vpop.f32.mrf.mxu0  ;;  %6357 = vmatmul.mubr.f32.gmra.mxu0 %v2206_v16  ;;  %6428 = vmatmul.mubr.f32.gmra.mxu1 %v2950_v18 }
 0x27b   :  { %v2207_v32 = vmax.f32 %v2027_v26, 0.0  ;;  %v2951_v33 = vmax.f32 %v2371_v13, 0.0  ;;  %v2042_v36 = vadd.f32 %v8177_v47, %v6143_v28  ;;  %v2386_v37 = vadd.f32 %v6214_v29, %v8204_v30 }
 0x27c   :  { %v2036_v31 = vpop.f32.mrf.mxu1  ;;  %v2380_v38 = vpop.f32.mrf.mxu0 }
 0x27d   :  { %v2037_v43 = vadd.f32 %v8177_v47, %v2036_v31  ;;  %v2381_v39 = vadd.f32 %v8204_v30, %v2380_v38  ;;  %6359 = vmatprep.mubr.f32.mxu0 %v2207_v32  ;;  %6430 = vmatprep.mubr.f32.mxu1 %v2951_v33  ;;  %v2210_v62 = vmax.f32 %v2042_v36, 0.0  ;;  %v2954_v52 = vmax.f32 %v2386_v37, 0.0 }
 0x27e   :  { %v6146_v40 = vpop.f32.mrf.mxu1  ;;  %v6217_v42 = vpop.f32.mrf.mxu0  ;;  %6360 = vmatmul.mubr.f32.gmra.mxu0 %v2208_v34  ;;  %6431 = vmatmul.mubr.f32.gmra.mxu1 %v2952_v35 }
 0x27f   :  { %v2209_v44 = vmax.f32 %v2037_v43, 0.0  ;;  %v2953_v45 = vmax.f32 %v2381_v39, 0.0  ;;  %v2052_v46 = vadd.f32 %v8177_v47, %v6146_v40  ;;  %v2396_v22 = vadd.f32 %v6217_v42, %v8204_v30 }
 0x280   :  { %v2046_v49 = vpop.f32.mrf.mxu1  ;;  %v2390_v50 = vpop.f32.mrf.mxu0  ;;  %v2311_v40 = vadd.f32 %v8204_v30, %v8192_v17 }
 0x281   :  { %v2047_v53 = vadd.f32 %v8177_v47, %v2046_v49  ;;  %v2391_v58 = vadd.f32 %v8204_v30, %v2390_v50  ;;  %6362 = vmatprep.mubr.f32.mxu0 %v2209_v44  ;;  %6433 = vmatprep.mubr.f32.mxu1 %v2953_v45  ;;  %v2212_v56 = vmax.f32 %v2052_v46, 0.0  ;;  %v2956_v57 = vmax.f32 %v2396_v22, 0.0 }
 0x282   :  { %v6149_v51 = vpop.f32.mrf.mxu1  ;;  %v6220_v54 = vpop.f32.mrf.mxu0  ;;  %6363 = vmatmul.mubr.f32.gmra.mxu0 %v2210_v62  ;;  %6434 = vmatmul.mubr.f32.gmra.mxu1 %v2954_v52  ;;  %v2316_v46 = vadd.f32 %v8189_v48, %v8204_v30  ;;  %v2939_v17 = vmax.f32 %v2311_v40, 0.0  ;;  %v2326_v48 = vadd.f32 %v8195_v20, %v8204_v30 }
 0x283   :  { %v2211_v3 = vmax.f32 %v2047_v53, 0.0  ;;  %v2955_v55 = vmax.f32 %v2391_v58, 0.0  ;;  %v2062_v59 = vadd.f32 %v8177_v47, %v6149_v51  ;;  %v2406_v60 = vadd.f32 %v6220_v54, %v8204_v30 }
 0x284   :  { %v2056_v61 = vpop.f32.mrf.mxu1  ;;  %v2400_v15 = vpop.f32.mrf.mxu0 }
 0x285   :  { %v2057_v63 = vadd.f32 %v8177_v47, %v2056_v61  ;;  %v2401_v0 = vadd.f32 %v8204_v30, %v2400_v15  ;;  %6365 = vmatprep.mubr.f32.mxu0 %v2211_v3  ;;  %6436 = vmatprep.mubr.f32.mxu1 %v2955_v55  ;;  %v2214_v6 = vmax.f32 %v2062_v59, 0.0  ;;  %v2958_v4 = vmax.f32 %v2406_v60, 0.0 }
 0x286   :  { %v6152_v1 = vpop.f32.mrf.mxu1  ;;  %v6223_v23 = vpop.f32.mrf.mxu0  ;;  %6366 = vmatmul.mubr.f32.gmra.mxu0 %v2212_v56  ;;  %6437 = vmatmul.mubr.f32.gmra.mxu1 %v2956_v57  ;;  %v2940_v3 = vmax.f32 %v2316_v46, 0.0  ;;  %v2942_v15 = vmax.f32 %v2326_v48, 0.0 }
 0x287   :  { %v2213_v2 = vmax.f32 %v2057_v63, 0.0  ;;  %v2957_v5 = vmax.f32 %v2401_v0, 0.0  ;;  %v2072_v7 = vadd.f32 %v8177_v47, %v6152_v1  ;;  %v2416_v8 = vadd.f32 %v6223_v23, %v8204_v30 }
 0x288   :  { %v2066_v9 = vpop.f32.mrf.mxu1  ;;  %v2410_v10 = vpop.f32.mrf.mxu0 }
 0x289   :  { %v2067_v41 = vadd.f32 %v8177_v47, %v2066_v9  ;;  %v2411_v11 = vadd.f32 %v8204_v30, %v2410_v10  ;;  %6368 = vmatprep.mubr.f32.mxu0 %v2213_v2  ;;  %6439 = vmatprep.mubr.f32.mxu1 %v2957_v5  ;;  %v2216_v19 = vmax.f32 %v2072_v7, 0.0  ;;  %v2960_v21 = vmax.f32 %v2416_v8, 0.0 }
 0x28a   :  { %v6155_v12 = vpop.f32.mrf.mxu1  ;;  %v6226_v14 = vpop.f32.mrf.mxu0  ;;  %6369 = vmatmul.mubr.f32.gmra.mxu0 %v2214_v6  ;;  %6440 = vmatmul.mubr.f32.gmra.mxu1 %v2958_v4 }
 0x28b   :  { %v2215_v16 = vmax.f32 %v2067_v41, 0.0  ;;  %v2959_v18 = vmax.f32 %v2411_v11, 0.0  ;;  %v2082_v24 = vadd.f32 %v8177_v47, %v6155_v12  ;;  %v2426_v25 = vadd.f32 %v6226_v14, %v8204_v30 }
 0x28c   :  { %v2076_v26 = vpop.f32.mrf.mxu1  ;;  %v2420_v13 = vpop.f32.mrf.mxu0 }
 0x28d   :  { %v2077_v28 = vadd.f32 %v8177_v47, %v2076_v26  ;;  %v2421_v29 = vadd.f32 %v8204_v30, %v2420_v13  ;;  %6371 = vmatprep.mubr.f32.mxu0 %v2215_v16  ;;  %6442 = vmatprep.mubr.f32.mxu1 %v2959_v18  ;;  %v2218_v36 = vmax.f32 %v2082_v24, 0.0  ;;  %v2962_v37 = vmax.f32 %v2426_v25, 0.0 }
 0x28e   :  { %v6158_v32 = vpop.f32.mrf.mxu1  ;;  %v6229_v33 = vpop.f32.mrf.mxu0  ;;  %6372 = vmatmul.mubr.f32.gmra.mxu0 %v2216_v19  ;;  %6443 = vmatmul.mubr.f32.gmra.mxu1 %v2960_v21  ;;  %v14_v16 = vstv %s10454_s8 }
 0x28f   :  { %v2217_v34 = vmax.f32 %v2077_v28, 0.0  ;;  %v2961_v35 = vmax.f32 %v2421_v29, 0.0  ;;  %v2092_v31 = vadd.f32 %v8177_v47, %v6158_v32  ;;  %v2436_v38 = vadd.f32 %v6229_v33, %v8204_v30  ;;  %15 = vst [vmem:[#allocation2] sm:$0x1] %v14_v16 }
 0x290   :  { %v2086_v43 = vpop.f32.mrf.mxu1  ;;  %v2430_v39 = vpop.f32.mrf.mxu0 }
 0x291   :  { %v2087_v42 = vadd.f32 %v8177_v47, %v2086_v43  ;;  %v2431_v44 = vadd.f32 %v8204_v30, %v2430_v39  ;;  %6374 = vmatprep.mubr.f32.mxu0 %v2217_v34  ;;  %6445 = vmatprep.mubr.f32.mxu1 %v2961_v35  ;;  %v2220_v22 = vmax.f32 %v2092_v31, 0.0  ;;  %v2964_v49 = vmax.f32 %v2436_v38, 0.0 }
 0x292   :  { %v6232_v45 = vpop.f32.mrf.mxu0  ;;  %6375 = vmatmul.mubr.f32.gmra.mxu0 %v2218_v36  ;;  %6446 = vmatmul.mubr.f32.gmra.mxu1 %v2962_v37  ;;  %v2321_v47 = vadd.f32 %v8204_v30, %v8198_v27 }
 0x293   :  { %v2219_v62 = vmax.f32 %v2087_v42, 0.0  ;;  %v2963_v52 = vmax.f32 %v2431_v44, 0.0  ;;  %v2446_v50 = vadd.f32 %v6232_v45, %v8204_v30 }
 0x294   :  { %v2440_v53 = vpop.f32.mrf.mxu0  ;;  %v2941_v59 = vmax.f32 %v2321_v47, 0.0 }
 0x295   :  { %v2441_v58 = vadd.f32 %v8204_v30, %v2440_v53  ;;  %6377 = vmatprep.mubr.f32.mxu0 %v2219_v62  ;;  %6448 = vmatprep.mubr.f32.mxu1 %v2963_v52  ;;  %v2966_v55 = vmax.f32 %v2446_v50, 0.0 }
 0x296   :  { %v6235_v51 = vpop.f32.mrf.mxu0  ;;  %6378 = vmatmul.mubr.f32.gmra.mxu0 %v2220_v22  ;;  %6449 = vmatmul.mubr.f32.gmra.mxu1 %v2964_v49 }
 0x297   :  { %v2965_v54 = vmax.f32 %v2441_v58, 0.0  ;;  %6412 = vmatprep.mubr.f32.mxu0 %v2939_v17  ;;  %v2456_v56 = vadd.f32 %v6235_v51, %v8204_v30 }
 0x298   :  { %v2450_v57 = vpop.f32.mrf.mxu0 }
 0x299   :  { %v2451_v27 = vadd.f32 %v8204_v30, %v2450_v57  ;;  %6451 = vmatprep.mubr.f32.mxu1 %v2965_v54  ;;  %v2968_v63 = vmax.f32 %v2456_v56, 0.0 }
 0x29a   :  { %v6238_v60 = vpop.f32.mrf.mxu0  ;;  %6413 = vmatmul.mubr.f32.vlgmr.msra.gmra.mxu0 %v2940_v3  ;;  %6452 = vmatmul.mubr.f32.gmra.mxu1 %v2966_v55 }
 0x29b   :  { %v2967_v61 = vmax.f32 %v2451_v27, 0.0  ;;  %6415 = vmatprep.mubr.f32.mxu0 %v2941_v59  ;;  %v2466_v0 = vadd.f32 %v6238_v60, %v8204_v30 }
 0x29c   :  { %v2460_v1 = vpop.f32.mrf.mxu0 }
 0x29d   :  { %v2461_v20 = vadd.f32 %v8204_v30, %v2460_v1  ;;  %6454 = vmatprep.mubr.f32.mxu1 %v2967_v61  ;;  %v2970_v5 = vmax.f32 %v2466_v0, 0.0 }
 0x29e   :  { %v6241_v23 = vpop.f32.mrf.mxu0  ;;  %6416 = vmatmul.mubr.f32.gmra.mxu0 %v2942_v15  ;;  %6455 = vmatmul.mubr.f32.gmra.mxu1 %v2968_v63 }
 0x29f   :  { %v2969_v2 = vmax.f32 %v2461_v20, 0.0  ;;  %v2476_v6 = vadd.f32 %v6241_v23, %v8204_v30 }
 0x2a0   :  { %v2470_v4 = vpop.f32.mrf.mxu0 }
 0x2a1   :  { %v2471_v7 = vadd.f32 %v8204_v30, %v2470_v4  ;;  %6457 = vmatprep.mubr.f32.mxu1 %v2969_v2  ;;  %v2972_v10 = vmax.f32 %v2476_v6, 0.0 }
 0x2a2   :  { %v6244_v8 = vpop.f32.mrf.mxu0  ;;  %6458 = vmatmul.mubr.f32.gmra.mxu1 %v2970_v5 }
 0x2a3   :  { %v2971_v9 = vmax.f32 %v2471_v7, 0.0  ;;  %v2486_v41 = vadd.f32 %v6244_v8, %v8204_v30 }
 0x2a4   :  { %v2480_v11 = vpop.f32.mrf.mxu0 }
 0x2a5   :  { %v2481_v12 = vadd.f32 %v8204_v30, %v2480_v11  ;;  %6460 = vmatprep.mubr.f32.mxu1 %v2971_v9  ;;  %v2974_v19 = vmax.f32 %v2486_v41, 0.0 }
 0x2a6   :  { %v6247_v14 = vpop.f32.mrf.mxu0  ;;  %6461 = vmatmul.mubr.f32.gmra.mxu1 %v2972_v10 }
 0x2a7   :  { %v2973_v18 = vmax.f32 %v2481_v12, 0.0  ;;  %v2496_v21 = vadd.f32 %v6247_v14, %v8204_v30 }
 0x2a8   :  { %v2490_v24 = vpop.f32.mrf.mxu0 }
 0x2a9   :  { %v2491_v25 = vadd.f32 %v8204_v30, %v2490_v24  ;;  %6463 = vmatprep.mubr.f32.mxu1 %v2973_v18  ;;  %v2976_v28 = vmax.f32 %v2496_v21, 0.0 }
 0x2aa   :  { %v6250_v26 = vpop.f32.mrf.mxu0  ;;  %6464 = vmatmul.mubr.f32.gmra.mxu1 %v2974_v19 }
 0x2ab   :  { %v2975_v13 = vmax.f32 %v2491_v25, 0.0  ;;  %v2506_v29 = vadd.f32 %v6250_v26, %v8204_v30 }
 0x2ac   :  { %v2500_v32 = vpop.f32.mrf.mxu0 }
 0x2ad   :  { %v2501_v33 = vadd.f32 %v8204_v30, %v2500_v32  ;;  %6466 = vmatprep.mubr.f32.mxu1 %v2975_v13  ;;  %v2978_v36 = vmax.f32 %v2506_v29, 0.0 }
 0x2ae   :  { %v6253_v34 = vpop.f32.mrf.mxu0  ;;  %6467 = vmatmul.mubr.f32.gmra.mxu1 %v2976_v28 }
 0x2af   :  { %v2977_v35 = vmax.f32 %v2501_v33, 0.0  ;;  %v2516_v37 = vadd.f32 %v6253_v34, %v8204_v30 }
 0x2b0   :  { %v2510_v31 = vpop.f32.mrf.mxu0 }
 0x2b1   :  { %v2511_v38 = vadd.f32 %v8204_v30, %v2510_v31  ;;  %6469 = vmatprep.mubr.f32.mxu1 %v2977_v35  ;;  %v2980_v40 = vmax.f32 %v2516_v37, 0.0 }
 0x2b2   :  { %v6256_v43 = vpop.f32.mrf.mxu0  ;;  %6470 = vmatmul.mubr.f32.gmra.mxu1 %v2978_v36 }
 0x2b3   :  { %v2979_v39 = vmax.f32 %v2511_v38, 0.0  ;;  %v2526_v42 = vadd.f32 %v6256_v43, %v8204_v30 }
 0x2b4   :  { %v2520_v44 = vpop.f32.mrf.mxu0 }
 0x2b5   :  { %v2521_v45 = vadd.f32 %v8204_v30, %v2520_v44  ;;  %6472 = vmatprep.mubr.f32.mxu1 %v2979_v39  ;;  %v2982_v46 = vmax.f32 %v2526_v42, 0.0 }
 0x2b6   :  { %v6259_v62 = vpop.f32.mrf.mxu0  ;;  %6473 = vmatmul.mubr.f32.gmra.mxu1 %v2980_v40 }
 0x2b7   :  { %v2981_v52 = vmax.f32 %v2521_v45, 0.0  ;;  %v2536_v22 = vadd.f32 %v6259_v62, %v8204_v30 }
 0x2b8   :  { %v2530_v49 = vpop.f32.mrf.mxu0 }
 0x2b9   :  { %v2531_v50 = vadd.f32 %v8204_v30, %v2530_v49  ;;  %6475 = vmatprep.mubr.f32.mxu1 %v2981_v52  ;;  %v2984_v47 = vmax.f32 %v2536_v22, 0.0 }
 0x2ba   :  { %v6262_v53 = vpop.f32.mrf.mxu0  ;;  %6476 = vmatmul.mubr.f32.gmra.mxu1 %v2982_v46 }
 0x2bb   :  { %v2983_v17 = vmax.f32 %v2531_v50, 0.0  ;;  %v2546_v58 = vadd.f32 %v6262_v53, %v8204_v30 }
 0x2bc   :  { %v2540_v51 = vpop.f32.mrf.mxu0 }
 0x2bd   :  { %v2541_v54 = vadd.f32 %v8204_v30, %v2540_v51  ;;  %6478 = vmatprep.mubr.f32.mxu1 %v2983_v17  ;;  %v2986_v55 = vmax.f32 %v2546_v58, 0.0 }
 0x2be   :  { %v6265_v3 = vpop.f32.mrf.mxu0  ;;  %6479 = vmatmul.mubr.f32.gmra.mxu1 %v2984_v47 }
 0x2bf   :  { %v2985_v48 = vmax.f32 %v2541_v54, 0.0  ;;  %v2556_v56 = vadd.f32 %v6265_v3, %v8204_v30 }
 0x2c0   :  { %v2550_v57 = vpop.f32.mrf.mxu0 }
 0x2c1   :  { %v2551_v59 = vadd.f32 %v8204_v30, %v2550_v57  ;;  %6481 = vmatprep.mubr.f32.mxu1 %v2985_v48  ;;  %v2988_v61 = vmax.f32 %v2556_v56, 0.0 }
 0x2c2   :  { %v6268_v27 = vpop.f32.mrf.mxu0  ;;  %6482 = vmatmul.mubr.f32.gmra.mxu1 %v2986_v55 }
 0x2c3   :  { %v2987_v60 = vmax.f32 %v2551_v59, 0.0  ;;  %v2566_v15 = vadd.f32 %v6268_v27, %v8204_v30 }
 0x2c4   :  { %v2560_v63 = vpop.f32.mrf.mxu0 }
 0x2c5   :  { %v2561_v0 = vadd.f32 %v8204_v30, %v2560_v63  ;;  %6484 = vmatprep.mubr.f32.mxu1 %v2987_v60  ;;  %v2990_v23 = vmax.f32 %v2566_v15, 0.0 }
 0x2c6   :  { %v6271_v1 = vpop.f32.mrf.mxu0  ;;  %6485 = vmatmul.mubr.f32.gmra.mxu1 %v2988_v61 }
 0x2c7   :  { %v2989_v20 = vmax.f32 %v2561_v0, 0.0  ;;  %v2576_v2 = vadd.f32 %v6271_v1, %v8204_v30 }
 0x2c8   :  { %v2570_v5 = vpop.f32.mrf.mxu0 }
 0x2c9   :  { %v2571_v6 = vadd.f32 %v8204_v30, %v2570_v5  ;;  %6487 = vmatprep.mubr.f32.mxu1 %v2989_v20  ;;  %v2992_v8 = vmax.f32 %v2576_v2, 0.0 }
 0x2ca   :  { %v6274_v4 = vpop.f32.mrf.mxu0  ;;  %6488 = vmatmul.mubr.f32.gmra.mxu1 %v2990_v23 }
 0x2cb   :  { %v2991_v7 = vmax.f32 %v2571_v6, 0.0  ;;  %v2586_v9 = vadd.f32 %v6274_v4, %v8204_v30 }
 0x2cc   :  { %v2580_v10 = vpop.f32.mrf.mxu0 }
 0x2cd   :  { %v2581_v41 = vadd.f32 %v8204_v30, %v2580_v10  ;;  %6490 = vmatprep.mubr.f32.mxu1 %v2991_v7  ;;  %v2994_v14 = vmax.f32 %v2586_v9, 0.0 }
 0x2ce   :  { %v6277_v11 = vpop.f32.mrf.mxu0  ;;  %6491 = vmatmul.mubr.f32.gmra.mxu1 %v2992_v8 }
 0x2cf   :  { %v2993_v12 = vmax.f32 %v2581_v41, 0.0  ;;  %v2596_v16 = vadd.f32 %v6277_v11, %v8204_v30 }
 0x2d0   :  { %v2590_v18 = vpop.f32.mrf.mxu0 }
 0x2d1   :  { %v2591_v19 = vadd.f32 %v8204_v30, %v2590_v18  ;;  %6493 = vmatprep.mubr.f32.mxu1 %v2993_v12  ;;  %v2996_v25 = vmax.f32 %v2596_v16, 0.0 }
 0x2d2   :  { %v6280_v21 = vpop.f32.mrf.mxu0  ;;  %6494 = vmatmul.mubr.f32.gmra.mxu1 %v2994_v14 }
 0x2d3   :  { %v2995_v24 = vmax.f32 %v2591_v19, 0.0  ;;  %v2606_v26 = vadd.f32 %v6280_v21, %v8204_v30 }
 0x2d4   :  { %v2600_v13 = vpop.f32.mrf.mxu0 }
 0x2d5   :  { %v2601_v28 = vadd.f32 %v8204_v30, %v2600_v13  ;;  %6496 = vmatprep.mubr.f32.mxu1 %v2995_v24  ;;  %v2998_v33 = vmax.f32 %v2606_v26, 0.0 }
 0x2d6   :  { %v6283_v29 = vpop.f32.mrf.mxu0  ;;  %6497 = vmatmul.mubr.f32.gmra.mxu1 %v2996_v25 }
 0x2d7   :  { %v2997_v32 = vmax.f32 %v2601_v28, 0.0  ;;  %v2616_v34 = vadd.f32 %v6283_v29, %v8204_v30 }
 0x2d8   :  { %v2610_v35 = vpop.f32.mrf.mxu0 }
 0x2d9   :  { %v2611_v36 = vadd.f32 %v8204_v30, %v2610_v35  ;;  %6499 = vmatprep.mubr.f32.mxu1 %v2997_v32  ;;  %v3000_v38 = vmax.f32 %v2616_v34, 0.0 }
 0x2da   :  { %v6286_v37 = vpop.f32.mrf.mxu0  ;;  %6500 = vmatmul.mubr.f32.gmra.mxu1 %v2998_v33 }
 0x2db   :  { %v2999_v31 = vmax.f32 %v2611_v36, 0.0  ;;  %v2626_v43 = vadd.f32 %v6286_v37, %v8204_v30 }
 0x2dc   :  { %v2620_v39 = vpop.f32.mrf.mxu0 }
 0x2dd   :  { %v2621_v40 = vadd.f32 %v8204_v30, %v2620_v39  ;;  %6502 = vmatprep.mubr.f32.mxu1 %v2999_v31  ;;  %v3002_v45 = vmax.f32 %v2626_v43, 0.0 }
 0x2de   :  { %v6289_v42 = vpop.f32.mrf.mxu0  ;;  %6503 = vmatmul.mubr.f32.gmra.mxu1 %v3000_v38 }
 0x2df   :  { %v3001_v44 = vmax.f32 %v2621_v40, 0.0  ;;  %v2636_v62 = vadd.f32 %v6289_v42, %v8204_v30 }
 0x2e0   :  { %v2630_v52 = vpop.f32.mrf.mxu0 }
 0x2e1   :  { %v2631_v46 = vadd.f32 %v8204_v30, %v2630_v52  ;;  %6505 = vmatprep.mubr.f32.mxu1 %v3001_v44  ;;  %v3004_v50 = vmax.f32 %v2636_v62, 0.0 }
 0x2e2   :  { %v6292_v22 = vpop.f32.mrf.mxu0  ;;  %6506 = vmatmul.mubr.f32.gmra.mxu1 %v3002_v45 }
 0x2e3   :  { %v3003_v49 = vmax.f32 %v2631_v46, 0.0  ;;  %v2646_v53 = vadd.f32 %v6292_v22, %v8204_v30 }
 0x2e4   :  { %v2640_v17 = vpop.f32.mrf.mxu0 }
 0x2e5   :  { %v2641_v47 = vadd.f32 %v8204_v30, %v2640_v17  ;;  %6508 = vmatprep.mubr.f32.mxu1 %v3003_v49  ;;  %v3006_v54 = vmax.f32 %v2646_v53, 0.0 }
 0x2e6   :  { %v6295_v58 = vpop.f32.mrf.mxu0  ;;  %6509 = vmatmul.mubr.f32.gmra.mxu1 %v3004_v50 }
 0x2e7   :  { %v3005_v51 = vmax.f32 %v2641_v47, 0.0  ;;  %v2656_v3 = vadd.f32 %v6295_v58, %v8204_v30 }
 0x2e8   :  { %v2650_v48 = vpop.f32.mrf.mxu0 }
 0x2e9   :  { %v2651_v55 = vadd.f32 %v8204_v30, %v2650_v48  ;;  %6511 = vmatprep.mubr.f32.mxu1 %v3005_v51  ;;  %v3008_v59 = vmax.f32 %v2656_v3, 0.0 }
 0x2ea   :  { %v6298_v56 = vpop.f32.mrf.mxu0  ;;  %6512 = vmatmul.mubr.f32.gmra.mxu1 %v3006_v54 }
 0x2eb   :  { %v3007_v57 = vmax.f32 %v2651_v55, 0.0  ;;  %v2666_v27 = vadd.f32 %v6298_v56, %v8204_v30 }
 0x2ec   :  { %v2660_v60 = vpop.f32.mrf.mxu0 }
 0x2ed   :  { %v2661_v61 = vadd.f32 %v8204_v30, %v2660_v60  ;;  %6514 = vmatprep.mubr.f32.mxu1 %v3007_v57  ;;  %v3010_v0 = vmax.f32 %v2666_v27, 0.0 }
 0x2ee   :  { %v6301_v15 = vpop.f32.mrf.mxu0  ;;  %6515 = vmatmul.mubr.f32.gmra.mxu1 %v3008_v59 }
 0x2ef   :  { %v3009_v63 = vmax.f32 %v2661_v61, 0.0  ;;  %v2676_v1 = vadd.f32 %v6301_v15, %v8204_v30 }
 0x2f0   :  { %v2670_v20 = vpop.f32.mrf.mxu0 }
 0x2f1   :  { %v2671_v23 = vadd.f32 %v8204_v30, %v2670_v20  ;;  %6517 = vmatprep.mubr.f32.mxu1 %v3009_v63  ;;  %v3012_v6 = vmax.f32 %v2676_v1, 0.0 }
 0x2f2   :  { %v6304_v2 = vpop.f32.mrf.mxu0  ;;  %6518 = vmatmul.mubr.f32.gmra.mxu1 %v3010_v0 }
 0x2f3   :  { %v3011_v5 = vmax.f32 %v2671_v23, 0.0  ;;  %v2686_v4 = vadd.f32 %v6304_v2, %v8204_v30 }
 0x2f4   :  { %v2680_v7 = vpop.f32.mrf.mxu0 }
 0x2f5   :  { %v2681_v8 = vadd.f32 %v8204_v30, %v2680_v7  ;;  %6520 = vmatprep.mubr.f32.mxu1 %v3011_v5  ;;  %v3014_v41 = vmax.f32 %v2686_v4, 0.0 }
 0x2f6   :  { %v6307_v9 = vpop.f32.mrf.mxu0  ;;  %6521 = vmatmul.mubr.f32.gmra.mxu1 %v3012_v6 }
 0x2f7   :  { %v3013_v10 = vmax.f32 %v2681_v8, 0.0  ;;  %v2696_v11 = vadd.f32 %v6307_v9, %v8204_v30 }
 0x2f8   :  { %v2690_v12 = vpop.f32.mrf.mxu0 }
 0x2f9   :  { %v2691_v14 = vadd.f32 %v8204_v30, %v2690_v12  ;;  %6523 = vmatprep.mubr.f32.mxu1 %v3013_v10  ;;  %v3016_v19 = vmax.f32 %v2696_v11, 0.0 }
 0x2fa   :  { %v6310_v16 = vpop.f32.mrf.mxu0  ;;  %6524 = vmatmul.mubr.f32.gmra.mxu1 %v3014_v41 }
 0x2fb   :  { %v3015_v18 = vmax.f32 %v2691_v14, 0.0  ;;  %v2706_v21 = vadd.f32 %v6310_v16, %v8204_v30 }
 0x2fc   :  { %v2700_v24 = vpop.f32.mrf.mxu0 }
 0x2fd   :  { %v2701_v25 = vadd.f32 %v8204_v30, %v2700_v24  ;;  %6526 = vmatprep.mubr.f32.mxu1 %v3015_v18  ;;  %v3018_v28 = vmax.f32 %v2706_v21, 0.0 }
 0x2fe   :  { %v6313_v26 = vpop.f32.mrf.mxu0  ;;  %6527 = vmatmul.mubr.f32.gmra.mxu1 %v3016_v19 }
 0x2ff   :  { %v3017_v13 = vmax.f32 %v2701_v25, 0.0  ;;  %v2716_v29 = vadd.f32 %v6313_v26, %v8204_v30 }
 0x300   :  { %v2710_v32 = vpop.f32.mrf.mxu0 }
 0x301   :  { %v2711_v33 = vadd.f32 %v8204_v30, %v2710_v32  ;;  %6529 = vmatprep.mubr.f32.mxu1 %v3017_v13  ;;  %v3020_v36 = vmax.f32 %v2716_v29, 0.0 }
 0x302   :  { %v6316_v34 = vpop.f32.mrf.mxu0  ;;  %6530 = vmatmul.mubr.f32.gmra.mxu1 %v3018_v28 }
 0x303   :  { %v3019_v35 = vmax.f32 %v2711_v33, 0.0  ;;  %v2726_v37 = vadd.f32 %v6316_v34, %v8204_v30 }
 0x304   :  { %v2720_v31 = vpop.f32.mrf.mxu0 }
 0x305   :  { %v2721_v38 = vadd.f32 %v8204_v30, %v2720_v31  ;;  %6532 = vmatprep.mubr.f32.mxu1 %v3019_v35  ;;  %v3022_v40 = vmax.f32 %v2726_v37, 0.0 }
 0x306   :  { %v6319_v43 = vpop.f32.mrf.mxu0  ;;  %6533 = vmatmul.mubr.f32.gmra.mxu1 %v3020_v36  ;;  %v8338_v36 = vld [vmem:[#allocation2] ss:$0 sm:$0xff] }
 0x307   :  { %v3021_v39 = vmax.f32 %v2721_v38, 0.0  ;;  %v2736_v42 = vadd.f32 %v6319_v43, %v8204_v30 }
 0x308   :  { %v2730_v44 = vpop.f32.mrf.mxu0 }
 0x309   :  { %v2731_v45 = vadd.f32 %v8204_v30, %v2730_v44  ;;  %6535 = vmatprep.mubr.f32.mxu1 %v3021_v39  ;;  %v3024_v46 = vmax.f32 %v2736_v42, 0.0 }
 0x30a   :  { %v6322_v62 = vpop.f32.mrf.mxu0  ;;  %6536 = vmatmul.mubr.f32.gmra.mxu1 %v3022_v40 }
 0x30b   :  { %v3023_v52 = vmax.f32 %v2731_v45, 0.0  ;;  %v2746_v22 = vadd.f32 %v6322_v62, %v8204_v30 }
 0x30c   :  { %v2740_v49 = vpop.f32.mrf.mxu0 }
 0x30d   :  { %v2741_v50 = vadd.f32 %v8204_v30, %v2740_v49  ;;  %6538 = vmatprep.mubr.f32.mxu1 %v3023_v52  ;;  %v3026_v47 = vmax.f32 %v2746_v22, 0.0  ;;  %v8349_v52 = vld [vmem:[%s10453_s6] ss:$0 sm:$0xff] }
 0x30e   :  { %v6325_v53 = vpop.f32.mrf.mxu0  ;;  %6539 = vmatmul.mubr.f32.gmra.mxu1 %v3024_v46 }
 0x30f   :  { %v3025_v17 = vmax.f32 %v2741_v50, 0.0  ;;  %v2756_v58 = vadd.f32 %v6325_v53, %v8204_v30 }
 0x310   :  { %v2750_v51 = vpop.f32.mrf.mxu0 }
 0x311   :  { %v2751_v54 = vadd.f32 %v8204_v30, %v2750_v51  ;;  %6541 = vmatprep.mubr.f32.mxu1 %v3025_v17  ;;  %v3028_v55 = vmax.f32 %v2756_v58, 0.0 }
 0x312   :  { %v6328_v3 = vpop.f32.mrf.mxu0  ;;  %6542 = vmatmul.mubr.f32.gmra.mxu1 %v3026_v47 }
 0x313   :  { %v3027_v48 = vmax.f32 %v2751_v54, 0.0  ;;  %v2766_v56 = vadd.f32 %v6328_v3, %v8204_v30 }
 0x314   :  { %v2760_v57 = vpop.f32.mrf.mxu0 }
 0x315   :  { %v2761_v59 = vadd.f32 %v8204_v30, %v2760_v57  ;;  %6544 = vmatprep.mubr.f32.mxu1 %v3027_v48  ;;  %v3030_v61 = vmax.f32 %v2766_v56, 0.0 }
 0x316   :  { %v6331_v27 = vpop.f32.mrf.mxu0  ;;  %6545 = vmatmul.mubr.f32.gmra.mxu1 %v3028_v55 }
 0x317   :  { %v3029_v60 = vmax.f32 %v2761_v59, 0.0  ;;  %v2776_v15 = vadd.f32 %v6331_v27, %v8204_v30 }
 0x318   :  { %v2770_v63 = vpop.f32.mrf.mxu0 }
 0x319   :  { %v2771_v0 = vadd.f32 %v8204_v30, %v2770_v63  ;;  %6547 = vmatprep.mubr.f32.mxu1 %v3029_v60  ;;  %v3032_v23 = vmax.f32 %v2776_v15, 0.0 }
 0x31a   :  { %v6334_v1 = vpop.f32.mrf.mxu0  ;;  %6548 = vmatmul.mubr.f32.gmra.mxu1 %v3030_v61 }
 0x31b   :  { %v3031_v20 = vmax.f32 %v2771_v0, 0.0  ;;  %v2786_v2 = vadd.f32 %v6334_v1, %v8204_v30 }
 0x31c   :  { %v2780_v5 = vpop.f32.mrf.mxu0 }
 0x31d   :  { %v2781_v6 = vadd.f32 %v8204_v30, %v2780_v5  ;;  %6550 = vmatprep.mubr.f32.mxu1 %v3031_v20  ;;  %v3034_v8 = vmax.f32 %v2786_v2, 0.0 }
 0x31e   :  { %v6337_v4 = vpop.f32.mrf.mxu0  ;;  %6551 = vmatmul.mubr.f32.gmra.mxu1 %v3032_v23 }
 0x31f   :  { %v3033_v7 = vmax.f32 %v2781_v6, 0.0  ;;  %v2796_v9 = vadd.f32 %v6337_v4, %v8204_v30 }
 0x320   :  { %v2790_v10 = vpop.f32.mrf.mxu0 }
 0x321   :  { %v2791_v41 = vadd.f32 %v8204_v30, %v2790_v10  ;;  %6553 = vmatprep.mubr.f32.mxu1 %v3033_v7  ;;  %v3036_v14 = vmax.f32 %v2796_v9, 0.0 }
 0x322   :  { %v6340_v11 = vpop.f32.mrf.mxu0  ;;  %6554 = vmatmul.mubr.f32.gmra.mxu1 %v3034_v8 }
 0x323   :  { %v3035_v12 = vmax.f32 %v2791_v41, 0.0  ;;  %v2806_v16 = vadd.f32 %v6340_v11, %v8204_v30 }
 0x324   :  { %v2800_v18 = vpop.f32.mrf.mxu0 }
 0x325   :  { %v2801_v19 = vadd.f32 %v8204_v30, %v2800_v18  ;;  %6556 = vmatprep.mubr.f32.mxu1 %v3035_v12  ;;  %v3038_v25 = vmax.f32 %v2806_v16, 0.0 }
 0x326   :  { %v6343_v21 = vpop.f32.mrf.mxu0  ;;  %6557 = vmatmul.mubr.f32.gmra.mxu1 %v3036_v14 }
 0x327   :  { %v3037_v24 = vmax.f32 %v2801_v19, 0.0  ;;  %v2816_v26 = vadd.f32 %v6343_v21, %v8204_v30 }
 0x328   :  { %v2810_v13 = vpop.f32.mrf.mxu0 }
 0x329   :  { %v2811_v28 = vadd.f32 %v8204_v30, %v2810_v13  ;;  %6559 = vmatprep.mubr.f32.mxu1 %v3037_v24  ;;  %v3040_v33 = vmax.f32 %v2816_v26, 0.0 }
 0x32a   :  { %v6346_v29 = vpop.f32.mrf.mxu0  ;;  %6560 = vmatmul.mubr.f32.gmra.mxu1 %v3038_v25 }
 0x32b   :  { %v3039_v32 = vmax.f32 %v2811_v28, 0.0  ;;  %v2826_v34 = vadd.f32 %v6346_v29, %v8204_v30 }
 0x32c   :  { %v2820_v35 = vpop.f32.mrf.mxu0 }
 0x32d   :  { %v2821_v37 = vadd.f32 %v8204_v30, %v2820_v35  ;;  %6562 = vmatprep.mubr.f32.mxu1 %v3039_v32  ;;  %v3042_v40 = vmax.f32 %v2826_v34, 0.0 }
 0x32e   :  { %v6349_v31 = vpop.f32.mrf.mxu0  ;;  %v6420_v38 = vpop.f32.mrf.mxu1  ;;  %6563 = vmatmul.mubr.f32.gmra.mxu1 %v3040_v33 }
 0x32f   :  { %v3041_v43 = vmax.f32 %v2821_v37, 0.0  ;;  %v8342_v39 = vadd.f32 %v6420_v38, %v8338_v36  ;;  %v2836_v42 = vadd.f32 %v6349_v31, %v8204_v30 }
 0x330   :  { %v2830_v44 = vpop.f32.mrf.mxu0  ;;  %v3174_v45 = vpop.f32.mrf.mxu1 }
 0x331   :  { %v3788_v62 = vand.u32 2147483647, %v8342_v39  ;;  %v2831_v46 = vadd.f32 %v8349_v52, %v2830_v44  ;;  %6565 = vmatprep.mubr.f32.mxu1 %v3041_v43  ;;  %v8353_v22 = vadd.f32 %v8338_v36, %v3174_v45  ;;  %v3044_v47 = vmax.f32 %v2836_v42, 0.0 }
 0x332   :  { %v6352_v49 = vpop.f32.mrf.mxu0  ;;  %v6423_v50 = vpop.f32.mrf.mxu1  ;;  %6566 = vmatmul.mubr.f32.gmra.mxu1 %v3042_v40  ;;  %vm4292_vm3 = vcmp.ge.f32.partialorder %v8342_v39, 0.0 }
 0x333   :  { %v3914_v53 = vsub.f32 0.0, %v3788_v62  ;;  %v3043_v30 = vmax.f32 %v2831_v46, 0.0  ;;  %v8356_v17 = vadd.f32 %v6423_v50, %v8338_v36  ;;  %v3787_v58 = vand.u32 2147483647, %v8353_v22 }
 0x334   :  { %v2840_v51 = vpop.f32.mrf.mxu0  ;;  %v3184_v54 = vpop.f32.mrf.mxu1  ;;  %v2846_v48 = vadd.f32 %v8349_v52, %v6352_v49  ;;  %vm4291_vm4 = vcmp.ge.f32.partialorder %v8353_v22, 0.0 }
 0x335   :  { %v4045_v3 = vmul.f32 1.442695, %v3914_v53  ;;  %v3790_v55 = vand.u32 2147483647, %v8356_v17  ;;  %6568 = vmatprep.mubr.f32.mxu1 %v3043_v30  ;;  %v3913_v56 = vsub.f32 0.0, %v3787_v58  ;;  %v2841_v57 = vadd.f32 %v8349_v52, %v2840_v51 }
 0x336   :  { %v8363_v59 = vadd.f32 %v8338_v36, %v3184_v54  ;;  %v6355_v27 = vpop.f32.mrf.mxu0  ;;  %v6426_v60 = vpop.f32.mrf.mxu1  ;;  %6569 = vmatmul.mubr.f32.gmra.mxu1 %v3044_v47  ;;  %v3046_v2 = vmax.f32 %v2846_v48, 0.0  ;;  %vm4294_vm5 = vcmp.ge.f32.partialorder %v8356_v17, 0.0 }
 0x337   :  { %6633 = vpow2.f32 %v4045_v3  ;;  %v3916_v61 = vsub.f32 0.0, %v3790_v55  ;;  %v8366_v15 = vadd.f32 %v6426_v60, %v8338_v36  ;;  %v4043_v63 = vmul.f32 1.442695, %v3913_v56 }
 0x338   :  { %v3045_v0 = vmax.f32 %v2841_v57, 0.0  ;;  %v3789_v1 = vand.u32 2147483647, %v8363_v59  ;;  %v2850_v20 = vpop.f32.mrf.mxu0  ;;  %v3194_v23 = vpop.f32.mrf.mxu1  ;;  %v2856_v6 = vadd.f32 %v8349_v52, %v6355_v27  ;;  %vm4293_vm6 = vcmp.ge.f32.partialorder %v8363_v59, 0.0 }
 0x339   :  { %v4049_v5 = vmul.f32 1.442695, %v3916_v61  ;;  %v3792_v4 = vand.u32 2147483647, %v8366_v15  ;;  %6635 = vpow2.f32 %v4043_v63  ;;  %v2851_v8 = vadd.f32 %v8349_v52, %v2850_v20 }
 0x33a   :  { %v3915_v7 = vsub.f32 0.0, %v3789_v1  ;;  %v8373_v9 = vadd.f32 %v8338_v36, %v3194_v23  ;;  %6571 = vmatprep.mubr.f32.mxu1 %v3045_v0  ;;  %v6358_v10 = vpop.f32.mrf.mxu0  ;;  %v6429_v41 = vpop.f32.mrf.mxu1  ;;  %v3048_v24 = vmax.f32 %v2856_v6, 0.0  ;;  %vm4296_vm7 = vcmp.ge.f32.partialorder %v8366_v15, 0.0 }
 0x33b   :  { %6637 = vpow2.f32 %v4049_v5  ;;  %v3918_v11 = vsub.f32 0.0, %v3792_v4  ;;  %v8376_v12 = vadd.f32 %v6429_v41, %v8338_v36  ;;  %6572 = vmatmul.mubr.f32.gmra.mxu1 %v3046_v2  ;;  %v3047_v16 = vmax.f32 %v2851_v8, 0.0 }
 0x33c   :  { %v4047_v14 = vmul.f32 1.442695, %v3915_v7  ;;  %v3791_v18 = vand.u32 2147483647, %v8373_v9  ;;  %v2860_v19 = vpop.f32.mrf.mxu0  ;;  %v3204_v21 = vpop.f32.mrf.mxu1  ;;  %v2866_v26 = vadd.f32 %v8349_v52, %v6358_v10  ;;  %vm4295_vm8 = vcmp.ge.f32.partialorder %v8373_v9, 0.0 }
 0x33d   :  { %v4053_v25 = vmul.f32 1.442695, %v3918_v11  ;;  %v3794_v13 = vand.u32 2147483647, %v8376_v12  ;;  %v2861_v29 = vadd.f32 %v8349_v52, %v2860_v19  ;;  %v8383_v32 = vadd.f32 %v8338_v36, %v3204_v21  ;;  %6574 = vmatprep.mubr.f32.mxu1 %v3047_v16 }
 0x33e   :  { %6639 = vpow2.f32 %v4047_v14  ;;  %v3917_v28 = vsub.f32 0.0, %v3791_v18  ;;  %v6361_v33 = vpop.f32.mrf.mxu0  ;;  %v6432_v34 = vpop.f32.mrf.mxu1  ;;  %v3050_v44 = vmax.f32 %v2866_v26, 0.0  ;;  %vm4298_vm9 = vcmp.ge.f32.partialorder %v8376_v12, 0.0 }
 0x33f   :  { %6641 = vpow2.f32 %v4053_v25  ;;  %v3920_v35 = vsub.f32 0.0, %v3794_v13  ;;  %v8386_v37 = vadd.f32 %v6432_v34, %v8338_v36  ;;  %6575 = vmatmul.mubr.f32.gmra.mxu1 %v3048_v24  ;;  %v3049_v38 = vmax.f32 %v2861_v29, 0.0 }
 0x340   :  { %v4051_v31 = vmul.f32 1.442695, %v3917_v28  ;;  %v3793_v43 = vand.u32 2147483647, %v8383_v32  ;;  %v2870_v40 = vpop.f32.mrf.mxu0  ;;  %v3214_v42 = vpop.f32.mrf.mxu1  ;;  %v2876_v62 = vadd.f32 %v8349_v52, %v6361_v33  ;;  %vm4297_vm10 = vcmp.ge.f32.partialorder %v8383_v32, 0.0 }
 0x341   :  { %v4057_v45 = vmul.f32 1.442695, %v3920_v35  ;;  %v3796_v46 = vand.u32 2147483647, %v8386_v37  ;;  %v2871_v50 = vadd.f32 %v8349_v52, %v2870_v40  ;;  %v8393_v53 = vadd.f32 %v8338_v36, %v3214_v42  ;;  %6577 = vmatprep.mubr.f32.mxu1 %v3049_v38 }
 0x342   :  { %6643 = vpow2.f32 %v4051_v31  ;;  %v3919_v49 = vsub.f32 0.0, %v3793_v43  ;;  %v6364_v30 = vpop.f32.mrf.mxu0  ;;  %v6435_v47 = vpop.f32.mrf.mxu1  ;;  %v3052_v60 = vmax.f32 %v2876_v62, 0.0  ;;  %vm4300_vm11 = vcmp.ge.f32.partialorder %v8386_v37, 0.0 }
 0x343   :  { %6645 = vpow2.f32 %v4057_v45  ;;  %v3922_v58 = vsub.f32 0.0, %v3796_v46  ;;  %v8396_v51 = vadd.f32 %v6435_v47, %v8338_v36  ;;  %6578 = vmatmul.mubr.f32.gmra.mxu1 %v3050_v44  ;;  %v3051_v48 = vmax.f32 %v2871_v50, 0.0 }
 0x344   :  { %v8398_v54 = vpop.eup %6633  ;;  %v4055_v3 = vmul.f32 1.442695, %v3919_v49  ;;  %v3795_v55 = vand.u32 2147483647, %v8393_v53  ;;  %v2880_v56 = vpop.f32.mrf.mxu0  ;;  %v2886_v0 = vadd.f32 %v8349_v52, %v6364_v30  ;;  %vm4299_vm12 = vcmp.ge.f32.partialorder %v8393_v53, 0.0 }
 0x345   :  { %v3224_v57 = vpop.f32.mrf.mxu1  ;;  %v4544_v27 = vadd.f32 1.0, %v8398_v54  ;;  %v4061_v61 = vmul.f32 1.442695, %v3922_v58  ;;  %v3798_v1 = vand.u32 2147483647, %v8396_v51  ;;  %6580 = vmatprep.mubr.f32.mxu1 %v3051_v48  ;;  %v2881_v5 = vadd.f32 %v8349_v52, %v2880_v56 }
 0x346   :  { %6647 = vpow2.f32 %v4055_v3  ;;  %v3921_v63 = vsub.f32 0.0, %v3795_v55  ;;  %v6367_v20 = vpop.f32.mrf.mxu0  ;;  %v8404_v2 = vpop.eup %6635  ;;  %v8408_v6 = vadd.f32 %v8338_v36, %v3224_v57  ;;  %v3054_v18 = vmax.f32 %v2886_v0, 0.0 }
 0x347   :  { %v6438_v23 = vpop.f32.mrf.mxu1  ;;  %6649 = vrcp.f32 %v4544_v27  ;;  %6581 = vmatmul.mubr.f32.gmra.mxu1 %v3052_v60  ;;  %v4543_v7 = vadd.f32 1.0, %v8404_v2  ;;  %v3924_v14 = vsub.f32 0.0, %v3798_v1  ;;  %v3053_v16 = vmax.f32 %v2881_v5, 0.0 }
 0x348   :  { %v8410_v4 = vpop.eup %6637  ;;  %6651 = vpow2.f32 %v4061_v61  ;;  %v4059_v8 = vmul.f32 1.442695, %v3921_v63  ;;  %v2890_v10 = vpop.f32.mrf.mxu0  ;;  %v3797_v19 = vand.u32 2147483647, %v8408_v6  ;;  %v2896_v21 = vadd.f32 %v8349_v52, %v6367_v20 }
 0x349   :  { %v3234_v41 = vpop.f32.mrf.mxu1  ;;  %v4546_v11 = vadd.f32 1.0, %v8410_v4  ;;  %6653 = vrcp.f32 %v4543_v7  ;;  %v4065_v13 = vmul.f32 1.442695, %v3924_v14  ;;  %v8419_v28 = vadd.f32 %v6438_v23, %v8338_v36  ;;  %6583 = vmatprep.mubr.f32.mxu1 %v3053_v16 }
 0x34a   :  { %v6370_v24 = vpop.f32.mrf.mxu0  ;;  %v2891_v29 = vadd.f32 %v8349_v52, %v2890_v10  ;;  %v3923_v35 = vsub.f32 0.0, %v3797_v19  ;;  %v3056_v49 = vmax.f32 %v2896_v21, 0.0  ;;  %v8432_v30 = vadd.f32 %v8338_v36, %v3234_v41 }
 0x34b   :  { %v6441_v25 = vpop.f32.mrf.mxu1  ;;  %v8416_v26 = vpop.eup %6639  ;;  %6655 = vrcp.f32 %v4546_v11  ;;  %6584 = vmatmul.mubr.f32.gmra.mxu1 %v3054_v18  ;;  %v3800_v40 = vand.u32 2147483647, %v8419_v28  ;;  %v2906_v60 = vadd.f32 %v8349_v52, %v6370_v24  ;;  %v4418_v20 = vsel %vm4292_vm3, 1.0, %v8398_v54 }
 0x34c   :  { %v8422_v33 = vpop.eup %6641  ;;  %v4545_v34 = vadd.f32 1.0, %v8416_v26  ;;  %6657 = vpow2.f32 %v4059_v8  ;;  %v2900_v31 = vpop.f32.mrf.mxu0  ;;  %v4063_v42 = vmul.f32 1.442695, %v3923_v35  ;;  %v3055_v44 = vmax.f32 %v2891_v29, 0.0 }
 0x34d   :  { %v3244_v38 = vpop.f32.mrf.mxu1  ;;  %v4548_v43 = vadd.f32 1.0, %v8422_v33  ;;  %6659 = vpow2.f32 %v4065_v13  ;;  %v3926_v50 = vsub.f32 0.0, %v3800_v40  ;;  %v8439_v3 = vadd.f32 %v6441_v25, %v8338_v36 }
 0x34e   :  { %6661 = vrcp.f32 %v4545_v34  ;;  %v6373_v45 = vpop.f32.mrf.mxu0  ;;  %6586 = vmatprep.mubr.f32.mxu1 %v3055_v44  ;;  %v3799_v27 = vand.u32 2147483647, %v8432_v30  ;;  %v2901_v5 = vadd.f32 %v8349_v52, %v2900_v31  ;;  %v4417_v8 = vsel %vm4291_vm4, 1.0, %v8404_v2 }
 0x34f   :  { %v6444_v62 = vpop.f32.mrf.mxu1  ;;  %v8429_v46 = vpop.eup %6643  ;;  %6663 = vrcp.f32 %v4548_v43  ;;  %v4069_v57 = vmul.f32 1.442695, %v3926_v50  ;;  %6587 = vmatmul.mubr.f32.gmra.mxu1 %v3056_v49  ;;  %v3802_v61 = vand.u32 2147483647, %v8439_v3  ;;  %v8468_v18 = vadd.f32 %v8338_v36, %v3244_v38 }
 0x350   :  { %v8434_v47 = vpop.eup %6645  ;;  %v4547_v58 = vadd.f32 1.0, %v8429_v46  ;;  %6665 = vpow2.f32 %v4063_v42  ;;  %v2910_v48 = vpop.f32.mrf.mxu0  ;;  %v3925_v23 = vsub.f32 0.0, %v3799_v27  ;;  %v3057_v54 = vmax.f32 %v2901_v5, 0.0 }
 0x351   :  { %v8441_v55 = vpop.f32.mrf.mxu1  ;;  %v4550_v56 = vadd.f32 1.0, %v8434_v47  ;;  %v3928_v41 = vsub.f32 0.0, %v3802_v61  ;;  %v3058_v2 = vmax.f32 %v2906_v60, 0.0  ;;  %v4420_v13 = vsel %vm4294_vm5, 1.0, %v8410_v4 }
 0x352   :  { %6667 = vrcp.f32 %v4547_v58  ;;  %v8449_v63 = vpop.f32.mrf.mxu0  ;;  %v4067_v39 = vmul.f32 1.442695, %v3925_v23  ;;  %v3801_v29 = vand.u32 2147483647, %v8468_v18  ;;  %v2916_v34 = vadd.f32 %v8349_v52, %v6373_v45  ;;  %6589 = vmatprep.mubr.f32.mxu1 %v3057_v54 }
 0x353   :  { %v8451_v0 = vpop.f32.mrf.mxu1  ;;  %v8453_v1 = vpop.eup %6647  ;;  %6669 = vrcp.f32 %v4550_v56  ;;  %v4073_v19 = vmul.f32 1.442695, %v3928_v41  ;;  %v8487_v38 = vadd.f32 %v6444_v62, %v8338_v36  ;;  %v2911_v43 = vadd.f32 %v8349_v52, %v2910_v48  ;;  %6590 = vmatmul.mubr.f32.gmra.mxu1 %v3058_v2 }
 0x354   :  { %v6650_v7 = vpop.eup %6649  ;;  %v4549_v10 = vadd.f32 1.0, %v8453_v1  ;;  %6671 = vpow2.f32 %v4069_v57  ;;  %v8472_v21 = vpop.f32.mrf.mxu0  ;;  %v3927_v42 = vsub.f32 0.0, %v3801_v29  ;;  %v4419_v45 = vsel %vm4293_vm6, 1.0, %v8416_v26 }
 0x355   :  { %v8463_v11 = vpop.f32.mrf.mxu1  ;;  %v8465_v14 = vpop.eup %6651  ;;  %v4676_v16 = vmul.f32 %v6650_v7, %v4418_v20  ;;  %v4422_v62 = vsel %vm4296_vm7, 1.0, %v8422_v33  ;;  %v3804_v50 = vand.u32 2147483647, %v8487_v38  ;;  %v3060_v57 = vmax.f32 %v2916_v34, 0.0 }
 0x356   :  { %6673 = vrcp.f32 %v4549_v10  ;;  %v4552_v22 = vadd.f32 1.0, %v8465_v14  ;;  %v6654_v25 = vpop.eup %6653  ;;  %v8509_v58 = vpop.f32.mrf.mxu0  ;;  %v4071_v26 = vmul.f32 1.442695, %v3927_v42  ;;  %v3059_v15 = vmax.f32 %v2911_v43, 0.0 }
 0x357   :  { %v8474_v24 = vpop.f32.mrf.mxu1  ;;  %4923 = vst.msk [vmem:[%s10455_s9 + $0x28] sm:$0xff] %vm4917_vm2, %v4676_v16  ;;  %6675 = vpow2.f32 %v4067_v39  ;;  %v4674_v31 = vmul.f32 %v6654_v25, %v4417_v8  ;;  %v3930_v60 = vsub.f32 0.0, %v3804_v50  ;;  %v8520_v61 = vadd.f32 %v8338_v36, %v8441_v55 }
 0x358   :  { %v6656_v35 = vpop.eup %6655  ;;  %6677 = vrcp.f32 %v4552_v22  ;;  %v8529_v7 = vadd.f32 %v8451_v0, %v8338_v36  ;;  %6592 = vmatprep.mubr.f32.mxu1 %v3059_v15  ;;  %v2930_v10 = vpop.f32.mrf.mxu0  ;;  %v4421_v0 = vsel %vm4295_vm8, 1.0, %v8429_v46  ;;  %v2926_v54 = vadd.f32 %v8349_v52, %v8449_v63 }
 0x359   :  { %v8490_v40 = vpop.f32.mrf.mxu1  ;;  %v8492_v17 = vpop.eup %6657  ;;  %v4680_v4 = vmul.f32 %v6656_v35, %v4420_v13  ;;  %6679 = vpow2.f32 %v4073_v19  ;;  %4922 = vst.msk [vmem:[%s10455_s9 + $0x20] sm:$0xff] %vm4917_vm2, %v4674_v31  ;;  %v4077_v8 = vmul.f32 1.442695, %v3930_v60  ;;  %6593 = vmatmul.mubr.f32.gmra.mxu1 %v3060_v57  ;;  %v3803_v39 = vand.u32 2147483647, %v8520_v61 }
 0x35a   :  { %v8495_v44 = vpop.eup %6659  ;;  %v4551_v49 = vadd.f32 1.0, %v8492_v17  ;;  %v3806_v22 = vand.u32 2147483647, %v8529_v7  ;;  %v4424_v25 = vsel %vm4298_vm9, 1.0, %v8434_v47  ;;  %v2921_v13 = vadd.f32 %v8349_v52, %v8472_v21  ;;  %v6414_v31 = vpop.f32.mrf.mxu0 }
 0x35b   :  { %v8511_v48 = vpop.f32.mrf.mxu1  ;;  %v6662_v56 = vpop.eup %6661  ;;  %4925 = vst.msk [vmem:[%s10455_s9 + $0x38] sm:$0xff] %vm4917_vm2, %v4680_v4  ;;  %v4554_v59 = vadd.f32 1.0, %v8495_v44  ;;  %v3929_v34 = vsub.f32 0.0, %v3803_v39  ;;  %v4423_v12 = vsel %vm4297_vm10, 1.0, %v8453_v1  ;;  %v8569_v35 = vadd.f32 %v8338_v36, %v8463_v11 }
 0x35c   :  { %v6664_v33 = vpop.eup %6663  ;;  %v4678_v27 = vmul.f32 %v6662_v56, %v4419_v45  ;;  %6681 = vrcp.f32 %v4551_v49  ;;  %v3932_v63 = vsub.f32 0.0, %v3806_v22  ;;  %v3061_v21 = vmax.f32 %v2921_v13, 0.0 }
 0x35d   :  { %v8522_v20 = vpop.f32.mrf.mxu1  ;;  %v8524_v23 = vpop.eup %6665  ;;  %v4684_v5 = vmul.f32 %v6664_v33, %v4422_v62  ;;  %6683 = vrcp.f32 %v4554_v59  ;;  %v4075_v42 = vmul.f32 1.442695, %v3929_v34  ;;  %v3062_v45 = vmax.f32 %v2926_v54, 0.0 }
 0x35e   :  { %4924 = vst.msk [vmem:[%s10455_s9 + $0x30] sm:$0xff] %vm4917_vm2, %v4678_v27  ;;  %v4553_v55 = vadd.f32 1.0, %v8524_v23  ;;  %6685 = vpow2.f32 %v4071_v26  ;;  %v4081_v32 = vmul.f32 1.442695, %v3932_v63  ;;  %v8579_v1 = vadd.f32 %v8474_v24, %v8338_v36  ;;  %6595 = vmatprep.mubr.f32.mxu1 %v3061_v21 }
 0x35f   :  { %v8537_v41 = vpop.f32.mrf.mxu1  ;;  %v6668_v16 = vpop.eup %6667  ;;  %4927 = vst.msk [vmem:[%s10455_s9 + $0x48] sm:$0xff] %vm4917_vm2, %v4684_v5  ;;  %vm4302_vm13 = vcmp.ge.f32.partialorder %v8396_v51, 0.0  ;;  %v3805_v49 = vand.u32 2147483647, %v8569_v35  ;;  %v4426_v59 = vsel %vm4300_vm11, 1.0, %v8465_v14  ;;  %v4425_v24 = vsel %vm4299_vm12, 1.0, %v8492_v17  ;;  %6596 = vmatmul.mubr.f32.gmra.mxu1 %v3062_v45 }
 0x360   :  { %v6670_v2 = vpop.eup %6669  ;;  %v4682_v19 = vmul.f32 %v6668_v16, %v4421_v0  ;;  %6687 = vrcp.f32 %v4553_v55  ;;  %v3808_v37 = vand.u32 2147483647, %v8579_v1  ;;  %v3154_v14 = vpop.f32.mrf.mxu0  ;;  %v4428_v53 = vsel %vm4302_vm13, 1.0, %v8495_v44 }
 0x361   :  { %v8555_v29 = vpop.f32.mrf.mxu1  ;;  %v8557_v9 = vpop.eup %6671  ;;  %v4688_v46 = vmul.f32 %v6670_v2, %v4424_v25  ;;  %6689 = vpow2.f32 %v4077_v8  ;;  %v3931_v33 = vsub.f32 0.0, %v3805_v49  ;;  %v2936_v60 = vadd.f32 %v8349_v52, %v8509_v58 }
 0x362   :  { %4926 = vst.msk [vmem:[%s10455_s9 + $0x40] sm:$0xff] %vm4917_vm2, %v4682_v19  ;;  %v4556_v47 = vadd.f32 1.0, %v8557_v9  ;;  %v3934_v55 = vsub.f32 0.0, %v3808_v37  ;;  %v2931_v8 = vadd.f32 %v8349_v52, %v2930_v10  ;;  %v8616_v16 = vadd.f32 %v8338_v36, %v8490_v40 }
 0x363   :  { %v8571_v43 = vpop.f32.mrf.mxu1  ;;  %v6674_v4 = vpop.eup %6673  ;;  %4929 = vst.msk [vmem:[%s10455_s9 + $0x58] sm:$0xff] %vm4917_vm2, %v4688_v46  ;;  %v4079_v5 = vmul.f32 1.442695, %v3931_v33  ;;  %v8621_v0 = vadd.f32 %v6414_v31, %v8338_v36  ;;  %v8625_v58 = vadd.f32 %v8511_v48, %v8338_v36  ;;  %v8628_v39 = vadd.f32 %v8338_v36, %v3154_v14 }
 0x364   :  { %v8581_v62 = vpop.eup %6675  ;;  %v4686_v11 = vmul.f32 %v6674_v4, %v4423_v12  ;;  %6691 = vrcp.f32 %v4556_v47  ;;  %v4085_v10 = vmul.f32 1.442695, %v3934_v55  ;;  %v3063_v40 = vmax.f32 %v2931_v8, 0.0  ;;  %v6417_v4 = vpop.f32.mrf.mxu0 }
 0x365   :  { %v8585_v50 = vpop.f32.mrf.mxu1  ;;  %v6678_v56 = vpop.eup %6677  ;;  %v4555_v26 = vadd.f32 1.0, %v8581_v62  ;;  %6693 = vpow2.f32 %v4075_v42  ;;  %v3064_v25 = vmax.f32 %v2936_v60, 0.0  ;;  %v3807_v13 = vand.u32 2147483647, %v8616_v16 }
 0x366   :  { %v8594_v57 = vpop.eup %6679  ;;  %4928 = vst.msk [vmem:[%s10455_s9 + $0x50] sm:$0xff] %vm4917_vm2, %v4686_v11  ;;  %v4692_v15 = vmul.f32 %v6678_v56, %v4426_v59  ;;  %6695 = vpow2.f32 %v4081_v32  ;;  %v3784_v46 = vand.u32 2147483647, %v8621_v0  ;;  %vm4301_vm14 = vcmp.ge.f32.partialorder %v8408_v6, 0.0  ;;  %6598 = vmatprep.mubr.f32.mxu1 %v3063_v40  ;;  %v3164_v37 = vpop.f32.mrf.mxu0 }
 0x367   :  { %v8601_v27 = vpop.f32.mrf.mxu1  ;;  %6697 = vrcp.f32 %v4555_v26  ;;  %v4558_v17 = vadd.f32 1.0, %v8594_v57  ;;  %v4427_v12 = vsel %vm4301_vm14, 1.0, %v8524_v23  ;;  %v3933_v47 = vsub.f32 0.0, %v3807_v13  ;;  %6599 = vmatmul.mubr.f32.gmra.mxu1 %v3064_v25 }
 0x368   :  { %4931 = vst.msk [vmem:[%s10455_s9 + $0x68] sm:$0xff] %vm4917_vm2, %v4692_v15  ;;  %v3910_v21 = vsub.f32 0.0, %v3784_v46  ;;  %v3810_v31 = vand.u32 2147483647, %v8625_v58  ;;  %vm4304_vm15 = vcmp.ge.f32.partialorder %v8419_v28, 0.0  ;;  %vm4303_vm0 = vcmp.ge.f32.partialorder %v8432_v30, 0.0 }
 0x369   :  { %v8618_v51 = vpop.f32.mrf.mxu1  ;;  %v6682_v44 = vpop.eup %6681  ;;  %6699 = vrcp.f32 %v4558_v17  ;;  %v3783_v45 = vand.u32 2147483647, %v8628_v39  ;;  %v4083_v11 = vmul.f32 1.442695, %v3933_v47  ;;  %vm4306_vm1 = vcmp.ge.f32.partialorder %v8439_v3, 0.0 }
 0x36a   :  { %v6684_v54 = vpop.eup %6683  ;;  %v4690_v52 = vmul.f32 %v6682_v44, %v4425_v24  ;;  %6701 = vpow2.f32 %v4079_v5  ;;  %v4037_v49 = vmul.f32 1.442695, %v3910_v21  ;;  %v3936_v56 = vsub.f32 0.0, %v3810_v31 }
 0x36b   :  { %v8630_v22 = vpop.f32.mrf.mxu1  ;;  %v8632_v2 = vpop.eup %6685  ;;  %v4696_v19 = vmul.f32 %v6684_v54, %v4428_v53  ;;  %6703 = vpow2.f32 %v4085_v10  ;;  %v3909_v28 = vsub.f32 0.0, %v3783_v45  ;;  %v8665_v59 = vadd.f32 %v8338_v36, %v8522_v20 }
 0x36c   :  { %4930 = vst.msk [vmem:[%s10455_s9 + $0x60] sm:$0xff] %vm4917_vm2, %v4690_v52  ;;  %v4557_v48 = vadd.f32 1.0, %v8632_v2  ;;  %v4430_v26 = vsel %vm4304_vm15, 1.0, %v8557_v9  ;;  %v4429_v15 = vsel %vm4303_vm0, 1.0, %v8581_v62  ;;  %v8672_v33 = vadd.f32 %v6417_v4, %v8338_v36 }
 0x36d   :  { %v8642_v34 = vpop.f32.mrf.mxu1  ;;  %v6688_v63 = vpop.eup %6687  ;;  %4933 = vst.msk [vmem:[%s10455_s9 + $0x78] sm:$0xff] %vm4917_vm2, %v4696_v19  ;;  %v4089_v17 = vmul.f32 1.442695, %v3936_v56  ;;  %v8678_v20 = vadd.f32 %v8537_v41, %v8338_v36  ;;  %v4035_v62 = vmul.f32 1.442695, %v3909_v28  ;;  %v8692_v41 = vadd.f32 %v8338_v36, %v3164_v37 }
 0x36e   :  { %v8650_v6 = vpop.eup %6689  ;;  %v4694_v42 = vmul.f32 %v6688_v63, %v4427_v12  ;;  %6705 = vrcp.f32 %v4557_v48  ;;  %v3809_v55 = vand.u32 2147483647, %v8665_v59  ;;  %v8696_v54 = vadd.f32 %v8338_v36, %v8555_v29 }
 0x36f   :  { %v8654_v32 = vpop.f32.mrf.mxu1  ;;  %v4560_v23 = vadd.f32 1.0, %v8650_v6  ;;  %v3786_v19 = vand.u32 2147483647, %v8672_v33  ;;  %v4432_v13 = vsel %vm4306_vm1, 1.0, %v8594_v57  ;;  %v3812_v46 = vand.u32 2147483647, %v8678_v20 }
 0x370   :  { %4932 = vst.msk [vmem:[%s10455_s9 + $0x70] sm:$0xff] %vm4917_vm2, %v4694_v42  ;;  %v3935_v40 = vsub.f32 0.0, %v3809_v55  ;;  %v3785_v57 = vand.u32 2147483647, %v8692_v41  ;;  %vm4305_vm3 = vcmp.ge.f32.partialorder %v8468_v18, 0.0  ;;  %vm4308_vm4 = vcmp.ge.f32.partialorder %v8487_v38, 0.0 }
 0x371   :  { %v8667_v24 = vpop.f32.mrf.mxu1  ;;  %v6692_v30 = vpop.eup %6691  ;;  %6707 = vrcp.f32 %v4560_v23  ;;  %v3912_v47 = vsub.f32 0.0, %v3786_v19  ;;  %v3938_v3 = vsub.f32 0.0, %v3812_v46  ;;  %v3811_v45 = vand.u32 2147483647, %v8696_v54 }
 0x372   :  { %v8674_v14 = vpop.eup %6693  ;;  %v4700_v53 = vmul.f32 %v6692_v30, %v4430_v26  ;;  %6709 = vpow2.f32 %v4083_v11  ;;  %v4087_v12 = vmul.f32 1.442695, %v3935_v40  ;;  %v4431_v28 = vsel %vm4305_vm3, 1.0, %v8632_v2 }
 0x373   :  { %v8680_v60 = vpop.f32.mrf.mxu1  ;;  %v8682_v5 = vpop.eup %6695  ;;  %v4559_v9 = vadd.f32 1.0, %v8674_v14  ;;  %6711 = vpow2.f32 %v4037_v49  ;;  %v4041_v42 = vmul.f32 1.442695, %v3912_v47  ;;  %v4093_v11 = vmul.f32 1.442695, %v3938_v3 }
 0x374   :  { %v6698_v8 = vpop.eup %6697  ;;  %4935 = vst.msk [vmem:[%s10455_s9 + $0x88] sm:$0xff] %vm4917_vm2, %v4700_v53  ;;  %v4562_v44 = vadd.f32 1.0, %v8682_v5  ;;  %6713 = vpow2.f32 %v4089_v17  ;;  %v3911_v30 = vsub.f32 0.0, %v3785_v57  ;;  %v3937_v26 = vsub.f32 0.0, %v3811_v45 }
 0x375   :  { %v8698_v52 = vpop.f32.mrf.mxu1  ;;  %v4698_v10 = vmul.f32 %v6698_v8, %v4429_v15  ;;  %6715 = vrcp.f32 %v4559_v9  ;;  %v8732_v18 = vadd.f32 %v8571_v43, %v8338_v36  ;;  %v8736_v37 = vadd.f32 %v8338_v36, %v8585_v50 }
 0x376   :  { %v6700_v25 = vpop.eup %6699  ;;  %6717 = vrcp.f32 %v4562_v44  ;;  %v4039_v17 = vmul.f32 1.442695, %v3911_v30  ;;  %v4091_v9 = vmul.f32 1.442695, %v3937_v26  ;;  %v8742_v2 = vadd.f32 %v8601_v27, %v8338_v36 }
 0x377   :  { %v8705_v48 = vpop.f32.mrf.mxu1  ;;  %v8707_v63 = vpop.eup %6701  ;;  %4934 = vst.msk [vmem:[%s10455_s9 + $0x80] sm:$0xff] %vm4917_vm2, %v4698_v10  ;;  %v4704_v29 = vmul.f32 %v6700_v25, %v4432_v13  ;;  %6719 = vpow2.f32 %v4035_v62  ;;  %v4434_v43 = vsel %vm4308_vm4, 1.0, %v8650_v6  ;;  %vm4307_vm5 = vcmp.ge.f32.partialorder %v8520_v61, 0.0 }
 0x378   :  { %v4561_v21 = vadd.f32 1.0, %v8707_v63  ;;  %v8717_v4 = vpop.eup %6703  ;;  %6721 = vpow2.f32 %v4087_v12  ;;  %v3814_v50 = vand.u32 2147483647, %v8732_v18  ;;  %v3813_v55 = vand.u32 2147483647, %v8736_v37 }
 0x379   :  { %v8715_v31 = vpop.f32.mrf.mxu1  ;;  %4937 = vst.msk [vmem:[%s10455_s9 + $0x98] sm:$0xff] %vm4917_vm2, %v4704_v29  ;;  %v4564_v23 = vadd.f32 1.0, %v8717_v4  ;;  %vm4310_vm6 = vcmp.ge.f32.partialorder %v8529_v7, 0.0  ;;  %v3816_v10 = vand.u32 2147483647, %v8742_v2  ;;  %vm4309_vm7 = vcmp.ge.f32.partialorder %v8569_v35, 0.0 }
 0x37a   :  { %6723 = vrcp.f32 %v4561_v21  ;;  %v3940_v6 = vsub.f32 0.0, %v3814_v50  ;;  %v4433_v13 = vsel %vm4307_vm5, 1.0, %v8674_v14  ;;  %v3939_v29 = vsub.f32 0.0, %v3813_v55 }
 0x37b   :  { %v8727_v49 = vpop.f32.mrf.mxu1  ;;  %v6706_v56 = vpop.eup %6705  ;;  %6725 = vpow2.f32 %v4041_v42  ;;  %v3942_v12 = vsub.f32 0.0, %v3816_v10  ;;  %v4436_v21 = vsel %vm4310_vm6, 1.0, %v8682_v5  ;;  %v8790_v7 = vadd.f32 %v8630_v22, %v8338_v36 }
 0x37c   :  { %v4702_v15 = vmul.f32 %v6706_v56, %v4431_v28  ;;  %6727 = vrcp.f32 %v4564_v23  ;;  %v4097_v57 = vmul.f32 1.442695, %v3940_v6  ;;  %v4095_v61 = vmul.f32 1.442695, %v3939_v29 }
 0x37d   :  { %v8738_v53 = vpop.f32.mrf.mxu1  ;;  %6729 = vpow2.f32 %v4093_v11  ;;  %v4101_v14 = vmul.f32 1.442695, %v3942_v12  ;;  %v8786_v28 = vadd.f32 %v8338_v36, %v8618_v51  ;;  %vm4312_vm8 = vcmp.ge.f32.partialorder %v8579_v1, 0.0 }
 0x37e   :  { %v6708_v62 = vpop.eup %6707  ;;  %4936 = vst.msk [vmem:[%s10455_s9 + $0x90] sm:$0xff] %vm4917_vm2, %v4702_v15  ;;  %6731 = vpow2.f32 %v4039_v17  ;;  %v8802_v51 = vadd.f32 %v8338_v36, %v8642_v34  ;;  %vm4311_vm9 = vcmp.ge.f32.partialorder %v8616_v16, 0.0  ;;  %v3818_v15 = vand.u32 2147483647, %v8790_v7 }
 0x37f   :  { %v8754_v8 = vpop.f32.mrf.mxu1  ;;  %v8756_v27 = vpop.eup %6709  ;;  %v4708_v44 = vmul.f32 %v6708_v62, %v4434_v43  ;;  %6733 = vpow2.f32 %v4091_v9  ;;  %v3815_v22 = vand.u32 2147483647, %v8786_v28  ;;  %v4435_v36 = vsel %vm4309_vm7, 1.0, %v8707_v63 }
 0x380   :  { %v8760_v40 = vpop.eup %6711  ;;  %v4563_v38 = vadd.f32 1.0, %v8756_v27  ;;  %vm4288_vm10 = vcmp.ge.f32.partialorder %v8621_v0, 0.0  ;;  %v3944_v55 = vsub.f32 0.0, %v3818_v15  ;;  %v3817_v63 = vand.u32 2147483647, %v8802_v51 }
 0x381   :  { %v8764_v19 = vpop.f32.mrf.mxu1  ;;  %v8766_v25 = vpop.eup %6713  ;;  %4939 = vst.msk [vmem:[%s10455_s9 + $0xa8] sm:$0xff] %vm4917_vm2, %v4708_v44  ;;  %v4540_v46 = vadd.f32 1.0, %v8760_v40  ;;  %v3941_v50 = vsub.f32 0.0, %v3815_v22  ;;  %vm4314_vm11 = vcmp.ge.f32.partialorder %v8625_v58, 0.0  ;;  %vm4287_vm12 = vcmp.ge.f32.partialorder %v8628_v39, 0.0 }
 0x382   :  { %v6716_v47 = vpop.eup %6715  ;;  %6735 = vrcp.f32 %v4563_v38  ;;  %v4566_v3 = vadd.f32 1.0, %v8766_v25  ;;  %v4438_v38 = vsel %vm4312_vm8, 1.0, %v8717_v4  ;;  %v4105_v29 = vmul.f32 1.442695, %v3944_v55 }
 0x383   :  { %v8780_v42 = vpop.f32.mrf.mxu1  ;;  %v6718_v45 = vpop.eup %6717  ;;  %v4706_v23 = vmul.f32 %v6716_v47, %v4433_v13  ;;  %6737 = vrcp.f32 %v4540_v46  ;;  %v4099_v46 = vmul.f32 1.442695, %v3941_v50  ;;  %v3943_v4 = vsub.f32 0.0, %v3817_v63 }
 0x384   :  { %v8782_v11 = vpop.eup %6719  ;;  %v4712_v56 = vmul.f32 %v6718_v45, %v4436_v21  ;;  %6739 = vrcp.f32 %v4566_v3  ;;  %v8846_v21 = vld [vmem:[#allocation2] ss:$0 sm:$0xff]  ;;  %vm4313_vm13 = vcmp.ge.f32.partialorder %v8665_v59, 0.0  ;;  %vm4290_vm14 = vcmp.ge.f32.partialorder %v8672_v33, 0.0 }
 0x385   :  { %v8792_v5 = vpop.f32.mrf.mxu1  ;;  %4938 = vst.msk [vmem:[%s10455_s9 + $0xa0] sm:$0xff] %vm4917_vm2, %v4706_v23  ;;  %v4539_v30 = vadd.f32 1.0, %v8782_v11  ;;  %6741 = vpow2.f32 %v4097_v57  ;;  %v8804_v26 = vpop.eup %6721  ;;  %v8850_v3 = vadd.f32 %v8846_v21, %v8654_v32  ;;  %v8854_v57 = vadd.f32 %v8846_v21, %v8667_v24 }
 0x386   :  { %4941 = vst.msk [vmem:[%s10455_s9 + $0xb8] sm:$0xff] %vm4917_vm2, %v4712_v56  ;;  %6743 = vpow2.f32 %v4095_v61  ;;  %v4565_v34 = vadd.f32 1.0, %v8804_v26  ;;  %v8858_v45 = vadd.f32 %v8846_v21, %v8680_v60  ;;  %v4103_v56 = vmul.f32 1.442695, %v3943_v4 }
 0x387   :  { %v8813_v17 = vpop.f32.mrf.mxu1  ;;  %v6724_v9 = vpop.eup %6723  ;;  %6745 = vrcp.f32 %v4539_v30  ;;  %v3820_v24 = vand.u32 2147483647, %v8850_v3  ;;  %v4437_v22 = vsel %vm4311_vm9, 1.0, %v8756_v27  ;;  %v4414_v15 = vsel %vm4288_vm10, 1.0, %v8760_v40 }
 0x388   :  { %v8820_v62 = vpop.eup %6725  ;;  %v4710_v43 = vmul.f32 %v6724_v9, %v4435_v36  ;;  %6747 = vpow2.f32 %v4101_v14  ;;  %v3819_v9 = vand.u32 2147483647, %v8854_v57  ;;  %v3822_v50 = vand.u32 2147483647, %v8858_v45 }
 0x389   :  { %v8822_v44 = vpop.f32.mrf.mxu1  ;;  %v6728_v10 = vpop.eup %6727  ;;  %6749 = vrcp.f32 %v4565_v34  ;;  %v4542_v35 = vadd.f32 1.0, %v8820_v62  ;;  %v4440_v16 = vsel %vm4314_vm11, 1.0, %v8766_v25  ;;  %vm4316_vm15 = vcmp.ge.f32.partialorder %v8678_v20, 0.0 }
 0x38a   :  { %v8829_v6 = vpop.eup %6729  ;;  %4940 = vst.msk [vmem:[%s10455_s9 + $0xb0] sm:$0xff] %vm4917_vm2, %v4710_v43  ;;  %v4716_v13 = vmul.f32 %v6728_v10, %v4438_v38  ;;  %v3946_v43 = vsub.f32 0.0, %v3820_v24  ;;  %v3945_v0 = vsub.f32 0.0, %v3819_v9  ;;  %v3948_v63 = vsub.f32 0.0, %v3822_v50 }
 0x38b   :  { %v8836_v12 = vpop.f32.mrf.mxu1  ;;  %6751 = vrcp.f32 %v4542_v35  ;;  %v4568_v1 = vadd.f32 1.0, %v8829_v6  ;;  %v8840_v47 = vpop.eup %6731  ;;  %v4413_v4 = vsel %vm4287_vm12, 1.0, %v8782_v11  ;;  %vm4289_vm0 = vcmp.ge.f32.partialorder %v8692_v41, 0.0 }
 0x38c   :  { %4943 = vst.msk [vmem:[%s10455_s9 + $0xc8] sm:$0xff] %vm4917_vm2, %v4716_v13  ;;  %6753 = vpow2.f32 %v4099_v46  ;;  %v8862_v61 = vpop.eup %6733  ;;  %v4541_v14 = vadd.f32 1.0, %v8840_v47  ;;  %v4109_v35 = vmul.f32 1.442695, %v3946_v43  ;;  %v8892_v13 = vadd.f32 %v8846_v21, %v8698_v52 }
 0x38d   :  { %v8860_v23 = vpop.f32.mrf.mxu1  ;;  %6755 = vrcp.f32 %v4568_v1  ;;  %v4567_v32 = vadd.f32 1.0, %v8862_v61  ;;  %v8906_v1 = vadd.f32 %v8846_v21, %v8705_v48  ;;  %v4113_v24 = vmul.f32 1.442695, %v3948_v63 }
 0x38e   :  { %6757 = vpow2.f32 %v4105_v29  ;;  %v4107_v29 = vmul.f32 1.442695, %v3945_v0  ;;  %v4439_v39 = vsel %vm4313_vm13, 1.0, %v8804_v26  ;;  %v8938_v50 = vadd.f32 %v8846_v21, %v8715_v31 }
 0x38f   :  { %v8869_v30 = vpop.f32.mrf.mxu1  ;;  %v6736_v60 = vpop.eup %6735  ;;  %6759 = vrcp.f32 %v4541_v14  ;;  %v8959_v63 = vadd.f32 %v8846_v21, %v8738_v53  ;;  %vm4315_vm1 = vcmp.ge.f32.partialorder %v8696_v54, 0.0  ;;  %v4415_v53 = vsel %vm4289_vm0, 1.0, %v8840_v47 }
 0x390   :  { %v6738_v36 = vpop.eup %6737  ;;  %v4714_v34 = vmul.f32 %v6736_v60, %v4437_v22  ;;  %6761 = vrcp.f32 %v4567_v32  ;;  %v3821_v60 = vand.u32 2147483647, %v8892_v13  ;;  %vm4318_vm3 = vcmp.ge.f32.partialorder %v8732_v18, 0.0 }
 0x391   :  { %v8879_v55 = vpop.f32.mrf.mxu1  ;;  %v6740_v10 = vpop.eup %6739  ;;  %v4668_v38 = vmul.f32 %v6738_v36, %v4414_v15  ;;  %6763 = vpow2.f32 %v4103_v56  ;;  %v3824_v15 = vand.u32 2147483647, %v8906_v1  ;;  %vm4317_vm4 = vcmp.ge.f32.partialorder %v8736_v37, 0.0 }
 0x392   :  { %v8884_v27 = vpop.eup %6741  ;;  %4942 = vst.msk [vmem:[%s10455_s9 + $0xc0] sm:$0xff] %vm4917_vm2, %v4714_v34  ;;  %v4720_v40 = vmul.f32 %v6740_v10, %v4440_v16  ;;  %6765 = vpow2.f32 %v4109_v35  ;;  %v4416_v34 = vsel %vm4290_vm14, 1.0, %v8820_v62  ;;  %v3947_v59 = vsub.f32 0.0, %v3821_v60 }
 0x393   :  { %v8894_v46 = vpop.f32.mrf.mxu1  ;;  %v8896_v58 = vpop.eup %6743  ;;  %4919 = vst.msk [vmem:[%s10455_s9 + $0x8] sm:$0xff] %vm4917_vm2, %v4668_v38  ;;  %v4570_v25 = vadd.f32 1.0, %v8884_v27  ;;  %v3950_v43 = vsub.f32 0.0, %v3824_v15  ;;  %v8942_v10 = vadd.f32 %v8846_v21, %v8727_v49  ;;  %v4442_v62 = vsel %vm4316_vm15, 1.0, %v8829_v6 }
 0x394   :  { %v6746_v52 = vpop.eup %6745  ;;  %4945 = vst.msk [vmem:[%s10455_s9 + $0xd8] sm:$0xff] %vm4917_vm2, %v4720_v40  ;;  %v4569_v14 = vadd.f32 1.0, %v8896_v58  ;;  %v4111_v31 = vmul.f32 1.442695, %v3947_v59  ;;  %v3823_v35 = vand.u32 2147483647, %v8938_v50  ;;  %v8999_v59 = vadd.f32 %v8846_v21, %v8754_v8 }
 0x395   :  { %v8917_v56 = vpop.f32.mrf.mxu1  ;;  %v8919_v32 = vpop.eup %6747  ;;  %v4666_v48 = vmul.f32 %v6746_v52, %v4413_v4  ;;  %6767 = vrcp.f32 %v4570_v25  ;;  %v4117_v40 = vmul.f32 1.442695, %v3950_v43  ;;  %v3826_v6 = vand.u32 2147483647, %v8942_v10 }
 0x396   :  { %v6750_v22 = vpop.eup %6749  ;;  %6769 = vrcp.f32 %v4569_v14  ;;  %v4572_v11 = vadd.f32 1.0, %v8919_v32  ;;  %v3949_v14 = vsub.f32 0.0, %v3823_v35  ;;  %v4441_v60 = vsel %vm4315_vm1, 1.0, %v8862_v61 }
 0x397   :  { %v8927_v9 = vpop.f32.mrf.mxu1  ;;  %4918 = vst.msk [vmem:[%s10455_s9] sm:$0xff] %vm4917_vm2, %v4666_v48  ;;  %v4718_v36 = vmul.f32 %v6750_v22, %v4439_v39  ;;  %6771 = vpow2.f32 %v4107_v29  ;;  %v3952_v22 = vsub.f32 0.0, %v3826_v6  ;;  %vm4320_vm5 = vcmp.ge.f32.partialorder %v8742_v2, 0.0 }
 0x398   :  { %v6752_v26 = vpop.eup %6751  ;;  %6773 = vrcp.f32 %v4572_v11  ;;  %v4115_v47 = vmul.f32 1.442695, %v3949_v14  ;;  %v3825_v11 = vand.u32 2147483647, %v8959_v63  ;;  %v4444_v8 = vsel %vm4318_vm3, 1.0, %v8884_v27 }
 0x399   :  { %v8944_v38 = vpop.f32.mrf.mxu1  ;;  %v8946_v16 = vpop.eup %6753  ;;  %4944 = vst.msk [vmem:[%s10455_s9 + $0xd0] sm:$0xff] %vm4917_vm2, %v4718_v36  ;;  %v4672_v33 = vmul.f32 %v6752_v26, %v4416_v34  ;;  %6775 = vpow2.f32 %v4113_v24  ;;  %v4121_v36 = vmul.f32 1.442695, %v3952_v22  ;;  %v9003_v26 = vadd.f32 %v8846_v21, %v8764_v19 }
 0x39a   :  { %v6756_v0 = vpop.eup %6755  ;;  %v4571_v49 = vadd.f32 1.0, %v8946_v16  ;;  %6777 = vpow2.f32 %v4111_v31  ;;  %v3951_v34 = vsub.f32 0.0, %v3825_v11  ;;  %v4443_v37 = vsel %vm4317_vm4, 1.0, %v8896_v58 }
 0x39b   :  { %v8961_v25 = vpop.f32.mrf.mxu1  ;;  %v8963_v29 = vpop.eup %6757  ;;  %4921 = vst.msk [vmem:[%s10455_s9 + $0x18] sm:$0xff] %vm4917_vm2, %v4672_v33  ;;  %v4724_v20 = vmul.f32 %v6756_v0, %v4442_v62  ;;  %v9013_v33 = vadd.f32 %v8846_v21, %v8780_v42  ;;  %v3828_v35 = vand.u32 2147483647, %v8999_v59  ;;  %v4446_v58 = vsel %vm4320_vm5, 1.0, %v8919_v32 }
 0x39c   :  { %v6760_v52 = vpop.eup %6759  ;;  %6779 = vrcp.f32 %v4571_v49  ;;  %v4574_v4 = vadd.f32 1.0, %v8963_v29  ;;  %v4119_v19 = vmul.f32 1.442695, %v3951_v34  ;;  %vm4319_vm6 = vcmp.ge.f32.partialorder %v8786_v28, 0.0 }
 0x39d   :  { %v8975_v48 = vpop.f32.mrf.mxu1  ;;  %v6762_v24 = vpop.eup %6761  ;;  %4947 = vst.msk [vmem:[%s10455_s9 + $0xe8] sm:$0xff] %vm4917_vm2, %v4724_v20  ;;  %v4670_v54 = vmul.f32 %v6760_v52, %v4415_v53  ;;  %6781 = vpow2.f32 %v4117_v40  ;;  %v3827_v20 = vand.u32 2147483647, %v9003_v26  ;;  %v3830_v27 = vand.u32 2147483647, %v9013_v33 }
 0x39e   :  { %v8982_v39 = vpop.eup %6763  ;;  %v4722_v41 = vmul.f32 %v6762_v24, %v4441_v60  ;;  %6783 = vrcp.f32 %v4574_v4  ;;  %v9027_v52 = vadd.f32 %v8846_v21, %v8792_v5  ;;  %v3954_v24 = vsub.f32 0.0, %v3828_v35 }
 0x39f   :  { %v8985_v15 = vpop.f32.mrf.mxu1  ;;  %4920 = vst.msk [vmem:[%s10455_s9 + $0x10] sm:$0xff] %vm4917_vm2, %v4670_v54  ;;  %v4573_v61 = vadd.f32 1.0, %v8982_v39  ;;  %6785 = vpow2.f32 %v4115_v47  ;;  %v9007_v18 = vpop.eup %6765  ;;  %v3953_v60 = vsub.f32 0.0, %v3827_v20  ;;  %v3956_v22 = vsub.f32 0.0, %v3830_v27 }
 0x3a0   :  { %4946 = vst.msk [vmem:[%s10455_s9 + $0xe0] sm:$0xff] %vm4917_vm2, %v4722_v41  ;;  %v4576_v31 = vadd.f32 1.0, %v9007_v18  ;;  %v9047_v41 = vadd.f32 %v8846_v21, %v8813_v17  ;;  %v4125_v47 = vmul.f32 1.442695, %v3954_v24  ;;  %vm4322_vm7 = vcmp.ge.f32.partialorder %v8790_v7, 0.0 }
 0x3a1   :  { %v9005_v43 = vpop.f32.mrf.mxu1  ;;  %6787 = vrcp.f32 %v4573_v61  ;;  %v4445_v61 = vsel %vm4319_vm6, 1.0, %v8946_v16  ;;  %v4123_v17 = vmul.f32 1.442695, %v3953_v60  ;;  %v4448_v20 = vsel %vm4322_vm7, 1.0, %v8963_v29 }
 0x3a2   :  { %v6768_v62 = vpop.eup %6767  ;;  %6789 = vpow2.f32 %v4121_v36  ;;  %v3829_v36 = vand.u32 2147483647, %v9027_v52  ;;  %vm4321_vm8 = vcmp.ge.f32.partialorder %v8802_v51, 0.0  ;;  %vm4324_vm9 = vcmp.ge.f32.partialorder %v8850_v3, 0.0 }
 0x3a3   :  { %v9017_v0 = vpop.f32.mrf.mxu1  ;;  %v6770_v49 = vpop.eup %6769  ;;  %v4728_v40 = vmul.f32 %v6768_v62, %v4444_v8  ;;  %6791 = vrcp.f32 %v4576_v31  ;;  %v4129_v8 = vmul.f32 1.442695, %v3956_v22  ;;  %v9067_v31 = vadd.f32 %v8846_v21, %v8822_v44 }
 0x3a4   :  { %v9022_v6 = vpop.eup %6771  ;;  %v4726_v42 = vmul.f32 %v6770_v49, %v4443_v37  ;;  %6793 = vpow2.f32 %v4119_v19  ;;  %v3955_v16 = vsub.f32 0.0, %v3829_v36  ;;  %v9091_v29 = vadd.f32 %v8846_v21, %v8836_v12 }
 0x3a5   :  { %v9029_v53 = vpop.f32.mrf.mxu1  ;;  %v6774_v4 = vpop.eup %6773  ;;  %4949 = vst.msk [vmem:[%s10455_s9 + $0xf8] sm:$0xff] %vm4917_vm2, %v4728_v40  ;;  %v4575_v14 = vadd.f32 1.0, %v9022_v6  ;;  %v3832_v40 = vand.u32 2147483647, %v9047_v41  ;;  %v3831_v7 = vand.u32 2147483647, %v9067_v31  ;;  %v9119_v3 = vadd.f32 %v8846_v21, %v8860_v23 }
 0x3a6   :  { %v9039_v54 = vpop.eup %6775  ;;  %4948 = vst.msk [vmem:[%s10455_s9 + $0xf0] sm:$0xff] %vm4917_vm2, %v4726_v42  ;;  %v4732_v5 = vmul.f32 %v6774_v4, %v4446_v58  ;;  %v4127_v27 = vmul.f32 1.442695, %v3955_v16  ;;  %v4450_v36 = vsel %vm4324_vm9, 1.0, %v9007_v18  ;;  %vm4323_vm10 = vcmp.ge.f32.partialorder %v8854_v57, 0.0 }
 0x3a7   :  { %v9049_v2 = vpop.f32.mrf.mxu1  ;;  %6795 = vrcp.f32 %v4575_v14  ;;  %v4578_v32 = vadd.f32 1.0, %v9039_v54  ;;  %v9053_v11 = vpop.eup %6777  ;;  %v3958_v4 = vsub.f32 0.0, %v3832_v40  ;;  %v9125_v16 = vadd.f32 %v8846_v21, %v8869_v30 }
 0x3a8   :  { %4951 = vst.msk [vmem:[%s10455_s9 + $0x108] sm:$0xff] %vm4917_vm2, %v4732_v5  ;;  %v4577_v62 = vadd.f32 1.0, %v9053_v11  ;;  %v4447_v5 = vsel %vm4321_vm8, 1.0, %v8982_v39  ;;  %v9129_v40 = vadd.f32 %v8846_v21, %v8879_v55  ;;  %vm4326_vm11 = vcmp.ge.f32.partialorder %v8858_v45, 0.0 }
 0x3a9   :  { %v9062_v34 = vpop.f32.mrf.mxu1  ;;  %v6780_v28 = vpop.eup %6779  ;;  %6797 = vrcp.f32 %v4578_v32  ;;  %v4133_v22 = vmul.f32 1.442695, %v3958_v4  ;;  %v4449_v30 = vsel %vm4323_vm10, 1.0, %v9022_v6  ;;  %vm4325_vm12 = vcmp.ge.f32.partialorder %v8892_v13, 0.0 }
 0x3aa   :  { %v9069_v19 = vpop.eup %6781  ;;  %v4730_v49 = vmul.f32 %v6780_v28, %v4445_v61  ;;  %6799 = vpow2.f32 %v4125_v47  ;;  %v3957_v61 = vsub.f32 0.0, %v3831_v7  ;;  %v3833_v55 = vand.u32 2147483647, %v9119_v3 }
 0x3ab   :  { %v9072_v37 = vpop.f32.mrf.mxu1  ;;  %v6784_v35 = vpop.eup %6783  ;;  %6801 = vrcp.f32 %v4577_v62  ;;  %v4580_v44 = vadd.f32 1.0, %v9069_v19  ;;  %v3836_v45 = vand.u32 2147483647, %v9125_v16  ;;  %v4452_v4 = vsel %vm4326_vm11, 1.0, %v9039_v54 }
 0x3ac   :  { %4950 = vst.msk [vmem:[%s10455_s9 + $0x100] sm:$0xff] %vm4917_vm2, %v4730_v49  ;;  %v4736_v42 = vmul.f32 %v6784_v35, %v4448_v20  ;;  %6803 = vpow2.f32 %v4123_v17  ;;  %v9085_v14 = vpop.eup %6785  ;;  %v3834_v17 = vand.u32 2147483647, %v9091_v29  ;;  %v4131_v62 = vmul.f32 1.442695, %v3957_v61 }
 0x3ad   :  { %v9083_v58 = vpop.f32.mrf.mxu1  ;;  %6805 = vrcp.f32 %v4580_v44  ;;  %v4579_v60 = vadd.f32 1.0, %v9085_v14  ;;  %v3835_v7 = vand.u32 2147483647, %v9129_v40  ;;  %v9151_v57 = vadd.f32 %v8846_v21, %v8894_v46 }
 0x3ae   :  { %v6788_v24 = vpop.eup %6787  ;;  %4953 = vst.msk [vmem:[%s10455_s9 + $0x118] sm:$0xff] %vm4917_vm2, %v4736_v42  ;;  %6807 = vpow2.f32 %v4129_v8  ;;  %v3960_v8 = vsub.f32 0.0, %v3834_v17  ;;  %vm4328_vm13 = vcmp.ge.f32.partialorder %v8906_v1, 0.0  ;;  %vm4327_vm14 = vcmp.ge.f32.partialorder %v8938_v50, 0.0 }
 0x3af   :  { %v9101_v32 = vpop.f32.mrf.mxu1  ;;  %v9103_v47 = vpop.eup %6789  ;;  %v4734_v12 = vmul.f32 %v6788_v24, %v4447_v5  ;;  %6809 = vpow2.f32 %v4127_v27  ;;  %v3959_v5 = vsub.f32 0.0, %v3833_v55  ;;  %v4451_v61 = vsel %vm4325_vm12, 1.0, %v9053_v11 }
 0x3b0   :  { %6811 = vrcp.f32 %v4579_v60  ;;  %v4582_v51 = vadd.f32 1.0, %v9103_v47  ;;  %v6792_v28 = vpop.eup %6791  ;;  %v4137_v23 = vmul.f32 1.442695, %v3960_v8  ;;  %v3962_v60 = vsub.f32 0.0, %v3836_v45 }
 0x3b1   :  { %v9111_v39 = vpop.f32.mrf.mxu1  ;;  %4952 = vst.msk [vmem:[%s10455_s9 + $0x110] sm:$0xff] %vm4917_vm2, %v4734_v12  ;;  %6813 = vpow2.f32 %v4133_v22  ;;  %v9121_v18 = vpop.eup %6793  ;;  %v4740_v49 = vmul.f32 %v6792_v28, %v4450_v36  ;;  %v9165_v12 = vadd.f32 %v8846_v21, %v8917_v56  ;;  %v4135_v36 = vmul.f32 1.442695, %v3959_v5 }
 0x3b2   :  { %6815 = vrcp.f32 %v4582_v51  ;;  %v4581_v20 = vadd.f32 1.0, %v9121_v18  ;;  %v3961_v51 = vsub.f32 0.0, %v3835_v7  ;;  %v4454_v56 = vsel %vm4328_vm13, 1.0, %v9069_v19 }
 0x3b3   :  { %v9131_v35 = vpop.f32.mrf.mxu1  ;;  %6817 = vpow2.f32 %v4131_v62  ;;  %4955 = vst.msk [vmem:[%s10455_s9 + $0x128] sm:$0xff] %vm4917_vm2, %v4740_v49  ;;  %v4141_v8 = vmul.f32 1.442695, %v3962_v60  ;;  %v3838_v13 = vand.u32 2147483647, %v9151_v57  ;;  %vm4330_vm15 = vcmp.ge.f32.partialorder %v8942_v10, 0.0 }
 0x3b4   :  { %v6796_v44 = vpop.eup %6795  ;;  %6819 = vrcp.f32 %v4581_v20  ;;  %v3837_v20 = vand.u32 2147483647, %v9165_v12  ;;  %v4453_v5 = vsel %vm4327_vm14, 1.0, %v9085_v14  ;;  %vm4329_vm0 = vcmp.ge.f32.partialorder %v8959_v63, 0.0 }
 0x3b5   :  { %v9145_v42 = vpop.f32.mrf.mxu1  ;;  %v4738_v27 = vmul.f32 %v6796_v44, %v4449_v30  ;;  %6821 = vpow2.f32 %v4137_v23  ;;  %v9185_v23 = vadd.f32 %v8846_v21, %v8927_v9  ;;  %v3964_v55 = vsub.f32 0.0, %v3838_v13 }
 0x3b6   :  { %v6798_v24 = vpop.eup %6797  ;;  %vm4332_vm1 = vcmp.ge.f32.partialorder %v8999_v59, 0.0  ;;  %v4456_v50 = vsel %vm4330_vm15, 1.0, %v9103_v47  ;;  %vm4331_vm3 = vcmp.ge.f32.partialorder %v9003_v26, 0.0  ;;  %vm4334_vm4 = vcmp.ge.f32.partialorder %v9013_v33, 0.0 }
 0x3b7   :  { %v9153_v6 = vpop.f32.mrf.mxu1  ;;  %v9155_v22 = vpop.eup %6799  ;;  %4954 = vst.msk [vmem:[%s10455_s9 + $0x120] sm:$0xff] %vm4917_vm2, %v4738_v27  ;;  %v4744_v54 = vmul.f32 %v6798_v24, %v4452_v4  ;;  %v4139_v27 = vmul.f32 1.442695, %v3961_v51  ;;  %v3963_v4 = vsub.f32 0.0, %v3837_v20  ;;  %vm4333_vm5 = vcmp.ge.f32.partialorder %v9027_v52, 0.0 }
 0x3b8   :  { %v6802_v46 = vpop.eup %6801  ;;  %v4584_v17 = vadd.f32 1.0, %v9155_v22  ;;  %vm4336_vm6 = vcmp.ge.f32.partialorder %v9047_v41, 0.0  ;;  %vm4335_vm7 = vcmp.ge.f32.partialorder %v9067_v31, 0.0  ;;  %vm4338_vm8 = vcmp.ge.f32.partialorder %v9091_v29, 0.0 }
 0x3b9   :  { %v9171_v28 = vpop.f32.mrf.mxu1  ;;  %v9173_v62 = vpop.eup %6803  ;;  %4957 = vst.msk [vmem:[%s10455_s9 + $0x138] sm:$0xff] %vm4917_vm2, %v4744_v54  ;;  %v4742_v1 = vmul.f32 %v6802_v46, %v4451_v61  ;;  %v4145_v61 = vmul.f32 1.442695, %v3964_v55  ;;  %v9354_v31 = vadd.f32 %v8846_v21, %v9049_v2  ;;  %vm4337_vm9 = vcmp.ge.f32.partialorder %v9119_v3, 0.0 }
 0x3ba   :  { %v6806_v11 = vpop.eup %6805  ;;  %6823 = vrcp.f32 %v4584_v17  ;;  %v4583_v49 = vadd.f32 1.0, %v9173_v62  ;;  %v3840_v17 = vand.u32 2147483647, %v9185_v23  ;;  %v4457_v59 = vsel %vm4331_vm3, 1.0, %v9173_v62 }
 0x3bb   :  { %v9187_v44 = vpop.f32.mrf.mxu1  ;;  %v9189_v30 = vpop.eup %6807  ;;  %4956 = vst.msk [vmem:[%s10455_s9 + $0x130] sm:$0xff] %vm4917_vm2, %v4742_v1  ;;  %v4748_v19 = vmul.f32 %v6806_v11, %v4454_v56  ;;  %6825 = vpow2.f32 %v4135_v36  ;;  %v4143_v1 = vmul.f32 1.442695, %v3963_v4  ;;  %v9228_v11 = vadd.f32 %v8846_v21, %v8944_v38 }
 0x3bc   :  { %v9196_v45 = vpop.eup %6809  ;;  %6827 = vrcp.f32 %v4583_v49  ;;  %v4586_v9 = vadd.f32 1.0, %v9189_v30  ;;  %v3966_v13 = vsub.f32 0.0, %v3840_v17  ;;  %v9236_v49 = vadd.f32 %v8846_v21, %v8961_v25 }
 0x3bd   :  { %v9199_v7 = vpop.f32.mrf.mxu1  ;;  %v6812_v24 = vpop.eup %6811  ;;  %4959 = vst.msk [vmem:[%s10455_s9 + $0x148] sm:$0xff] %vm4917_vm2, %v4748_v19  ;;  %v4585_v60 = vadd.f32 1.0, %v9196_v45  ;;  %6829 = vpow2.f32 %v4141_v8  ;;  %v4455_v38 = vsel %vm4329_vm0, 1.0, %v9121_v18  ;;  %v3839_v55 = vand.u32 2147483647, %v9228_v11 }
 0x3be   :  { %v9210_v54 = vpop.eup %6813  ;;  %v4746_v46 = vmul.f32 %v6812_v24, %v4453_v5  ;;  %6831 = vrcp.f32 %v4586_v9  ;;  %v4149_v19 = vmul.f32 1.442695, %v3966_v13  ;;  %v3842_v4 = vand.u32 2147483647, %v9236_v49 }
 0x3bf   :  { %v9214_v36 = vpop.f32.mrf.mxu1  ;;  %v6816_v51 = vpop.eup %6815  ;;  %6833 = vrcp.f32 %v4585_v60  ;;  %v4588_v14 = vadd.f32 1.0, %v9210_v54  ;;  %v3965_v63 = vsub.f32 0.0, %v3839_v55  ;;  %v9262_v60 = vadd.f32 %v8846_v21, %v8975_v48 }
 0x3c0   :  { %v9220_v56 = vpop.eup %6817  ;;  %4958 = vst.msk [vmem:[%s10455_s9 + $0x140] sm:$0xff] %vm4917_vm2, %v4746_v46  ;;  %v4752_v8 = vmul.f32 %v6816_v51, %v4456_v50  ;;  %6835 = vpow2.f32 %v4139_v27  ;;  %v3968_v5 = vsub.f32 0.0, %v3842_v4  ;;  %v9266_v46 = vadd.f32 %v8846_v21, %v8985_v15 }
 0x3c1   :  { %v9230_v10 = vpop.f32.mrf.mxu1  ;;  %6837 = vrcp.f32 %v4588_v14  ;;  %v4587_v47 = vadd.f32 1.0, %v9220_v56  ;;  %v6820_v20 = vpop.eup %6819  ;;  %v9271_v17 = vadd.f32 %v8846_v21, %v9005_v43  ;;  %v4458_v48 = vsel %vm4332_vm1, 1.0, %v9155_v22 }
 0x3c2   :  { %4961 = vst.msk [vmem:[%s10455_s9 + $0x158] sm:$0xff] %vm4917_vm2, %v4752_v8  ;;  %6839 = vpow2.f32 %v4145_v61  ;;  %v9248_v27 = vpop.eup %6821  ;;  %v4750_v25 = vmul.f32 %v6820_v20, %v4455_v38  ;;  %v4147_v61 = vmul.f32 1.442695, %v3965_v63  ;;  %v4153_v14 = vmul.f32 1.442695, %v3968_v5 }
 0x3c3   :  { %v9246_v9 = vpop.f32.mrf.mxu1  ;;  %6841 = vrcp.f32 %v4587_v47  ;;  %v4590_v24 = vadd.f32 1.0, %v9248_v27  ;;  %v9281_v15 = vadd.f32 %v8846_v21, %v9017_v0  ;;  %v3844_v43 = vand.u32 2147483647, %v9266_v46 }
 0x3c4   :  { %6843 = vpow2.f32 %v4143_v1  ;;  %4960 = vst.msk [vmem:[%s10455_s9 + $0x150] sm:$0xff] %vm4917_vm2, %v4750_v25  ;;  %v3841_v1 = vand.u32 2147483647, %v9262_v60  ;;  %v3843_v47 = vand.u32 2147483647, %v9271_v17  ;;  %v4460_v62 = vsel %vm4334_vm4, 1.0, %v9189_v30 }
 0x3c5   :  { %v9254_v18 = vpop.f32.mrf.mxu1  ;;  %6845 = vpow2.f32 %v4149_v19  ;;  %v3970_v25 = vsub.f32 0.0, %v3844_v43  ;;  %v4462_v52 = vsel %vm4336_vm6, 1.0, %v9210_v54  ;;  %v4464_v2 = vsel %vm4338_vm8, 1.0, %v9248_v27 }
 0x3c6   :  { %6847 = vrcp.f32 %v4590_v24  ;;  %v3967_v0 = vsub.f32 0.0, %v3841_v1  ;;  %v3969_v4 = vsub.f32 0.0, %v3843_v47  ;;  %v3846_v1 = vand.u32 2147483647, %v9281_v15 }
 0x3c7   :  { %v9273_v51 = vpop.f32.mrf.mxu1  ;;  %v6824_v50 = vpop.eup %6823  ;;  %6849 = vpow2.f32 %v4147_v61  ;;  %v9320_v47 = vadd.f32 %v8846_v21, %v9029_v53  ;;  %vm4340_vm10 = vcmp.ge.f32.partialorder %v9125_v16, 0.0  ;;  %vm4339_vm11 = vcmp.ge.f32.partialorder %v9129_v40, 0.0 }
 0x3c8   :  { %v9283_v8 = vpop.eup %6825  ;;  %v4756_v13 = vmul.f32 %v6824_v50, %v4458_v48  ;;  %6851 = vpow2.f32 %v4153_v14  ;;  %v4151_v5 = vmul.f32 1.442695, %v3967_v0  ;;  %v4459_v48 = vsel %vm4333_vm5, 1.0, %v9196_v45 }
 0x3c9   :  { %v9287_v20 = vpop.f32.mrf.mxu1  ;;  %v6828_v38 = vpop.eup %6827  ;;  %v4589_v22 = vadd.f32 1.0, %v9283_v8  ;;  %v4157_v14 = vmul.f32 1.442695, %v3970_v25  ;;  %v4155_v43 = vmul.f32 1.442695, %v3969_v4  ;;  %v9384_v27 = vadd.f32 %v8846_v21, %v9072_v37 }
 0x3ca   :  { %v9293_v19 = vpop.eup %6829  ;;  %4963 = vst.msk [vmem:[%s10455_s9 + $0x168] sm:$0xff] %vm4917_vm2, %v4756_v13  ;;  %v4754_v55 = vmul.f32 %v6828_v38, %v4457_v59  ;;  %v3972_v59 = vsub.f32 0.0, %v3846_v1  ;;  %v3845_v41 = vand.u32 2147483647, %v9320_v47  ;;  %vm4342_vm12 = vcmp.ge.f32.partialorder %v9151_v57, 0.0 }
 0x3cb   :  { %v9300_v24 = vpop.f32.mrf.mxu1  ;;  %v6832_v26 = vpop.eup %6831  ;;  %6853 = vrcp.f32 %v4589_v22  ;;  %v4592_v63 = vadd.f32 1.0, %v9293_v19  ;;  %vm4341_vm13 = vcmp.ge.f32.partialorder %v9165_v12, 0.0  ;;  %vm4344_vm14 = vcmp.ge.f32.partialorder %v9185_v23, 0.0 }
 0x3cc   :  { %v6834_v61 = vpop.eup %6833  ;;  %4962 = vst.msk [vmem:[%s10455_s9 + $0x160] sm:$0xff] %vm4917_vm2, %v4754_v55  ;;  %v4760_v50 = vmul.f32 %v6832_v26, %v4460_v62  ;;  %v4461_v55 = vsel %vm4335_vm7, 1.0, %v9220_v56  ;;  %v4161_v4 = vmul.f32 1.442695, %v3972_v59  ;;  %vm4343_vm15 = vcmp.ge.f32.partialorder %v9228_v11, 0.0 }
 0x3cd   :  { %v9314_v33 = vpop.f32.mrf.mxu1  ;;  %v9316_v30 = vpop.eup %6835  ;;  %v4758_v13 = vmul.f32 %v6834_v61, %v4459_v48  ;;  %6855 = vrcp.f32 %v4592_v63  ;;  %v9470_v12 = vadd.f32 %v8846_v21, %v9131_v35  ;;  %v9474_v23 = vadd.f32 %v8846_v21, %v9145_v42  ;;  %v9506_v11 = vld [vmem:[#allocation2] ss:$0 sm:$0xff] }
 0x3ce   :  { %v6838_v38 = vpop.eup %6837  ;;  %4965 = vst.msk [vmem:[%s10455_s9 + $0x178] sm:$0xff] %vm4917_vm2, %v4760_v50  ;;  %v4591_v45 = vadd.f32 1.0, %v9316_v30  ;;  %6857 = vpow2.f32 %v4151_v5  ;;  %v3971_v5 = vsub.f32 0.0, %v3845_v41  ;;  %v9362_v50 = vadd.f32 %v8846_v21, %v9062_v34 }
 0x3cf   :  { %v9330_v22 = vpop.f32.mrf.mxu1  ;;  %v9332_v0 = vpop.eup %6839  ;;  %4964 = vst.msk [vmem:[%s10455_s9 + $0x170] sm:$0xff] %vm4917_vm2, %v4758_v13  ;;  %v4764_v53 = vmul.f32 %v6838_v38, %v4462_v52  ;;  %6859 = vpow2.f32 %v4157_v14  ;;  %v3848_v34 = vand.u32 2147483647, %v9354_v31  ;;  %vm4346_vm0 = vcmp.ge.f32.partialorder %v9236_v49, 0.0 }
 0x3d0   :  { %v6842_v54 = vpop.eup %6841  ;;  %6861 = vrcp.f32 %v4591_v45  ;;  %v4594_v25 = vadd.f32 1.0, %v9332_v0  ;;  %v4159_v13 = vmul.f32 1.442695, %v3971_v5  ;;  %v3847_v29 = vand.u32 2147483647, %v9362_v50 }
 0x3d1   :  { %v9344_v26 = vpop.f32.mrf.mxu1  ;;  %v9346_v62 = vpop.eup %6843  ;;  %4967 = vst.msk [vmem:[%s10455_s9 + $0x188] sm:$0xff] %vm4917_vm2, %v4764_v53  ;;  %v4762_v63 = vmul.f32 %v6842_v54, %v4461_v55  ;;  %6863 = vpow2.f32 %v4155_v43  ;;  %v3974_v53 = vsub.f32 0.0, %v3848_v34  ;;  %v3850_v55 = vand.u32 2147483647, %v9384_v27 }
 0x3d2   :  { %v9356_v56 = vpop.eup %6845  ;;  %6865 = vrcp.f32 %v4594_v25  ;;  %v4593_v61 = vadd.f32 1.0, %v9346_v62  ;;  %v3973_v54 = vsub.f32 0.0, %v3847_v29  ;;  %v9404_v5 = vadd.f32 %v8846_v21, %v9083_v58 }
 0x3d3   :  { %v9364_v48 = vpop.f32.mrf.mxu1  ;;  %v6848_v14 = vpop.eup %6847  ;;  %4966 = vst.msk [vmem:[%s10455_s9 + $0x180] sm:$0xff] %vm4917_vm2, %v4762_v63  ;;  %v4596_v1 = vadd.f32 1.0, %v9356_v56  ;;  %6867 = vpow2.f32 %v4161_v4  ;;  %v4463_v4 = vsel %vm4337_vm9, 1.0, %v9283_v8  ;;  %v4165_v63 = vmul.f32 1.442695, %v3974_v53 }
 0x3d4   :  { %v4768_v43 = vmul.f32 %v6848_v14, %v4464_v2  ;;  %6869 = vrcp.f32 %v4593_v61  ;;  %v9378_v52 = vpop.eup %6849  ;;  %v4163_v2 = vmul.f32 1.442695, %v3973_v54  ;;  %v3849_v3 = vand.u32 2147483647, %v9404_v5 }
 0x3d5   :  { %v9376_v38 = vpop.f32.mrf.mxu1  ;;  %6871 = vrcp.f32 %v4596_v1  ;;  %v9386_v45 = vpop.eup %6851  ;;  %v4595_v59 = vadd.f32 1.0, %v9378_v52  ;;  %v3976_v1 = vsub.f32 0.0, %v3850_v55  ;;  %v9414_v8 = vadd.f32 %v8846_v21, %v9101_v32 }
 0x3d6   :  { %4969 = vst.msk [vmem:[%s10455_s9 + $0x198] sm:$0xff] %vm4917_vm2, %v4768_v43  ;;  %6873 = vpow2.f32 %v4159_v13  ;;  %v4598_v37 = vadd.f32 1.0, %v9386_v45  ;;  %v4466_v43 = vsel %vm4340_vm10, 1.0, %v9293_v19  ;;  %v9426_v19 = vadd.f32 %v8846_v21, %v9111_v39 }
 0x3d7   :  { %v9394_v41 = vpop.f32.mrf.mxu1  ;;  %6875 = vrcp.f32 %v4595_v59  ;;  %v4169_v16 = vmul.f32 1.442695, %v3976_v1  ;;  %v3975_v53 = vsub.f32 0.0, %v3849_v3  ;;  %v4465_v39 = vsel %vm4339_vm11, 1.0, %v9316_v30 }
 0x3d8   :  { %v6854_v25 = vpop.eup %6853  ;;  %6877 = vrcp.f32 %v4598_v37  ;;  %v3852_v37 = vand.u32 2147483647, %v9414_v8  ;;  %v3851_v30 = vand.u32 2147483647, %v9426_v19  ;;  %vm4345_vm1 = vcmp.ge.f32.partialorder %v9262_v60, 0.0 }
 0x3d9   :  { %v9406_v61 = vpop.f32.mrf.mxu1  ;;  %v4766_v14 = vmul.f32 %v6854_v25, %v4463_v4  ;;  %6879 = vpow2.f32 %v4165_v63  ;;  %v4167_v63 = vmul.f32 1.442695, %v3975_v53  ;;  %v3854_v42 = vand.u32 2147483647, %v9470_v12 }
 0x3da   :  { %v6856_v13 = vpop.eup %6855  ;;  %6881 = vpow2.f32 %v4163_v2  ;;  %v3977_v53 = vsub.f32 0.0, %v3851_v30  ;;  %vm4348_vm3 = vcmp.ge.f32.partialorder %v9266_v46, 0.0  ;;  %vm4347_vm4 = vcmp.ge.f32.partialorder %v9271_v17, 0.0 }
 0x3db   :  { %v9416_v58 = vpop.f32.mrf.mxu1  ;;  %v9418_v34 = vpop.eup %6857  ;;  %4968 = vst.msk [vmem:[%s10455_s9 + $0x190] sm:$0xff] %vm4917_vm2, %v4766_v14  ;;  %v4772_v29 = vmul.f32 %v6856_v13, %v4466_v43  ;;  %6883 = vpow2.f32 %v4169_v16  ;;  %v3978_v14 = vsub.f32 0.0, %v3852_v37  ;;  %v4468_v13 = vsel %vm4342_vm12, 1.0, %v9332_v0 }
 0x3dc   :  { %v9428_v59 = vpop.eup %6859  ;;  %v4597_v32 = vadd.f32 1.0, %v9418_v34  ;;  %v4470_v16 = vsel %vm4344_vm14, 1.0, %v9356_v56  ;;  %vm4350_vm5 = vcmp.ge.f32.partialorder %v9281_v15, 0.0  ;;  %v9552_v46 = vadd.f32 %v9506_v11, %v9214_v36 }
 0x3dd   :  { %v6862_v54 = vpop.eup %6861  ;;  %4971 = vst.msk [vmem:[%s10455_s9 + $0x1a8] sm:$0xff] %vm4917_vm2, %v4772_v29  ;;  %v4600_v55 = vadd.f32 1.0, %v9428_v59  ;;  %v9444_v2 = vpop.f32.mrf.mxu1  ;;  %v4467_v29 = vsel %vm4341_vm13, 1.0, %v9346_v62  ;;  %v4173_v57 = vmul.f32 1.442695, %v3978_v14  ;;  %v4474_v60 = vsel %vm4348_vm3, 1.0, %v9428_v59 }
 0x3de   :  { %v9442_v25 = vpop.eup %6863  ;;  %v4770_v4 = vmul.f32 %v6862_v54, %v4465_v39  ;;  %6885 = vrcp.f32 %v4597_v32  ;;  %vm4349_vm6 = vcmp.ge.f32.partialorder %v9320_v47, 0.0  ;;  %vm4352_vm7 = vcmp.ge.f32.partialorder %v9354_v31, 0.0 }
 0x3df   :  { %v6866_v1 = vpop.eup %6865  ;;  %6887 = vrcp.f32 %v4600_v55  ;;  %v4599_v40 = vadd.f32 1.0, %v9442_v25  ;;  %v9476_v62 = vpop.f32.mrf.mxu1  ;;  %v4171_v55 = vmul.f32 1.442695, %v3977_v53  ;;  %v9522_v53 = vadd.f32 %v9506_v11, %v9187_v44 }
 0x3e0   :  { %v9451_v43 = vpop.eup %6867  ;;  %4970 = vst.msk [vmem:[%s10455_s9 + $0x1a0] sm:$0xff] %vm4917_vm2, %v4770_v4  ;;  %v4776_v3 = vmul.f32 %v6866_v1, %v4468_v13  ;;  %6889 = vpow2.f32 %v4167_v63  ;;  %v9482_v4 = vadd.f32 %v8846_v21, %v9153_v6  ;;  %v4469_v21 = vsel %vm4343_vm15, 1.0, %v9378_v52 }
 0x3e1   :  { %v6870_v0 = vpop.eup %6869  ;;  %6891 = vrcp.f32 %v4599_v40  ;;  %v4602_v32 = vadd.f32 1.0, %v9451_v43  ;;  %v3853_v6 = vand.u32 2147483647, %v9474_v23  ;;  %v4472_v13 = vsel %vm4346_vm0, 1.0, %v9386_v45  ;;  %v9502_v30 = vpop.f32.mrf.mxu1 }
 0x3e2   :  { %v6872_v37 = vpop.eup %6871  ;;  %4973 = vst.msk [vmem:[%s10455_s9 + $0x1b8] sm:$0xff] %vm4917_vm2, %v4776_v3  ;;  %v4774_v54 = vmul.f32 %v6870_v0, %v4467_v29  ;;  %6893 = vpow2.f32 %v4173_v57  ;;  %v3856_v49 = vand.u32 2147483647, %v9482_v4  ;;  %v3980_v40 = vsub.f32 0.0, %v3854_v42 }
 0x3e3   :  { %v9478_v56 = vpop.eup %6873  ;;  %v4780_v39 = vmul.f32 %v6872_v37, %v4470_v16  ;;  %6895 = vrcp.f32 %v4602_v32  ;;  %v3979_v57 = vsub.f32 0.0, %v3853_v6  ;;  %v9510_v52 = vadd.f32 %v9506_v11, %v9171_v28 }
 0x3e4   :  { %4972 = vst.msk [vmem:[%s10455_s9 + $0x1b0] sm:$0xff] %vm4917_vm2, %v4774_v54  ;;  %v4601_v35 = vadd.f32 1.0, %v9478_v56  ;;  %v6876_v63 = vpop.eup %6875  ;;  %6897 = vpow2.f32 %v4171_v55  ;;  %v3982_v0 = vsub.f32 0.0, %v3856_v49  ;;  %v4177_v32 = vmul.f32 1.442695, %v3980_v40 }
 0x3e5   :  { %4975 = vst.msk [vmem:[%s10455_s9 + $0x1c8] sm:$0xff] %vm4917_vm2, %v4780_v39  ;;  %v6878_v14 = vpop.eup %6877  ;;  %v4778_v1 = vmul.f32 %v6876_v63, %v4469_v21  ;;  %v4471_v28 = vsel %vm4345_vm1, 1.0, %v9418_v34  ;;  %v4175_v44 = vmul.f32 1.442695, %v3979_v57  ;;  %v3855_v39 = vand.u32 2147483647, %v9510_v52 }
 0x3e6   :  { %6899 = vrcp.f32 %v4601_v35  ;;  %v9504_v3 = vpop.eup %6879  ;;  %v4784_v29 = vmul.f32 %v6878_v14, %v4472_v13  ;;  %v3858_v55 = vand.u32 2147483647, %v9522_v53  ;;  %v9538_v35 = vpop.f32.mrf.mxu1  ;;  %v4181_v63 = vmul.f32 1.442695, %v3982_v0 }
 0x3e7   :  { %v9512_v16 = vpop.eup %6881  ;;  %4974 = vst.msk [vmem:[%s10455_s9 + $0x1c0] sm:$0xff] %vm4917_vm2, %v4778_v1  ;;  %v4604_v45 = vadd.f32 1.0, %v9504_v3  ;;  %v3981_v49 = vsub.f32 0.0, %v3855_v39  ;;  %v9548_v40 = vadd.f32 %v9506_v11, %v9199_v7  ;;  %v9586_v15 = vadd.f32 %v9506_v11, %v9230_v10 }
 0x3e8   :  { %4977 = vst.msk [vmem:[%s10455_s9 + $0x1d8] sm:$0xff] %vm4917_vm2, %v4784_v29  ;;  %v4603_v37 = vadd.f32 1.0, %v9512_v16  ;;  %v9534_v54 = vpop.eup %6883  ;;  %v3984_v14 = vsub.f32 0.0, %v3858_v55  ;;  %v4473_v29 = vsel %vm4347_vm4, 1.0, %v9442_v25  ;;  %v9562_v7 = vpop.f32.mrf.mxu1  ;;  %v4476_v25 = vsel %vm4350_vm5, 1.0, %v9451_v43 }
 0x3e9   :  { %6901 = vrcp.f32 %v4604_v45  ;;  %v4606_v34 = vadd.f32 1.0, %v9534_v54  ;;  %v4179_v0 = vmul.f32 1.442695, %v3981_v49  ;;  %v3860_v55 = vand.u32 2147483647, %v9552_v46 }
 0x3ea   :  { %6903 = vrcp.f32 %v4603_v37  ;;  %v9590_v43 = vadd.f32 %v9506_v11, %v9246_v9  ;;  %v4475_v31 = vsel %vm4349_vm6, 1.0, %v9478_v56  ;;  %vm4351_vm8 = vcmp.ge.f32.partialorder %v9362_v50, 0.0 }
 0x3eb   :  { %v6886_v42 = vpop.eup %6885  ;;  %6905 = vpow2.f32 %v4177_v32  ;;  %v4185_v32 = vmul.f32 1.442695, %v3984_v14  ;;  %v3986_v9 = vsub.f32 0.0, %v3860_v55  ;;  %v4478_v49 = vsel %vm4352_vm7, 1.0, %v9504_v3 }
 0x3ec   :  { %v6888_v21 = vpop.eup %6887  ;;  %v4782_v6 = vmul.f32 %v6886_v42, %v4471_v28  ;;  %6907 = vrcp.f32 %v4606_v34  ;;  %v3857_v28 = vand.u32 2147483647, %v9548_v40  ;;  %v3862_v14 = vand.u32 2147483647, %v9590_v43 }
 0x3ed   :  { %v9544_v1 = vpop.eup %6889  ;;  %v4788_v13 = vmul.f32 %v6888_v21, %v4474_v60  ;;  %6909 = vpow2.f32 %v4175_v44  ;;  %v9592_v60 = vpop.f32.mrf.mxu1  ;;  %v4189_v47 = vmul.f32 1.442695, %v3986_v9  ;;  %v9616_v56 = vadd.f32 %v9506_v11, %v9273_v51 }
 0x3ee   :  { %v6892_v59 = vpop.eup %6891  ;;  %4976 = vst.msk [vmem:[%s10455_s9 + $0x1d0] sm:$0xff] %vm4917_vm2, %v4782_v6  ;;  %v4605_v57 = vadd.f32 1.0, %v9544_v1  ;;  %6911 = vpow2.f32 %v4181_v63  ;;  %v3983_v39 = vsub.f32 0.0, %v3857_v28  ;;  %v3859_v6 = vand.u32 2147483647, %v9586_v15 }
 0x3ef   :  { %v9564_v45 = vpop.eup %6893  ;;  %4979 = vst.msk [vmem:[%s10455_s9 + $0x1e8] sm:$0xff] %vm4917_vm2, %v4788_v13  ;;  %v4786_v36 = vmul.f32 %v6892_v59, %v4473_v29  ;;  %v9608_v13 = vadd.f32 %v9506_v11, %v9254_v18  ;;  %v9618_v3 = vpop.f32.mrf.mxu1  ;;  %v4477_v29 = vsel %vm4351_vm8, 1.0, %v9512_v16  ;;  %vm4354_vm9 = vcmp.ge.f32.partialorder %v9384_v27, 0.0 }
 0x3f0   :  { %v6896_v17 = vpop.eup %6895  ;;  %6913 = vrcp.f32 %v4605_v57  ;;  %v4608_v37 = vadd.f32 1.0, %v9564_v45  ;;  %v4183_v10 = vmul.f32 1.442695, %v3983_v39  ;;  %v3985_v50 = vsub.f32 0.0, %v3859_v6 }
 0x3f1   :  { %4978 = vst.msk [vmem:[%s10455_s9 + $0x1e0] sm:$0xff] %vm4917_vm2, %v4786_v36  ;;  %v4792_v44 = vmul.f32 %v6896_v17, %v4476_v25  ;;  %6915 = vpow2.f32 %v4179_v0  ;;  %v9581_v42 = vpop.eup %6897  ;;  %v3988_v57 = vsub.f32 0.0, %v3862_v14  ;;  %v3861_v18 = vand.u32 2147483647, %v9608_v13 }
 0x3f2   :  { %6917 = vrcp.f32 %v4608_v37  ;;  %v4607_v63 = vadd.f32 1.0, %v9581_v42  ;;  %v9624_v0 = vadd.f32 %v9506_v11, %v9287_v20  ;;  %v4187_v28 = vmul.f32 1.442695, %v3985_v50 }
 0x3f3   :  { %v6900_v34 = vpop.eup %6899  ;;  %4981 = vst.msk [vmem:[%s10455_s9 + $0x1f8] sm:$0xff] %vm4917_vm2, %v4792_v44  ;;  %6919 = vpow2.f32 %v4185_v32  ;;  %v3864_v17 = vand.u32 2147483647, %v9616_v56  ;;  %v4193_v37 = vmul.f32 1.442695, %v3988_v57  ;;  %v3987_v16 = vsub.f32 0.0, %v3861_v18 }
 0x3f4   :  { %v4790_v21 = vmul.f32 %v6900_v34, %v4475_v31  ;;  %6921 = vrcp.f32 %v4607_v63  ;;  %v4480_v20 = vsel %vm4354_vm9, 1.0, %v9534_v54  ;;  %v9636_v34 = vpop.f32.mrf.mxu1  ;;  %vm4353_vm10 = vcmp.ge.f32.partialorder %v9404_v5, 0.0 }
 0x3f5   :  { %6923 = vpow2.f32 %v4183_v10  ;;  %v3990_v55 = vsub.f32 0.0, %v3864_v17  ;;  %v4191_v63 = vmul.f32 1.442695, %v3987_v16  ;;  %v3863_v10 = vand.u32 2147483647, %v9624_v0 }
 0x3f6   :  { %4980 = vst.msk [vmem:[%s10455_s9 + $0x1f0] sm:$0xff] %vm4917_vm2, %v4790_v21  ;;  %v6902_v59 = vpop.eup %6901  ;;  %6925 = vpow2.f32 %v4189_v47  ;;  %vm4356_vm11 = vcmp.ge.f32.partialorder %v9414_v8, 0.0  ;;  %v9660_v5 = vadd.f32 %v9506_v11, %v9300_v24  ;;  %vm4355_vm12 = vcmp.ge.f32.partialorder %v9426_v19, 0.0 }
 0x3f7   :  { %v6904_v36 = vpop.eup %6903  ;;  %v4796_v32 = vmul.f32 %v6902_v59, %v4478_v49  ;;  %6927 = vpow2.f32 %v4187_v28  ;;  %v4197_v9 = vmul.f32 1.442695, %v3990_v55  ;;  %v4479_v49 = vsel %vm4353_vm10, 1.0, %v9544_v1 }
 0x3f8   :  { %v9627_v51 = vpop.eup %6905  ;;  %v4794_v25 = vmul.f32 %v6904_v36, %v4477_v29  ;;  %6929 = vpow2.f32 %v4193_v37  ;;  %v3989_v47 = vsub.f32 0.0, %v3863_v10  ;;  %v9662_v29 = vpop.f32.mrf.mxu1  ;;  %v4482_v18 = vsel %vm4356_vm11, 1.0, %v9564_v45 }
 0x3f9   :  { %v6908_v44 = vpop.eup %6907  ;;  %4983 = vst.msk [vmem:[%s10455_s9 + $0x208] sm:$0xff] %vm4917_vm2, %v4796_v32  ;;  %v4610_v39 = vadd.f32 1.0, %v9627_v51  ;;  %v3866_v24 = vand.u32 2147483647, %v9660_v5  ;;  %v4481_v28 = vsel %vm4355_vm12, 1.0, %v9581_v42  ;;  %v9678_v17 = vadd.f32 %v9506_v11, %v9314_v33 }
 0x3fa   :  { %v9638_v31 = vpop.eup %6909  ;;  %4982 = vst.msk [vmem:[%s10455_s9 + $0x200] sm:$0xff] %vm4917_vm2, %v4794_v25  ;;  %v4800_v27 = vmul.f32 %v6908_v44, %v4480_v20  ;;  %v4195_v36 = vmul.f32 1.442695, %v3989_v47  ;;  %v9686_v37 = vadd.f32 %v9506_v11, %v9330_v22  ;;  %v9690_v42 = vadd.f32 %v9506_v11, %v9344_v26  ;;  %v9692_v16 = vpop.f32.mrf.mxu1 }
 0x3fb   :  { %v9645_v21 = vpop.eup %6911  ;;  %6931 = vrcp.f32 %v4610_v39  ;;  %v4609_v54 = vadd.f32 1.0, %v9638_v31  ;;  %v3992_v19 = vsub.f32 0.0, %v3866_v24  ;;  %v3865_v20 = vand.u32 2147483647, %v9678_v17 }
 0x3fc   :  { %4985 = vst.msk [vmem:[%s10455_s9 + $0x218] sm:$0xff] %vm4917_vm2, %v4800_v27  ;;  %v4612_v14 = vadd.f32 1.0, %v9645_v21  ;;  %6933 = vpow2.f32 %v4191_v63  ;;  %vm4358_vm13 = vcmp.ge.f32.partialorder %v9470_v12, 0.0  ;;  %v3868_v22 = vand.u32 2147483647, %v9686_v37 }
 0x3fd   :  { %v6914_v6 = vpop.eup %6913  ;;  %6935 = vrcp.f32 %v4609_v54  ;;  %v4201_v55 = vmul.f32 1.442695, %v3992_v19  ;;  %vm4357_vm14 = vcmp.ge.f32.partialorder %v9474_v23, 0.0  ;;  %vm4360_vm15 = vcmp.ge.f32.partialorder %v9482_v4, 0.0 }
 0x3fe   :  { %v9655_v50 = vpop.eup %6915  ;;  %v4798_v59 = vmul.f32 %v6914_v6, %v4479_v49  ;;  %6937 = vrcp.f32 %v4612_v14  ;;  %v3991_v26 = vsub.f32 0.0, %v3865_v20  ;;  %v3867_v63 = vand.u32 2147483647, %v9690_v42 }
 0x3ff   :  { %v6918_v57 = vpop.eup %6917  ;;  %v4611_v1 = vadd.f32 1.0, %v9655_v50  ;;  %6939 = vpow2.f32 %v4197_v9  ;;  %vm4359_vm0 = vcmp.ge.f32.partialorder %v9510_v52, 0.0  ;;  %v3994_v54 = vsub.f32 0.0, %v3868_v22  ;;  %v9711_v9 = vpop.f32.mrf.mxu1 }
 0x400   :  { %v9666_v32 = vpop.eup %6919  ;;  %4984 = vst.msk [vmem:[%s10455_s9 + $0x210] sm:$0xff] %vm4917_vm2, %v4798_v59  ;;  %v4804_v8 = vmul.f32 %v6918_v57, %v4482_v18  ;;  %v4199_v49 = vmul.f32 1.442695, %v3991_v26  ;;  %v3993_v14 = vsub.f32 0.0, %v3867_v63  ;;  %v9717_v47 = vadd.f32 %v9506_v11, %v9364_v48 }
 0x401   :  { %6941 = vrcp.f32 %v4611_v1  ;;  %v4614_v45 = vadd.f32 1.0, %v9666_v32  ;;  %v6922_v25 = vpop.eup %6921  ;;  %vm4362_vm1 = vcmp.ge.f32.partialorder %v9522_v53, 0.0  ;;  %v4205_v18 = vmul.f32 1.442695, %v3994_v54  ;;  %v9734_v19 = vpop.f32.mrf.mxu1 }
 0x402   :  { %4987 = vst.msk [vmem:[%s10455_s9 + $0x228] sm:$0xff] %vm4917_vm2, %v4804_v8  ;;  %6943 = vpow2.f32 %v4195_v36  ;;  %v9694_v33 = vpop.eup %6923  ;;  %v4802_v44 = vmul.f32 %v6922_v25, %v4481_v28  ;;  %v4484_v36 = vsel %vm4358_vm13, 1.0, %v9627_v51  ;;  %v4483_v8 = vsel %vm4357_vm14, 1.0, %v9638_v31 }
 0x403   :  { %6945 = vrcp.f32 %v4614_v45  ;;  %v4613_v39 = vadd.f32 1.0, %v9694_v33  ;;  %v9700_v27 = vpop.eup %6925  ;;  %vm4361_vm3 = vcmp.ge.f32.partialorder %v9548_v40, 0.0  ;;  %v4203_v45 = vmul.f32 1.442695, %v3993_v14 }
 0x404   :  { %4986 = vst.msk [vmem:[%s10455_s9 + $0x220] sm:$0xff] %vm4917_vm2, %v4802_v44  ;;  %v4616_v10 = vadd.f32 1.0, %v9700_v27  ;;  %v9713_v6 = vpop.eup %6927  ;;  %v3870_v25 = vand.u32 2147483647, %v9717_v47  ;;  %v4486_v23 = vsel %vm4360_vm15, 1.0, %v9645_v21  ;;  %v9742_v31 = vadd.f32 %v9506_v11, %v9376_v38 }
 0x405   :  { %6947 = vrcp.f32 %v4613_v39  ;;  %v9719_v59 = vpop.eup %6929  ;;  %v4615_v57 = vadd.f32 1.0, %v9713_v6  ;;  %v9750_v4 = vadd.f32 %v9506_v11, %v9394_v41  ;;  %vm4364_vm4 = vcmp.ge.f32.partialorder %v9552_v46, 0.0 }
 0x406   :  { %6949 = vpow2.f32 %v4201_v55  ;;  %v4618_v48 = vadd.f32 1.0, %v9719_v59  ;;  %v3996_v39 = vsub.f32 0.0, %v3870_v25  ;;  %v3869_v38 = vand.u32 2147483647, %v9742_v31 }
 0x407   :  { %6951 = vrcp.f32 %v4616_v10  ;;  %v4485_v26 = vsel %vm4359_vm0, 1.0, %v9655_v50  ;;  %v9764_v10 = vpop.f32.mrf.mxu1  ;;  %vm4363_vm5 = vcmp.ge.f32.partialorder %v9586_v15, 0.0  ;;  %v3872_v52 = vand.u32 2147483647, %v9750_v4 }
 0x408   :  { %v6932_v1 = vpop.eup %6931  ;;  %6953 = vpow2.f32 %v4199_v49  ;;  %v4209_v63 = vmul.f32 1.442695, %v3996_v39  ;;  %v3995_v14 = vsub.f32 0.0, %v3869_v38  ;;  %vm4366_vm6 = vcmp.ge.f32.partialorder %v9590_v43, 0.0 }
 0x409   :  { %v9730_v24 = vpop.eup %6933  ;;  %v4808_v28 = vmul.f32 %v6932_v1, %v4484_v36  ;;  %6955 = vrcp.f32 %v4615_v57  ;;  %v4488_v57 = vsel %vm4362_vm1, 1.0, %v9666_v32  ;;  %v9780_v1 = vadd.f32 %v9506_v11, %v9406_v61  ;;  %v9792_v61 = vpop.f32.mrf.mxu1 }
 0x40a   :  { %v6936_v12 = vpop.eup %6935  ;;  %6957 = vrcp.f32 %v4618_v48  ;;  %v4617_v51 = vadd.f32 1.0, %v9730_v24  ;;  %v3998_v48 = vsub.f32 0.0, %v3872_v52  ;;  %v9790_v32 = vadd.f32 %v9506_v11, %v9416_v58 }
 0x40b   :  { %v6938_v44 = vpop.eup %6937  ;;  %4989 = vst.msk [vmem:[%s10455_s9 + $0x238] sm:$0xff] %vm4917_vm2, %v4808_v28  ;;  %v4806_v20 = vmul.f32 %v6936_v12, %v4483_v8  ;;  %6959 = vpow2.f32 %v4205_v18  ;;  %v4207_v8 = vmul.f32 1.442695, %v3995_v14  ;;  %v3871_v53 = vand.u32 2147483647, %v9780_v1 }
 0x40c   :  { %v9752_v21 = vpop.eup %6939  ;;  %v4812_v55 = vmul.f32 %v6938_v44, %v4486_v23  ;;  %6961 = vrcp.f32 %v4617_v51  ;;  %v4213_v25 = vmul.f32 1.442695, %v3998_v48  ;;  %v9803_v12 = vadd.f32 %v9506_v11, %v9444_v2 }
 0x40d   :  { %4988 = vst.msk [vmem:[%s10455_s9 + $0x230] sm:$0xff] %vm4917_vm2, %v4806_v20  ;;  %v4620_v41 = vadd.f32 1.0, %v9752_v21  ;;  %6963 = vpow2.f32 %v4203_v45  ;;  %v4487_v45 = vsel %vm4361_vm3, 1.0, %v9694_v33  ;;  %v3997_v51 = vsub.f32 0.0, %v3871_v53 }
 0x40e   :  { %v6942_v22 = vpop.eup %6941  ;;  %4991 = vst.msk [vmem:[%s10455_s9 + $0x248] sm:$0xff] %vm4917_vm2, %v4812_v55  ;;  %v3874_v44 = vand.u32 2147483647, %v9790_v32  ;;  %v9810_v20 = vadd.f32 %v9506_v11, %v9476_v62  ;;  %v4490_v40 = vsel %vm4364_vm4, 1.0, %v9700_v27  ;;  %v3873_v2 = vand.u32 2147483647, %v9803_v12  ;;  %v9826_v27 = vpop.f32.mrf.mxu1 }
 0x40f   :  { %v9766_v54 = vpop.eup %6943  ;;  %v4810_v49 = vmul.f32 %v6942_v22, %v4485_v26  ;;  %6965 = vrcp.f32 %v4620_v41  ;;  %v4489_v62 = vsel %vm4363_vm5, 1.0, %v9713_v6  ;;  %v4211_v22 = vmul.f32 1.442695, %v3997_v51 }
 0x410   :  { %v6946_v50 = vpop.eup %6945  ;;  %v4619_v18 = vadd.f32 1.0, %v9766_v54  ;;  %6967 = vpow2.f32 %v4209_v63  ;;  %v4000_v46 = vsub.f32 0.0, %v3874_v44  ;;  %v4492_v41 = vsel %vm4366_vm6, 1.0, %v9719_v59  ;;  %v9846_v48 = vpop.f32.mrf.mxu1 }
 0x411   :  { %4990 = vst.msk [vmem:[%s10455_s9 + $0x240] sm:$0xff] %vm4917_vm2, %v4810_v49  ;;  %v4816_v36 = vmul.f32 %v6946_v50, %v4488_v57  ;;  %v3999_v49 = vsub.f32 0.0, %v3873_v2  ;;  %v3876_v52 = vand.u32 2147483647, %v9810_v20  ;;  %vm4365_vm7 = vcmp.ge.f32.partialorder %v9608_v13, 0.0 }
 0x412   :  { %6969 = vrcp.f32 %v4619_v18  ;;  %v6948_v28 = vpop.eup %6947  ;;  %v4217_v6 = vmul.f32 1.442695, %v4000_v46  ;;  %v4491_v18 = vsel %vm4365_vm7, 1.0, %v9730_v24  ;;  %v9860_v24 = vadd.f32 %v9506_v11, %v9538_v35 }
 0x413   :  { %4993 = vst.msk [vmem:[%s10455_s9 + $0x258] sm:$0xff] %vm4917_vm2, %v4816_v36  ;;  %6971 = vpow2.f32 %v4207_v8  ;;  %v9805_v58 = vpop.eup %6949  ;;  %v4814_v23 = vmul.f32 %v6948_v28, %v4487_v45  ;;  %v4215_v43 = vmul.f32 1.442695, %v3999_v49  ;;  %v4002_v8 = vsub.f32 0.0, %v3876_v52 }
 0x414   :  { %v6952_v39 = vpop.eup %6951  ;;  %v4622_v33 = vadd.f32 1.0, %v9805_v58  ;;  %6973 = vpow2.f32 %v4213_v25  ;;  %v9856_v28 = vadd.f32 %v9506_v11, %v9502_v30  ;;  %vm4368_vm8 = vcmp.ge.f32.partialorder %v9616_v56, 0.0 }
 0x415   :  { %v9817_v55 = vpop.eup %6953  ;;  %4992 = vst.msk [vmem:[%s10455_s9 + $0x250] sm:$0xff] %vm4917_vm2, %v4814_v23  ;;  %v4820_v38 = vmul.f32 %v6952_v39, %v4490_v40  ;;  %v4221_v25 = vmul.f32 1.442695, %v4002_v8  ;;  %v4494_v51 = vsel %vm4368_vm8, 1.0, %v9752_v21  ;;  %vm4367_vm9 = vcmp.ge.f32.partialorder %v9624_v0, 0.0 }
 0x416   :  { %v6956_v26 = vpop.eup %6955  ;;  %6975 = vrcp.f32 %v4622_v33  ;;  %v4621_v63 = vadd.f32 1.0, %v9817_v55  ;;  %v3875_v30 = vand.u32 2147483647, %v9856_v28  ;;  %v3878_v35 = vand.u32 2147483647, %v9860_v24  ;;  %v9882_v33 = vpop.f32.mrf.mxu1 }
 0x417   :  { %v6958_v14 = vpop.eup %6957  ;;  %4995 = vst.msk [vmem:[%s10455_s9 + $0x268] sm:$0xff] %vm4917_vm2, %v4820_v38  ;;  %v4818_v15 = vmul.f32 %v6956_v26, %v4489_v62  ;;  %6977 = vpow2.f32 %v4211_v22  ;;  %v9876_v39 = vadd.f32 %v9506_v11, %v9562_v7  ;;  %v9880_v40 = vadd.f32 %v9506_v11, %v9592_v60 }
 0x418   :  { %v9837_v50 = vpop.eup %6959  ;;  %v4824_v57 = vmul.f32 %v6958_v14, %v4492_v41  ;;  %6979 = vrcp.f32 %v4621_v63  ;;  %v4493_v0 = vsel %vm4367_vm9, 1.0, %v9766_v54  ;;  %v4001_v38 = vsub.f32 0.0, %v3875_v30  ;;  %v9904_v49 = vpop.f32.mrf.mxu1 }
 0x419   :  { %v6962_v59 = vpop.eup %6961  ;;  %4994 = vst.msk [vmem:[%s10455_s9 + $0x260] sm:$0xff] %vm4917_vm2, %v4818_v15  ;;  %v4624_v36 = vadd.f32 1.0, %v9837_v50  ;;  %6981 = vpow2.f32 %v4217_v6  ;;  %vm4370_vm10 = vcmp.ge.f32.partialorder %v9660_v5, 0.0  ;;  %v4004_v60 = vsub.f32 0.0, %v3878_v35 }
 0x41a   :  { %v9848_v53 = vpop.eup %6963  ;;  %4997 = vst.msk [vmem:[%s10455_s9 + $0x278] sm:$0xff] %vm4917_vm2, %v4824_v57  ;;  %v4822_v13 = vmul.f32 %v6962_v59, %v4491_v18  ;;  %6983 = vpow2.f32 %v4215_v43  ;;  %v3877_v22 = vand.u32 2147483647, %v9876_v39  ;;  %vm4369_vm11 = vcmp.ge.f32.partialorder %v9678_v17, 0.0 }
 0x41b   :  { %6985 = vrcp.f32 %v4624_v36  ;;  %v4623_v45 = vadd.f32 1.0, %v9848_v53  ;;  %v4219_v46 = vmul.f32 1.442695, %v4001_v38  ;;  %vm4372_vm12 = vcmp.ge.f32.partialorder %v9686_v37, 0.0 }
 0x41c   :  { %v6966_v23 = vpop.eup %6965  ;;  %4996 = vst.msk [vmem:[%s10455_s9 + $0x270] sm:$0xff] %vm4917_vm2, %v4822_v13  ;;  %v4225_v41 = vmul.f32 1.442695, %v4004_v60  ;;  %v4003_v5 = vsub.f32 0.0, %v3877_v22  ;;  %v3880_v63 = vand.u32 2147483647, %v9880_v40  ;;  %v9910_v6 = vadd.f32 %v9506_v11, %v9618_v3 }
 0x41d   :  { %v9872_v44 = vpop.eup %6967  ;;  %v4828_v56 = vmul.f32 %v6966_v23, %v4494_v51  ;;  %6987 = vrcp.f32 %v4623_v45  ;;  %v4496_v14 = vsel %vm4370_vm10, 1.0, %v9805_v58  ;;  %v9914_v59 = vadd.f32 %v9506_v11, %v9636_v34 }
 0x41e   :  { %v4626_v2 = vadd.f32 1.0, %v9872_v44  ;;  %6989 = vpow2.f32 %v4221_v25  ;;  %v4223_v57 = vmul.f32 1.442695, %v4003_v5  ;;  %v4006_v43 = vsub.f32 0.0, %v3880_v63  ;;  %v9924_v25 = vpop.f32.mrf.mxu1 }
 0x41f   :  { %v6970_v21 = vpop.eup %6969  ;;  %4999 = vst.msk [vmem:[%s10455_s9 + $0x288] sm:$0xff] %vm4917_vm2, %v4828_v56  ;;  %vm4371_vm13 = vcmp.ge.f32.partialorder %v9690_v42, 0.0  ;;  %v3879_v58 = vand.u32 2147483647, %v9910_v6  ;;  %v4495_v3 = vsel %vm4369_vm11, 1.0, %v9817_v55  ;;  %v4498_v55 = vsel %vm4372_vm12, 1.0, %v9837_v50 }
 0x420   :  { %v9886_v62 = vpop.eup %6971  ;;  %v4826_v7 = vmul.f32 %v6970_v21, %v4493_v0  ;;  %6991 = vrcp.f32 %v4626_v2  ;;  %v4229_v45 = vmul.f32 1.442695, %v4006_v43  ;;  %v3882_v30 = vand.u32 2147483647, %v9914_v59 }
 0x421   :  { %v4625_v54 = vadd.f32 1.0, %v9886_v62  ;;  %v9896_v26 = vpop.eup %6973  ;;  %v4005_v51 = vsub.f32 0.0, %v3879_v58  ;;  %vm4374_vm14 = vcmp.ge.f32.partialorder %v9717_v47, 0.0  ;;  %v4497_v21 = vsel %vm4371_vm13, 1.0, %v9848_v53 }
 0x422   :  { %4998 = vst.msk [vmem:[%s10455_s9 + $0x280] sm:$0xff] %vm4917_vm2, %v4826_v7  ;;  %v4628_v15 = vadd.f32 1.0, %v9896_v26  ;;  %v4008_v2 = vsub.f32 0.0, %v3882_v30  ;;  %v9950_v38 = vadd.f32 %v9506_v11, %v9662_v29  ;;  %v9952_v7 = vpop.f32.mrf.mxu1  ;;  %v9956_v22 = vadd.f32 %v9506_v11, %v9692_v16 }
 0x423   :  { %6993 = vrcp.f32 %v4625_v54  ;;  %v6976_v52 = vpop.eup %6975  ;;  %v4227_v37 = vmul.f32 1.442695, %v4005_v51  ;;  %v9960_v42 = vadd.f32 %v9506_v11, %v9711_v9  ;;  %v9964_v53 = vadd.f32 %v9506_v11, %v9734_v19 }
 0x424   :  { %6995 = vpow2.f32 %v4219_v46  ;;  %v9916_v18 = vpop.eup %6977  ;;  %v4832_v36 = vmul.f32 %v6976_v52, %v4496_v14  ;;  %v4233_v46 = vmul.f32 1.442695, %v4008_v2  ;;  %v3881_v16 = vand.u32 2147483647, %v9950_v38 }
 0x425   :  { %6997 = vrcp.f32 %v4628_v15  ;;  %v6980_v8 = vpop.eup %6979  ;;  %v4627_v13 = vadd.f32 1.0, %v9916_v18  ;;  %vm4373_vm15 = vcmp.ge.f32.partialorder %v9742_v31, 0.0  ;;  %vm4376_vm0 = vcmp.ge.f32.partialorder %v9750_v4, 0.0  ;;  %v9985_v15 = vpop.f32.mrf.mxu1 }
 0x426   :  { %6999 = vpow2.f32 %v4225_v41  ;;  %v9926_v34 = vpop.eup %6981  ;;  %5001 = vst.msk [vmem:[%s10455_s9 + $0x298] sm:$0xff] %vm4917_vm2, %v4832_v36  ;;  %v4830_v23 = vmul.f32 %v6980_v8, %v4495_v3  ;;  %v3884_v19 = vand.u32 2147483647, %v9956_v22  ;;  %v4500_v5 = vsel %vm4374_vm14, 1.0, %v9872_v44 }
 0x427   :  { %7001 = vpow2.f32 %v4223_v57  ;;  %v9933_v17 = vpop.eup %6983  ;;  %v4630_v35 = vadd.f32 1.0, %v9926_v34  ;;  %v4007_v63 = vsub.f32 0.0, %v3881_v16  ;;  %v3883_v14 = vand.u32 2147483647, %v9960_v42 }
 0x428   :  { %7003 = vrcp.f32 %v4627_v13  ;;  %v6986_v56 = vpop.eup %6985  ;;  %5000 = vst.msk [vmem:[%s10455_s9 + $0x290] sm:$0xff] %vm4917_vm2, %v4830_v23  ;;  %v4629_v0 = vadd.f32 1.0, %v9933_v17  ;;  %vm4375_vm1 = vcmp.ge.f32.partialorder %v9780_v1, 0.0  ;;  %v4010_v57 = vsub.f32 0.0, %v3884_v19 }
 0x429   :  { %7005 = vpow2.f32 %v4229_v45  ;;  %v4836_v50 = vmul.f32 %v6986_v56, %v4498_v55  ;;  %v4499_v36 = vsel %vm4373_vm15, 1.0, %v9886_v62  ;;  %v4231_v58 = vmul.f32 1.442695, %v4007_v63  ;;  %v10010_v55 = vpop.f32.mrf.mxu1 }
 0x42a   :  { %7007 = vrcp.f32 %v4630_v35  ;;  %v6988_v60 = vpop.eup %6987  ;;  %v4009_v8 = vsub.f32 0.0, %v3883_v14  ;;  %v3886_v47 = vand.u32 2147483647, %v9964_v53  ;;  %v4502_v13 = vsel %vm4376_vm0, 1.0, %v9896_v26 }
 0x42b   :  { %7009 = vrcp.f32 %v4629_v0  ;;  %v9966_v54 = vpop.eup %6989  ;;  %5003 = vst.msk [vmem:[%s10455_s9 + $0x2a8] sm:$0xff] %vm4917_vm2, %v4836_v50  ;;  %v4834_v29 = vmul.f32 %v6988_v60, %v4497_v21  ;;  %v4237_v45 = vmul.f32 1.442695, %v4010_v57  ;;  %v10003_v31 = vadd.f32 %v9506_v11, %v9764_v10  ;;  %v10035_v16 = vpop.f32.mrf.mxu1 }
 0x42c   :  { %7011 = vpow2.f32 %v4227_v37  ;;  %v4632_v9 = vadd.f32 1.0, %v9966_v54  ;;  %v4235_v51 = vmul.f32 1.442695, %v4009_v8  ;;  %v10008_v30 = vadd.f32 %v9506_v11, %v9792_v61 }
 0x42d   :  { %v6992_v41 = vpop.eup %6991  ;;  %5002 = vst.msk [vmem:[%s10455_s9 + $0x2a0] sm:$0xff] %vm4917_vm2, %v4834_v29  ;;  %7013 = vpow2.f32 %v4233_v46  ;;  %v4012_v10 = vsub.f32 0.0, %v3886_v47  ;;  %v3885_v26 = vand.u32 2147483647, %v10003_v31  ;;  %vm4378_vm3 = vcmp.ge.f32.partialorder %v9790_v32, 0.0 }
 0x42e   :  { %v4840_v52 = vmul.f32 %v6992_v41, %v4500_v5  ;;  %7015 = vrcp.f32 %v4632_v9  ;;  %vm4377_vm4 = vcmp.ge.f32.partialorder %v9803_v12, 0.0  ;;  %v4501_v0 = vsel %vm4375_vm1, 1.0, %v9916_v18 }
 0x42f   :  { %7017 = vpow2.f32 %v4231_v58  ;;  %v4241_v50 = vmul.f32 1.442695, %v4012_v10  ;;  %v4011_v29 = vsub.f32 0.0, %v3885_v26  ;;  %v3888_v46 = vand.u32 2147483647, %v10008_v30 }
 0x430   :  { %v6994_v43 = vpop.eup %6993  ;;  %5005 = vst.msk [vmem:[%s10455_s9 + $0x2b8] sm:$0xff] %vm4917_vm2, %v4840_v52  ;;  %7019 = vpow2.f32 %v4237_v45  ;;  %v4504_v19 = vsel %vm4378_vm3, 1.0, %v9926_v34  ;;  %v4503_v1 = vsel %vm4377_vm4, 1.0, %v9933_v17  ;;  %v10052_v12 = vadd.f32 %v9506_v11, %v9826_v27 }
 0x431   :  { %v9992_v44 = vpop.eup %6995  ;;  %v4838_v3 = vmul.f32 %v6994_v43, %v4499_v36  ;;  %v4239_v63 = vmul.f32 1.442695, %v4011_v29  ;;  %v4014_v14 = vsub.f32 0.0, %v3888_v46  ;;  %v10056_v34 = vadd.f32 %v9506_v11, %v9846_v48  ;;  %v10064_v43 = vpop.f32.mrf.mxu1 }
 0x432   :  { %v6998_v62 = vpop.eup %6997  ;;  %v4631_v23 = vadd.f32 1.0, %v9992_v44  ;;  %vm4380_vm5 = vcmp.ge.f32.partialorder %v9810_v20, 0.0  ;;  %vm4379_vm6 = vcmp.ge.f32.partialorder %v9856_v28, 0.0  ;;  %vm4382_vm7 = vcmp.ge.f32.partialorder %v9860_v24, 0.0 }
 0x433   :  { %v10012_v35 = vpop.eup %6999  ;;  %5004 = vst.msk [vmem:[%s10455_s9 + $0x2b0] sm:$0xff] %vm4917_vm2, %v4838_v3  ;;  %v4844_v4 = vmul.f32 %v6998_v62, %v4502_v13  ;;  %v4245_v57 = vmul.f32 1.442695, %v4014_v14  ;;  %v3887_v27 = vand.u32 2147483647, %v10052_v12  ;;  %v4506_v58 = vsel %vm4380_vm5, 1.0, %v9966_v54  ;;  %v10088_v54 = vpop.f32.mrf.mxu1 }
 0x434   :  { %v10019_v56 = vpop.eup %7001  ;;  %7021 = vrcp.f32 %v4631_v23  ;;  %v4634_v61 = vadd.f32 1.0, %v10012_v35  ;;  %v3890_v20 = vand.u32 2147483647, %v10056_v34  ;;  %v10080_v47 = vadd.f32 %v9506_v11, %v9882_v33 }
 0x435   :  { %v7004_v21 = vpop.eup %7003  ;;  %5007 = vst.msk [vmem:[%s10455_s9 + $0x2c8] sm:$0xff] %vm4917_vm2, %v4844_v4  ;;  %v4633_v37 = vadd.f32 1.0, %v10019_v56  ;;  %7023 = vpow2.f32 %v4235_v51  ;;  %v4013_v13 = vsub.f32 0.0, %v3887_v27  ;;  %vm4381_vm8 = vcmp.ge.f32.partialorder %v9876_v39, 0.0 }
 0x436   :  { %v10032_v2 = vpop.eup %7005  ;;  %v4842_v60 = vmul.f32 %v7004_v21, %v4501_v0  ;;  %7025 = vrcp.f32 %v4634_v61  ;;  %v4016_v45 = vsub.f32 0.0, %v3890_v20  ;;  %v3889_v62 = vand.u32 2147483647, %v10080_v47 }
 0x437   :  { %v7008_v9 = vpop.eup %7007  ;;  %7027 = vrcp.f32 %v4633_v37  ;;  %v4636_v18 = vadd.f32 1.0, %v10032_v2  ;;  %v10086_v23 = vadd.f32 %v9506_v11, %v9904_v49  ;;  %vm4384_vm9 = vcmp.ge.f32.partialorder %v9880_v40, 0.0 }
 0x438   :  { %v7010_v41 = vpop.eup %7009  ;;  %5006 = vst.msk [vmem:[%s10455_s9 + $0x2c0] sm:$0xff] %vm4917_vm2, %v4842_v60  ;;  %v4848_v5 = vmul.f32 %v7008_v9, %v4504_v19  ;;  %7029 = vpow2.f32 %v4241_v50  ;;  %vm4383_vm10 = vcmp.ge.f32.partialorder %v9910_v6, 0.0  ;;  %v4243_v33 = vmul.f32 1.442695, %v4013_v13  ;;  %v10116_v19 = vpop.f32.mrf.mxu1 }
 0x439   :  { %v10048_v52 = vpop.eup %7011  ;;  %v4846_v32 = vmul.f32 %v7010_v41, %v4503_v1  ;;  %7031 = vrcp.f32 %v4636_v18  ;;  %v10100_v4 = vadd.f32 %v9506_v11, %v9924_v25  ;;  %v4249_v26 = vmul.f32 1.442695, %v4016_v45 }
 0x43a   :  { %5009 = vst.msk [vmem:[%s10455_s9 + $0x2d8] sm:$0xff] %vm4917_vm2, %v4848_v5  ;;  %v4635_v17 = vadd.f32 1.0, %v10048_v52  ;;  %7033 = vpow2.f32 %v4239_v63  ;;  %v10066_v36 = vpop.eup %7013  ;;  %v4015_v61 = vsub.f32 0.0, %v3889_v62  ;;  %v3892_v21 = vand.u32 2147483647, %v10086_v23 }
 0x43b   :  { %5008 = vst.msk [vmem:[%s10455_s9 + $0x2d0] sm:$0xff] %vm4917_vm2, %v4846_v32  ;;  %v7016_v48 = vpop.eup %7015  ;;  %v4638_v8 = vadd.f32 1.0, %v10066_v36  ;;  %v4505_v37 = vsel %vm4379_vm6, 1.0, %v9992_v44  ;;  %v10112_v25 = vadd.f32 %v9506_v11, %v9952_v7  ;;  %v4508_v28 = vsel %vm4382_vm7, 1.0, %v10012_v35 }
 0x43c   :  { %7035 = vrcp.f32 %v4635_v17  ;;  %v4852_v3 = vmul.f32 %v7016_v48, %v4506_v58  ;;  %v10090_v51 = vpop.eup %7017  ;;  %v4247_v46 = vmul.f32 1.442695, %v4015_v61  ;;  %v4018_v9 = vsub.f32 0.0, %v3892_v21  ;;  %v10142_v17 = vpop.f32.mrf.mxu1  ;;  %v10154_v58 = vld [vmem:[#allocation2] ss:$0 sm:$0xff] }
 0x43d   :  { %7037 = vpow2.f32 %v4245_v57  ;;  %v10102_v49 = vpop.eup %7019  ;;  %v4637_v10 = vadd.f32 1.0, %v10090_v51  ;;  %v3891_v18 = vand.u32 2147483647, %v10100_v4  ;;  %v4507_v41 = vsel %vm4381_vm8, 1.0, %v10019_v56 }
 0x43e   :  { %7039 = vrcp.f32 %v4638_v8  ;;  %5011 = vst.msk [vmem:[%s10455_s9 + $0x2e8] sm:$0xff] %vm4917_vm2, %v4852_v3  ;;  %v4640_v50 = vadd.f32 1.0, %v10102_v49  ;;  %v4253_v5 = vmul.f32 1.442695, %v4018_v9  ;;  %v3894_v14 = vand.u32 2147483647, %v10112_v25 }
 0x43f   :  { %7041 = vpow2.f32 %v4243_v33  ;;  %v4017_v63 = vsub.f32 0.0, %v3891_v18  ;;  %v4510_v39 = vsel %vm4384_vm9, 1.0, %v10032_v2  ;;  %vm4386_vm11 = vcmp.ge.f32.partialorder %v9914_v59, 0.0  ;;  %v10176_v33 = vpop.f32.mrf.mxu1 }
 0x440   :  { %7043 = vrcp.f32 %v4637_v10  ;;  %v4020_v48 = vsub.f32 0.0, %v3894_v14  ;;  %v4509_v40 = vsel %vm4383_vm10, 1.0, %v10048_v52  ;;  %v10158_v8 = vadd.f32 %v10154_v58, %v9985_v15 }
 0x441   :  { %v7022_v0 = vpop.eup %7021  ;;  %7045 = vrcp.f32 %v4640_v50  ;;  %v4251_v20 = vmul.f32 1.442695, %v4017_v63  ;;  %v10166_v6 = vadd.f32 %v10154_v58, %v10010_v55  ;;  %v10170_v52 = vadd.f32 %v10154_v58, %v10035_v16  ;;  %v10207_v9 = vpop.f32.mrf.mxu1 }
 0x442   :  { %v10114_v60 = vpop.eup %7023  ;;  %v4850_v29 = vmul.f32 %v7022_v0, %v4505_v37  ;;  %7047 = vpow2.f32 %v4249_v26  ;;  %v4257_v13 = vmul.f32 1.442695, %v4020_v48  ;;  %vm4385_vm12 = vcmp.ge.f32.partialorder %v9950_v38, 0.0 }
 0x443   :  { %v7026_v1 = vpop.eup %7025  ;;  %v4639_v44 = vadd.f32 1.0, %v10114_v60  ;;  %v3893_v62 = vand.u32 2147483647, %v10158_v8  ;;  %v4512_v55 = vsel %vm4386_vm11, 1.0, %v10066_v36  ;;  %v3896_v16 = vand.u32 2147483647, %v10166_v6  ;;  %v6594_v14 = vpop.f32.mrf.mxu1 }
 0x444   :  { %v7028_v11 = vpop.eup %7027  ;;  %5010 = vst.msk [vmem:[%s10455_s9 + $0x2e0] sm:$0xff] %vm4917_vm2, %v4850_v29  ;;  %v4856_v7 = vmul.f32 %v7026_v1, %v4508_v28  ;;  %vm4388_vm13 = vcmp.ge.f32.partialorder %v9956_v22, 0.0  ;;  %v3895_v0 = vand.u32 2147483647, %v10170_v52  ;;  %vm4387_vm14 = vcmp.ge.f32.partialorder %v9960_v42, 0.0 }
 0x445   :  { %v10130_v24 = vpop.eup %7029  ;;  %v4854_v35 = vmul.f32 %v7028_v11, %v4507_v41  ;;  %7049 = vrcp.f32 %v4639_v44  ;;  %v4019_v21 = vsub.f32 0.0, %v3893_v62  ;;  %v4022_v59 = vsub.f32 0.0, %v3896_v16  ;;  %v3754_v62 = vpop.f32.mrf.mxu1 }
 0x446   :  { %v7032_v32 = vpop.eup %7031  ;;  %5013 = vst.msk [vmem:[%s10455_s9 + $0x2f8] sm:$0xff] %vm4917_vm2, %v4856_v7  ;;  %v4642_v56 = vadd.f32 1.0, %v10130_v24  ;;  %7051 = vpow2.f32 %v4247_v46  ;;  %v10192_v36 = vadd.f32 %v10154_v58, %v10064_v43  ;;  %v4511_v22 = vsel %vm4385_vm12, 1.0, %v10090_v51 }
 0x447   :  { %v10144_v57 = vpop.eup %7033  ;;  %5012 = vst.msk [vmem:[%s10455_s9 + $0x2f0] sm:$0xff] %vm4917_vm2, %v4854_v35  ;;  %v4860_v27 = vmul.f32 %v7032_v32, %v4510_v39  ;;  %7053 = vpow2.f32 %v4253_v5  ;;  %v4255_v50 = vmul.f32 1.442695, %v4019_v21  ;;  %v4021_v29 = vsub.f32 0.0, %v3895_v0 }
 0x448   :  { %7055 = vrcp.f32 %v4642_v56  ;;  %v4641_v2 = vadd.f32 1.0, %v10144_v57  ;;  %v10205_v46 = vadd.f32 %v10154_v58, %v10088_v54  ;;  %v4514_v1 = vsel %vm4388_vm13, 1.0, %v10102_v49 }
 0x449   :  { %v7036_v3 = vpop.eup %7035  ;;  %5015 = vst.msk [vmem:[%s10455_s9 + $0x308] sm:$0xff] %vm4917_vm2, %v4860_v27  ;;  %7057 = vpow2.f32 %v4251_v20  ;;  %v4261_v44 = vmul.f32 1.442695, %v4022_v59  ;;  %v3898_v18 = vand.u32 2147483647, %v10192_v36  ;;  %v10214_v51 = vadd.f32 %v10154_v58, %v10116_v19 }
 0x44a   :  { %v10172_v45 = vpop.eup %7037  ;;  %v4858_v15 = vmul.f32 %v7036_v3, %v4509_v40  ;;  %7059 = vrcp.f32 %v4641_v2  ;;  %v4259_v38 = vmul.f32 1.442695, %v4021_v29  ;;  %v3897_v49 = vand.u32 2147483647, %v10205_v46 }
 0x44b   :  { %v7040_v10 = vpop.eup %7039  ;;  %v4644_v26 = vadd.f32 1.0, %v10172_v45  ;;  %7061 = vpow2.f32 %v4257_v13  ;;  %v4024_v5 = vsub.f32 0.0, %v3898_v18  ;;  %v4513_v63 = vsel %vm4387_vm14, 1.0, %v10114_v60 }
 0x44c   :  { %5014 = vst.msk [vmem:[%s10455_s9 + $0x300] sm:$0xff] %vm4917_vm2, %v4858_v15  ;;  %v4864_v61 = vmul.f32 %v7040_v10, %v4512_v55  ;;  %v10194_v37 = vpop.eup %7041  ;;  %v4023_v27 = vsub.f32 0.0, %v3897_v49  ;;  %vm4390_vm15 = vcmp.ge.f32.partialorder %v9964_v53, 0.0  ;;  %v3900_v60 = vand.u32 2147483647, %v10214_v51 }
 0x44d   :  { %7063 = vrcp.f32 %v4644_v26  ;;  %v7044_v43 = vpop.eup %7043  ;;  %v4643_v28 = vadd.f32 1.0, %v10194_v37  ;;  %v4265_v56 = vmul.f32 1.442695, %v4024_v5  ;;  %v4516_v40 = vsel %vm4390_vm15, 1.0, %v10130_v24 }
 0x44e   :  { %5017 = vst.msk [vmem:[%s10455_s9 + $0x318] sm:$0xff] %vm4917_vm2, %v4864_v61  ;;  %v7046_v11 = vpop.eup %7045  ;;  %v4862_v7 = vmul.f32 %v7044_v43, %v4511_v22  ;;  %7065 = vpow2.f32 %v4255_v50  ;;  %v4263_v3 = vmul.f32 1.442695, %v4023_v27  ;;  %vm4389_vm0 = vcmp.ge.f32.partialorder %v10003_v31, 0.0  ;;  %v6597_v22 = vpop.f32.mrf.mxu1 }
 0x44f   :  { %v10216_v54 = vpop.eup %7047  ;;  %v4868_v41 = vmul.f32 %v7046_v11, %v4514_v1  ;;  %7067 = vrcp.f32 %v4643_v28  ;;  %v4026_v15 = vsub.f32 0.0, %v3900_v60  ;;  %v4515_v55 = vsel %vm4389_vm0, 1.0, %v10144_v57 }
 0x450   :  { %5016 = vst.msk [vmem:[%s10455_s9 + $0x310] sm:$0xff] %vm4917_vm2, %v4862_v7  ;;  %v4646_v19 = vadd.f32 1.0, %v10216_v54  ;;  %7069 = vpow2.f32 %v4261_v44  ;;  %v10251_v24 = vadd.f32 %v10154_v58, %v10142_v17  ;;  %v10261_v57 = vadd.f32 %v10154_v58, %v10176_v33 }
 0x451   :  { %5019 = vst.msk [vmem:[%s10455_s9 + $0x328] sm:$0xff] %vm4917_vm2, %v4868_v41  ;;  %7071 = vpow2.f32 %v4259_v38  ;;  %v4269_v61 = vmul.f32 1.442695, %v4026_v15  ;;  %vm4392_vm1 = vcmp.ge.f32.partialorder %v10008_v30, 0.0  ;;  %vm4391_vm3 = vcmp.ge.f32.partialorder %v10052_v12, 0.0  ;;  %v3764_v41 = vpop.f32.mrf.mxu1 }
 0x452   :  { %v7050_v35 = vpop.eup %7049  ;;  %7073 = vrcp.f32 %v4646_v19  ;;  %v3899_v21 = vand.u32 2147483647, %v10251_v24  ;;  %v4518_v59 = vsel %vm4392_vm1, 1.0, %v10172_v45  ;;  %v3902_v33 = vand.u32 2147483647, %v10261_v57 }
 0x453   :  { %v10227_v32 = vpop.eup %7051  ;;  %v4866_v39 = vmul.f32 %v7050_v35, %v4513_v63  ;;  %7075 = vpow2.f32 %v4265_v56  ;;  %v10275_v29 = vadd.f32 %v10154_v58, %v10207_v9  ;;  %vm4394_vm4 = vcmp.ge.f32.partialorder %v10056_v34, 0.0 }
 0x454   :  { %v10233_v20 = vpop.eup %7053  ;;  %v4645_v42 = vadd.f32 1.0, %v10227_v32  ;;  %v4025_v50 = vsub.f32 0.0, %v3899_v21  ;;  %vm4393_vm5 = vcmp.ge.f32.partialorder %v10080_v47, 0.0  ;;  %v4028_v43 = vsub.f32 0.0, %v3902_v33 }
 0x455   :  { %v7056_v48 = vpop.eup %7055  ;;  %5018 = vst.msk [vmem:[%s10455_s9 + $0x320] sm:$0xff] %vm4917_vm2, %v4866_v39  ;;  %v4648_v2 = vadd.f32 1.0, %v10233_v20  ;;  %v10280_v45 = vadd.f32 %v10154_v58, %v6594_v14  ;;  %v4517_v1 = vsel %vm4391_vm3, 1.0, %v10194_v37  ;;  %vm4396_vm6 = vcmp.ge.f32.partialorder %v10086_v23, 0.0 }
 0x456   :  { %v10244_v13 = vpop.eup %7057  ;;  %v4872_v53 = vmul.f32 %v7056_v48, %v4516_v40  ;;  %7077 = vrcp.f32 %v4645_v42  ;;  %v4267_v9 = vmul.f32 1.442695, %v4025_v50  ;;  %v3901_v28 = vand.u32 2147483647, %v10275_v29 }
 0x457   :  { %v7060_v10 = vpop.eup %7059  ;;  %7079 = vrcp.f32 %v4648_v2  ;;  %v4647_v26 = vadd.f32 1.0, %v10244_v13  ;;  %v4273_v11 = vmul.f32 1.442695, %v4028_v43  ;;  %v3904_v7 = vand.u32 2147483647, %v10280_v45 }
 0x458   :  { %v10253_v16 = vpop.eup %7061  ;;  %5021 = vst.msk [vmem:[%s10455_s9 + $0x338] sm:$0xff] %vm4917_vm2, %v4872_v53  ;;  %v4870_v31 = vmul.f32 %v7060_v10, %v4515_v55  ;;  %7081 = vpow2.f32 %v4263_v3  ;;  %v10294_v38 = vadd.f32 %v10154_v58, %v3754_v62  ;;  %v4520_v37 = vsel %vm4394_vm4, 1.0, %v10216_v54  ;;  %v6600_v62 = vpop.f32.mrf.mxu1 }
 0x459   :  { %7083 = vrcp.f32 %v4647_v26  ;;  %v4650_v17 = vadd.f32 1.0, %v10253_v16  ;;  %v4027_v35 = vsub.f32 0.0, %v3901_v28  ;;  %v4030_v14 = vsub.f32 0.0, %v3904_v7 }
 0x45a   :  { %v7064_v0 = vpop.eup %7063  ;;  %5020 = vst.msk [vmem:[%s10455_s9 + $0x330] sm:$0xff] %vm4917_vm2, %v4870_v31  ;;  %7085 = vpow2.f32 %v4269_v61  ;;  %v10305_v39 = vadd.f32 %v10154_v58, %v6597_v22  ;;  %v10313_v27 = vadd.f32 %v10154_v58, %v3764_v41  ;;  %v3903_v40 = vand.u32 2147483647, %v10294_v38  ;;  %v3774_v22 = vpop.f32.mrf.mxu1 }
 0x45b   :  { %v4876_v30 = vmul.f32 %v7064_v0, %v4518_v59  ;;  %7087 = vrcp.f32 %v4650_v17  ;;  %v10282_v12 = vpop.eup %7065  ;;  %v4271_v54 = vmul.f32 1.442695, %v4027_v35  ;;  %v4277_v48 = vmul.f32 1.442695, %v4030_v14 }
 0x45c   :  { %v7068_v44 = vpop.eup %7067  ;;  %v4649_v18 = vadd.f32 1.0, %v10282_v12  ;;  %7089 = vpow2.f32 %v4267_v9  ;;  %v4519_v3 = vsel %vm4393_vm5, 1.0, %v10227_v32  ;;  %v4522_v53 = vsel %vm4396_vm6, 1.0, %v10233_v20 }
 0x45d   :  { %5023 = vst.msk [vmem:[%s10455_s9 + $0x348] sm:$0xff] %vm4917_vm2, %v4876_v30  ;;  %v10296_v5 = vpop.eup %7069  ;;  %v4874_v49 = vmul.f32 %v7068_v44, %v4517_v1  ;;  %v4029_v26 = vsub.f32 0.0, %v3903_v40  ;;  %v3906_v47 = vand.u32 2147483647, %v10305_v39  ;;  %vm4395_vm7 = vcmp.ge.f32.partialorder %v10100_v4, 0.0 }
 0x45e   :  { %v10301_v63 = vpop.eup %7071  ;;  %7091 = vrcp.f32 %v4649_v18  ;;  %v4652_v19 = vadd.f32 1.0, %v10296_v5  ;;  %v3905_v23 = vand.u32 2147483647, %v10313_v27  ;;  %v4521_v61 = vsel %vm4395_vm7, 1.0, %v10244_v13 }
 0x45f   :  { %v7074_v56 = vpop.eup %7073  ;;  %5022 = vst.msk [vmem:[%s10455_s9 + $0x340] sm:$0xff] %vm4917_vm2, %v4874_v49  ;;  %v4651_v34 = vadd.f32 1.0, %v10301_v63  ;;  %7093 = vpow2.f32 %v4273_v11  ;;  %v4275_v21 = vmul.f32 1.442695, %v4029_v26  ;;  %vm4398_vm8 = vcmp.ge.f32.partialorder %v10112_v25, 0.0 }
 0x460   :  { %v10315_v42 = vpop.eup %7075  ;;  %v4880_v60 = vmul.f32 %v7074_v56, %v4520_v37  ;;  %7095 = vrcp.f32 %v4652_v19  ;;  %v4032_v59 = vsub.f32 0.0, %v3906_v47  ;;  %v4031_v33 = vsub.f32 0.0, %v3905_v23 }
 0x461   :  { %7097 = vrcp.f32 %v4651_v34  ;;  %v4654_v15 = vadd.f32 1.0, %v10315_v42  ;;  %v4524_v13 = vsel %vm4398_vm8, 1.0, %v10253_v16  ;;  %v10350_v43 = vadd.f32 %v10154_v58, %v6600_v62 }
 0x462   :  { %5025 = vst.msk [vmem:[%s10455_s9 + $0x358] sm:$0xff] %vm4917_vm2, %v4880_v60  ;;  %7099 = vpow2.f32 %v4271_v54  ;;  %v4281_v25 = vmul.f32 1.442695, %v4032_v59  ;;  %v4279_v9 = vmul.f32 1.442695, %v4031_v33  ;;  %v10358_v16 = vadd.f32 %v10154_v58, %v3774_v22 }
 0x463   :  { %v7078_v2 = vpop.eup %7077  ;;  %7101 = vrcp.f32 %v4654_v15  ;;  %v3908_v28 = vand.u32 2147483647, %v10350_v43  ;;  %vm4397_vm9 = vcmp.ge.f32.partialorder %v10158_v8, 0.0  ;;  %vm4400_vm10 = vcmp.ge.f32.partialorder %v10166_v6, 0.0 }
 0x464   :  { %v7080_v10 = vpop.eup %7079  ;;  %v4878_v55 = vmul.f32 %v7078_v2, %v4519_v3  ;;  %7103 = vpow2.f32 %v4277_v48  ;;  %v3907_v11 = vand.u32 2147483647, %v10358_v16  ;;  %v4523_v41 = vsel %vm4397_vm9, 1.0, %v10282_v12 }
 0x465   :  { %v10330_v32 = vpop.eup %7081  ;;  %v4884_v31 = vmul.f32 %v7080_v10, %v4522_v53  ;;  %v4034_v18 = vsub.f32 0.0, %v3908_v28  ;;  %v4526_v56 = vsel %vm4400_vm10, 1.0, %v10296_v5  ;;  %vm4399_vm11 = vcmp.ge.f32.partialorder %v10170_v52, 0.0 }
 0x466   :  { %v7084_v20 = vpop.eup %7083  ;;  %5024 = vst.msk [vmem:[%s10455_s9 + $0x350] sm:$0xff] %vm4917_vm2, %v4878_v55  ;;  %v4653_v17 = vadd.f32 1.0, %v10330_v32  ;;  %v4033_v19 = vsub.f32 0.0, %v3907_v11  ;;  %v4525_v54 = vsel %vm4399_vm11, 1.0, %v10301_v63  ;;  %vm4402_vm12 = vcmp.ge.f32.partialorder %v10192_v36, 0.0 }
 0x467   :  { %v10340_v0 = vpop.eup %7085  ;;  %5027 = vst.msk [vmem:[%s10455_s9 + $0x368] sm:$0xff] %vm4917_vm2, %v4884_v31  ;;  %v4882_v4 = vmul.f32 %v7084_v20, %v4521_v61  ;;  %v4285_v35 = vmul.f32 1.442695, %v4034_v18  ;;  %v4528_v52 = vsel %vm4402_vm12, 1.0, %v10315_v42  ;;  %vm4401_vm13 = vcmp.ge.f32.partialorder %v10205_v46, 0.0 }
 0x468   :  { %v7088_v30 = vpop.eup %7087  ;;  %7105 = vrcp.f32 %v4653_v17  ;;  %v4656_v50 = vadd.f32 1.0, %v10340_v0  ;;  %v4283_v6 = vmul.f32 1.442695, %v4033_v19  ;;  %v4527_v42 = vsel %vm4401_vm13, 1.0, %v10330_v32 }
 0x469   :  { %5026 = vst.msk [vmem:[%s10455_s9 + $0x360] sm:$0xff] %vm4917_vm2, %v4882_v4  ;;  %v4888_v1 = vmul.f32 %v7088_v30, %v4524_v13  ;;  %7107 = vpow2.f32 %v4275_v21  ;;  %v7090_v44 = vpop.eup %7089  ;;  %vm4404_vm14 = vcmp.ge.f32.partialorder %v10214_v51, 0.0  ;;  %vm4403_vm15 = vcmp.ge.f32.partialorder %v10251_v24, 0.0 }
 0x46a   :  { %7109 = vrcp.f32 %v4656_v50  ;;  %v4655_v49 = vadd.f32 1.0, %v7090_v44  ;;  %v4530_v10 = vsel %vm4404_vm14, 1.0, %v10340_v0  ;;  %v4529_v23 = vsel %vm4403_vm15, 1.0, %v7090_v44 }
 0x46b   :  { %5029 = vst.msk [vmem:[%s10455_s9 + $0x378] sm:$0xff] %vm4917_vm2, %v4888_v1  ;;  %7111 = vpow2.f32 %v4281_v25  ;;  %v7092_v7 = vpop.eup %7091  ;;  %vm4406_vm0 = vcmp.ge.f32.partialorder %v10261_v57, 0.0  ;;  %vm4405_vm1 = vcmp.ge.f32.partialorder %v10275_v29, 0.0  ;;  %vm4408_vm3 = vcmp.ge.f32.partialorder %v10280_v45, 0.0 }
 0x46c   :  { %7113 = vpow2.f32 %v4279_v9  ;;  %v7094_v37 = vpop.eup %7093  ;;  %v4886_v58 = vmul.f32 %v7092_v7, %v4523_v41  ;;  %vm4407_vm4 = vcmp.ge.f32.partialorder %v10294_v38, 0.0  ;;  %vm4410_vm5 = vcmp.ge.f32.partialorder %v10305_v39, 0.0 }
 0x46d   :  { %v7096_v14 = vpop.eup %7095  ;;  %7115 = vrcp.f32 %v4655_v49  ;;  %v4658_v8 = vadd.f32 1.0, %v7094_v37  ;;  %v4532_v21 = vsel %vm4406_vm0, 1.0, %v7094_v37  ;;  %vm4409_vm6 = vcmp.ge.f32.partialorder %v10313_v27, 0.0 }
 0x46e   :  { %v7098_v34 = vpop.eup %7097  ;;  %5028 = vst.msk [vmem:[%s10455_s9 + $0x370] sm:$0xff] %vm4917_vm2, %v4886_v58  ;;  %v4892_v12 = vmul.f32 %v7096_v14, %v4526_v56  ;;  %7117 = vpow2.f32 %v4285_v35  ;;  %vm4412_vm7 = vcmp.ge.f32.partialorder %v10350_v43, 0.0  ;;  %vm4411_vm8 = vcmp.ge.f32.partialorder %v10358_v16, 0.0 }
 0x46f   :  { %v7100_v60 = vpop.eup %7099  ;;  %v4890_v48 = vmul.f32 %v7098_v34, %v4525_v54  ;;  %7119 = vrcp.f32 %v4658_v8 }
 0x470   :  { %v7102_v5 = vpop.eup %7101  ;;  %5031 = vst.msk [vmem:[%s10455_s9 + $0x388] sm:$0xff] %vm4917_vm2, %v4892_v12  ;;  %v4657_v40 = vadd.f32 1.0, %v7100_v60  ;;  %7121 = vpow2.f32 %v4283_v6  ;;  %v4531_v57 = vsel %vm4405_vm1, 1.0, %v7100_v60 }
 0x471   :  { %v7104_v2 = vpop.eup %7103  ;;  %5030 = vst.msk [vmem:[%s10455_s9 + $0x380] sm:$0xff] %vm4917_vm2, %v4890_v48  ;;  %v4896_v63 = vmul.f32 %v7102_v5, %v4528_v52 }
 0x472   :  { %7123 = vrcp.f32 %v4657_v40  ;;  %v4660_v36 = vadd.f32 1.0, %v7104_v2  ;;  %v4534_v13 = vsel %vm4408_vm3, 1.0, %v7104_v2 }
 0x473   :  { %5033 = vst.msk [vmem:[%s10455_s9 + $0x398] sm:$0xff] %vm4917_vm2, %v4896_v63 }
 0x474   :  { %7125 = vrcp.f32 %v4660_v36 }
 0x475   :  { %v7106_v3 = vpop.eup %7105 }
 0x476   :  { %v7108_v53 = vpop.eup %7107  ;;  %v4894_v15 = vmul.f32 %v7106_v3, %v4527_v42 }
 0x477   :  { %v7110_v62 = vpop.eup %7109  ;;  %v4659_v55 = vadd.f32 1.0, %v7108_v53  ;;  %v4533_v1 = vsel %vm4407_vm4, 1.0, %v7108_v53 }
 0x478   :  { %v7112_v46 = vpop.eup %7111  ;;  %5032 = vst.msk [vmem:[%s10455_s9 + $0x390] sm:$0xff] %vm4917_vm2, %v4894_v15  ;;  %v4900_v26 = vmul.f32 %v7110_v62, %v4530_v10 }
 0x479   :  { %v7114_v47 = vpop.eup %7113  ;;  %7127 = vrcp.f32 %v4659_v55  ;;  %v4662_v31 = vadd.f32 1.0, %v7112_v46  ;;  %v4536_v9 = vsel %vm4410_vm5, 1.0, %v7112_v46 }
 0x47a   :  { %5035 = vst.msk [vmem:[%s10455_s9 + $0x3a8] sm:$0xff] %vm4917_vm2, %v4900_v26  ;;  %v4661_v51 = vadd.f32 1.0, %v7114_v47  ;;  %v7116_v32 = vpop.eup %7115  ;;  %v4535_v44 = vsel %vm4409_vm6, 1.0, %v7114_v47 }
 0x47b   :  { %7129 = vrcp.f32 %v4662_v31  ;;  %v7118_v20 = vpop.eup %7117  ;;  %v4898_v61 = vmul.f32 %v7116_v32, %v4529_v23 }
 0x47c   :  { %7131 = vrcp.f32 %v4661_v51  ;;  %v7120_v17 = vpop.eup %7119  ;;  %v4664_v0 = vadd.f32 1.0, %v7118_v20  ;;  %v4538_v27 = vsel %vm4412_vm7, 1.0, %v7118_v20 }
 0x47d   :  { %v7122_v4 = vpop.eup %7121  ;;  %5034 = vst.msk [vmem:[%s10455_s9 + $0x3a0] sm:$0xff] %vm4917_vm2, %v4898_v61  ;;  %v4904_v59 = vmul.f32 %v7120_v17, %v4532_v21 }
 0x47e   :  { %7133 = vrcp.f32 %v4664_v0  ;;  %v4663_v24 = vadd.f32 1.0, %v7122_v4  ;;  %v4537_v41 = vsel %vm4411_vm8, 1.0, %v7122_v4 }
 0x47f   :  { %v7124_v33 = vpop.eup %7123  ;;  %5037 = vst.msk [vmem:[%s10455_s9 + $0x3b8] sm:$0xff] %vm4917_vm2, %v4904_v59 }
 0x480   :  { %v4902_v22 = vmul.f32 %v7124_v33, %v4531_v57  ;;  %7135 = vrcp.f32 %v4663_v24 }
 0x481   :  { %v7126_v30 = vpop.eup %7125 }
 0x482   :  { %5036 = vst.msk [vmem:[%s10455_s9 + $0x3b0] sm:$0xff] %vm4917_vm2, %v4902_v22  ;;  %v4908_v29 = vmul.f32 %v7126_v30, %v4534_v13 }
 0x484   :  { %5039 = vst.msk [vmem:[%s10455_s9 + $0x3c8] sm:$0xff] %vm4917_vm2, %v4908_v29 }
 0x486   :  { %v7128_v50 = vpop.eup %7127 }
 0x487   :  { %v4906_v25 = vmul.f32 %v7128_v50, %v4533_v1 }
 0x488   :  { %v7130_v45 = vpop.eup %7129 }
 0x489   :  { %v7132_v28 = vpop.eup %7131  ;;  %5038 = vst.msk [vmem:[%s10455_s9 + $0x3c0] sm:$0xff] %vm4917_vm2, %v4906_v25  ;;  %v4912_v38 = vmul.f32 %v7130_v45, %v4536_v9 }
 0x48a   :  { %v4910_v18 = vmul.f32 %v7132_v28, %v4535_v44 }
 0x48b   :  { %5041 = vst.msk [vmem:[%s10455_s9 + $0x3d8] sm:$0xff] %vm4917_vm2, %v4912_v38  ;;  %v7134_v39 = vpop.eup %7133 }
 0x48c   :  { %5040 = vst.msk [vmem:[%s10455_s9 + $0x3d0] sm:$0xff] %vm4917_vm2, %v4910_v18  ;;  %v4916_v11 = vmul.f32 %v7134_v39, %v4538_v27 }
 0x48d   :  { %v7136_v7 = vpop.eup %7135 }
 0x48e   :  { %5043 = vst.msk [vmem:[%s10455_s9 + $0x3e8] sm:$0xff] %vm4917_vm2, %v4916_v11  ;;  %v4914_v49 = vmul.f32 %v7136_v7, %v4537_v41 }
 0x490   :  { %5042 = vst.msk [vmem:[%s10455_s9 + $0x3e0] sm:$0xff] %vm4917_vm2, %v4914_v49 }

</bundles_post_ra>
